<compile_context>
chip_gen: v7x
topology: tpu7x:2x2x1
jax: 0.10.0
libtpu: 0.0.40
codegen_flags: <defaults>
</compile_context>

<pallas_src>
import functools

import jax
import jax.numpy as jnp
from jax.experimental import pallas as pl
from jax.experimental.pallas import tpu as pltpu

_LANE = 128  # TPU lane width


# ----------------------------------------------------------------------------
# Small helpers
# ----------------------------------------------------------------------------
def _roundup(n, m):
    return -(-n // m) * m


def _pad_rows(a, rows):
    pad = rows - a.shape[0]
    if pad:
        a = jnp.pad(a, [(0, pad)] + [(0, 0)] * (a.ndim - 1))
    return a


def _pad_cols(a, cols):
    pad = cols - a.shape[-1]
    if pad:
        a = jnp.pad(a, [(0, 0)] * (a.ndim - 1) + [(0, pad)])
    return a


def _kpad(k):
    """Lane-pad the contraction dim only when the extra lhs HBM traffic is
    small (pad <= K/8); otherwise a ragged full-K block is cheaper."""
    kp = _roundup(k, _LANE)
    return kp if (kp - k) * 8 <= k else k


def _row_padded(m):
    """Row padding is a function of M only, so chained intermediates sharing
    M also share Mp (no slice + re-pad between kernels)."""
    if m <= 2048:
        return _roundup(m, 32)
    return _roundup(m, 512)


# ----------------------------------------------------------------------------
# Hardware probes (cached, conservative fallbacks)
# ----------------------------------------------------------------------------
@functools.lru_cache(maxsize=None)
def _tpu_topology():
    """Best-effort (vmem_capacity_bytes, tensorcores_per_chip)."""
    vmem = 64 * 1024 * 1024
    cores = 1
    try:
        info = pltpu.get_tpu_info()
        try:
            vmem = max(int(getattr(info, "vmem_capacity_bytes")), 32 * 1024 * 1024)
        except Exception:
            pass
        for attr in ("num_cores", "core_count", "tensorcores_per_chip",
                     "num_tensorcores"):
            try:
                c = int(getattr(info, attr))
                if c > 0:
                    cores = c
                    break
            except Exception:
                continue
    except Exception:
        pass
    if cores == 1:
        try:
            kind = jax.devices()[0].device_kind.lower()
            if any(tag in kind for tag in ("v4", "v5p", "v7", "7x")):
                cores = 2  # megacore chips: 2 TensorCores behind one device
        except Exception:
            pass
    return vmem, cores


@functools.lru_cache(maxsize=None)
def _single_buffer_supported():
    """Probe whether pipeline_mode=pl.Buffered(1) (single-buffered grid-
    invariant blocks) lowers AND produces correct results on this runtime."""
    if not hasattr(pl, "Buffered"):
        return False
    try:
        def k(w_ref, x_ref, o_ref):
            o_ref[...] = x_ref[...] + w_ref[...]

        w = jnp.full((32, 128), 2.0, jnp.float32)
        x = jnp.arange(64 * 128, dtype=jnp.float32).reshape(64, 128)
        out = pl.pallas_call(
            k,
            out_shape=jax.ShapeDtypeStruct((64, 128), jnp.float32),
            grid=(2,),
            in_specs=[pl.BlockSpec((32, 128), lambda i: (0, 0),
                                   pipeline_mode=pl.Buffered(1)),
                      pl.BlockSpec((32, 128), lambda i: (i, 0))],
            out_specs=pl.BlockSpec((32, 128), lambda i: (i, 0)),
        )(w, x)
        return bool(jnp.allclose(jax.block_until_ready(out), x + 2.0))
    except Exception:
        return False


# ----------------------------------------------------------------------------
# Row-tile selection (VMEM- and core-aware)
# ----------------------------------------------------------------------------
def _divisor_tiles(mp):
    """All tile sizes (multiples of 32) dividing Mp, descending."""
    q = mp // 32
    divs = set()
    d = 1
    while d * d <= q:
        if q % d == 0:
            divs.add(d)
            divs.add(q // d)
        d += 1
    return sorted((32 * d for d in divs), reverse=True)


def _step_vmem_bytes(tm, term_ks, n_out, out_itemsize, w_single):
    """Per-grid-step VMEM estimate: double-buffered bf16 lhs tiles and output
    tile; weights/bias single- or double-buffered."""
    wbuf = 1 if w_single else 2
    b = 2 * tm * n_out * out_itemsize + wbuf * n_out * 4
    for k in term_ks:
        b += 2 * tm * k * 2 + wbuf * k * n_out * 2
    return b


def _choose_row_tile(mp, term_ks, n_out, out_itemsize, *, n_cores, vmem_budget,
                     w_single):
    tiles = [t for t in _divisor_tiles(mp) if t <= 2048]
    fitting = [t for t in tiles
               if _step_vmem_bytes(t, term_ks, n_out, out_itemsize,
                                   w_single) <= vmem_budget]
    if not fitting:
        fitting = [tiles[-1]]                 # smallest tile; budget advisory
    if n_cores >= 2:
        # Megacore: prefer >=2 steps split evenly across the TensorCores.
        for t in fitting:
            steps = mp // t
            if steps >= 2 and steps % n_cores == 0:
                return t
    # Single TensorCore: the biggest fitting tile (often one grid step).
    return fitting[0]


# ----------------------------------------------------------------------------
# Pallas kernel: sum_i (lhs_i @ w_i) + bias [+ ReLU], lane-dense output
# ----------------------------------------------------------------------------
def _mm_bias_kernel(*refs, n_lhs, relu):
    # refs = (x0, w0, x1, w1, ..., bias, out)
    b_ref, o_ref = refs[-2], refs[-1]
    acc = jnp.dot(refs[0][...], refs[1][...], preferred_element_type=jnp.float32)
    for t in range(1, n_lhs):
        acc = acc + jnp.dot(refs[2 * t][...], refs[2 * t + 1][...],
                            preferred_element_type=jnp.float32)
    acc = acc + b_ref[...]                       # (1, Np) broadcast over rows
    if relu:
        acc = jnp.maximum(acc, 0.0)
    o_ref[...] = acc.astype(o_ref.dtype)


def _pallas_matmul_bias(terms, bias, *, relu=False, out_dtype=jnp.float32,
                        rows=None, keep_padded_rows=False):
    """sum_i lhs_i @ w_i + bias (optional ReLU) on the MXU.

    terms: list of (lhs (M or Mp, K_i), w (K_i, Np)) sharing M and Np.
    Weights/bias must be in kernel-ready layout: w zero-padded to a lane
    multiple Np (bf16), bias (1, Np) f32.  lhs is cast to bf16 / row-padded
    only when needed (no-ops for pre-padded chained intermediates).
    Returns (Mp, Np) when keep_padded_rows else (M, Np); the padded rows/cols
    only hold bias/zero values so they can be chained safely.
    """
    n_out = terms[0][1].shape[1]
    assert n_out % _LANE == 0, "weights must be prepared lane-padded"
    m_true = int(rows) if rows is not None else int(terms[0][0].shape[0])
    mp = _row_padded(m_true)

    vmem_cap, n_cores = _tpu_topology()
    w_single = _single_buffer_supported()
    term_ks = [int(w.shape[0]) for _, w in terms]
    out_isz = 2 if out_dtype in (jnp.bfloat16, jnp.float16) else 4
    tm = _choose_row_tile(mp, term_ks, n_out, out_isz,
                          n_cores=n_cores,
                          vmem_budget=int(vmem_cap * 0.45),
                          w_single=w_single)

    w_kwargs = {"pipeline_mode": pl.Buffered(1)} if w_single else {}

    in_specs, operands = [], []
    for x2d, w in terms:
        assert w.shape[0] == x2d.shape[1] and w.shape[1] == n_out
        assert x2d.shape[0] in (m_true, mp)
        if x2d.dtype != jnp.bfloat16:
            x2d = x2d.astype(jnp.bfloat16)   # fuses with producing pad/slice under jit
        if x2d.shape[0] != mp:
            x2d = _pad_rows(x2d, mp)
        if w.dtype != jnp.bfloat16:
            w = w.astype(jnp.bfloat16)
        k = x2d.shape[1]
        in_specs.append(pl.BlockSpec((tm, k), lambda i: (i, 0)))            # lhs row tile
        in_specs.append(pl.BlockSpec((k, n_out), lambda i: (0, 0), **w_kwargs))  # invariant weight
        operands += [x2d, w]
    in_specs.append(pl.BlockSpec((1, n_out), lambda i: (0, 0), **w_kwargs))      # invariant bias
    operands.append(bias.astype(jnp.float32))

    est = _step_vmem_bytes(tm, term_ks, n_out, out_isz, w_single)
    vmem_limit = int(min(vmem_cap * 3 // 4,
                         max(32 * 1024 * 1024, est * 5 // 4 + 4 * 1024 * 1024)))

    out = pl.pallas_call(
        functools.partial(_mm_bias_kernel, n_lhs=len(terms), relu=relu),
        out_shape=jax.ShapeDtypeStruct((mp, n_out), out_dtype),
        grid=(mp // tm,),
        in_specs=in_specs,
        out_specs=pl.BlockSpec((tm, n_out), lambda i: (i, 0)),              # lane-dense store
        compiler_params=pltpu.CompilerParams(
            dimension_semantics=("parallel",),
            vmem_limit_bytes=vmem_limit),
    )(*operands)
    return out if (keep_padded_rows or mp == m_true) else out[:m_true]


# ----------------------------------------------------------------------------
# FourierConv forward (NHWC activations, row-flattened matmuls)
# ----------------------------------------------------------------------------
def fourier_conv_forward(x_nhwc, pp):
    """Returns the row-padded (Mp, Cp) bf16 result of FourierConv (rows = N*H*W)."""
    n, h, w, cin = x_nhwc.shape
    cout = pp["out_channels"]
    cp = pp["cp"]
    # TODO(synk): no Pallas FFT primitive; spectral transforms use jnp.fft glue.
    X = jnp.fft.rfft2(x_nhwc, axes=(1, 2))                    # (N, H, Wf, Cin) c64
    wf = X.shape[2]
    mf = n * h * wf
    # cat([real, imag]) -> 1x1 conv fused as W_re @ re + W_im @ im (no concat in HBM).
    # TODO(synk): ConvLayer source not provided; assumed 1x1 Conv2d + ReLU.
    # NOTE: spectral lhs/intermediate run in bf16 (f32 accumulation) per the
    # perf review; switch to f32 here if bit-level parity with PyTorch matters.
    proc = _pallas_matmul_bias(
        [(X.real.reshape(mf, cin), pp["fconv_wr"]),
         (X.imag.reshape(mf, cin), pp["fconv_wi"])],
        pp["fconv_b"], relu=True, out_dtype=jnp.bfloat16,
        keep_padded_rows=True)                                # (Mfp, C2p) bf16
    proc = proc[:mf, :2 * cout].astype(jnp.float32).reshape(n, h, wf, 2 * cout)
    Y = jax.lax.complex(proc[..., :cout], proc[..., cout:])   # (N, H, Wf, Cout)
    # s=(H, W) equals PyTorch's default 2*(Wf-1) reconstruction for even W.
    y = jnp.fft.irfft2(Y, s=(h, w), axes=(1, 2))[:, 1:-1, 1:-1, :]
    # self.output = Conv2d(Cout, Cout, 1, padding=1): zero-pad spatially, then
    # a 1x1 matmul.  The channel pad up to Cp piggybacks on the same pad op so
    # the fout lhs is lane-aligned in K for free.
    y = jnp.pad(y.astype(jnp.bfloat16),
                ((0, 0), (1, 1), (1, 1), (0, cp - cout)))     # (N, H, W, Cp) bf16
    return _pallas_matmul_bias(
        [(y.reshape(n * h * w, cp), pp["fout_w"])],
        pp["fout_b"], relu=False, out_dtype=jnp.bfloat16,
        keep_padded_rows=True)                                # (Mp, Cp) bf16


# ----------------------------------------------------------------------------
# FFC forward
# ----------------------------------------------------------------------------
def ffc_forward(x, pp):
    """x: (N, Cin, H, W) NCHW -> (N, Cout, H, W) NCHW (matches the PyTorch module)."""
    n, cin, h, w = x.shape
    cout = pp["out_channels"]
    m = n * h * w
    x_nhwc = jnp.transpose(x, (0, 2, 3, 1))                   # single input layout change

    # local branch: Conv2d(Cin, Cout, 3, padding=1) via bf16 NHWC im2col; the
    # contraction dim is lane-padded inside the same concatenate when cheap.
    # TODO(synk): for large inputs, stream the 9 taps through an 'arbitrary'
    # K grid axis (halo row tiles + VMEM f32 accumulator) instead of
    # materializing the im2col tensor.
    xp = jnp.pad(x_nhwc.astype(jnp.bfloat16), ((0, 0), (1, 1), (1, 1), (0, 0)))
    taps = [xp[:, kh:kh + h, kw:kw + w, :] for kh in range(3) for kw in range(3)]
    k_pad = pp["k_loc"] - 9 * cin
    if k_pad:
        taps.append(jnp.zeros((n, h, w, k_pad), jnp.bfloat16))
    cols = jnp.concatenate(taps, axis=-1)                     # (N, H, W, Kp) bf16
    l2d = _pallas_matmul_bias(
        [(cols.reshape(m, pp["k_loc"]), pp["local_w"])],
        pp["local_b"], relu=False, out_dtype=jnp.bfloat16,
        keep_padded_rows=True)                                # (Mp, Cp) bf16

    # global branch
    g2d = fourier_conv_forward(x_nhwc, pp)                    # (Mp, Cp) bf16

    # aggregate='cat' + ConvLayer(2*Cout, Cout, 1) fused into one kernel:
    # W @ cat(l, g) == W_l @ l + W_g @ g  (no concatenated tensor in HBM).
    # TODO(synk): ConvLayer source not provided; assumed 1x1 Conv2d + ReLU.
    out2d = _pallas_matmul_bias(
        [(l2d, pp["agg_wl"]), (g2d, pp["agg_wg"])],
        pp["agg_b"], relu=True, out_dtype=jnp.float32, rows=m)  # (M, Cp) f32
    out = out2d[:, :cout].reshape(n, h, w, cout)
    return jnp.transpose(out, (0, 3, 1, 2))                   # single output layout change


# ----------------------------------------------------------------------------
# Parameters: deterministic raw init + one-time kernel-ready prep
# ----------------------------------------------------------------------------
def init_params(key, in_channels, out_channels):
    ks = jax.random.split(key, 8)

    def wi(k, shape, fan_in):
        return jax.random.normal(k, shape, jnp.float32) / jnp.sqrt(float(fan_in))

    return {
        # local_branch: Conv2d(Cin, Cout, 3, padding=1)
        "local_w": wi(ks[0], (out_channels, in_channels, 3, 3), in_channels * 9),
        "local_b": wi(ks[1], (out_channels,), in_channels * 9),
        # global_branch.conv: ConvLayer(2*Cin, 2*Cout, 1)
        "fconv_w": wi(ks[2], (2 * out_channels, 2 * in_channels), 2 * in_channels),
        "fconv_b": wi(ks[3], (2 * out_channels,), 2 * in_channels),
        # global_branch.output: Conv2d(Cout, Cout, 1, padding=1)
        "fout_w": wi(ks[4], (out_channels, out_channels), out_channels),
        "fout_b": wi(ks[5], (out_channels,), out_channels),
        # FFC.output (aggregate='cat'): ConvLayer(2*Cout, Cout, 1)
        "agg_w": wi(ks[6], (out_channels, 2 * out_channels), 2 * out_channels),
        "agg_b": wi(ks[7], (out_channels,), 2 * out_channels),
    }


def prepare_params(p):
    """One-time prep: transpose / zero-pad / cast weights & biases into the
    kernel-ready layouts so the forward pass does no per-call reshuffling."""
    local_w = p["local_w"]                        # (Cout, Cin, 3, 3)
    cout, cin = int(local_w.shape[0]), int(local_w.shape[1])
    cp = _roundup(cout, _LANE)
    c2p = _roundup(2 * cout, _LANE)
    k_loc = _kpad(9 * cin)

    def wprep(w2d, kp, np_):
        return _pad_cols(_pad_rows(w2d, kp), np_).astype(jnp.bfloat16)

    def bprep(b, np_):
        return _pad_cols(b.reshape(1, -1), np_).astype(jnp.float32)

    w_loc = jnp.transpose(local_w, (2, 3, 1, 0)).reshape(9 * cin, cout)
    fconv_w, fout_w, agg_w = p["fconv_w"], p["fout_w"], p["agg_w"]

    return {
        "out_channels": cout,
        "in_channels": cin,
        "cp": cp,
        "k_loc": k_loc,
        "local_w": wprep(w_loc, k_loc, cp),
        "local_b": bprep(p["local_b"], cp),
        "fconv_wr": wprep(fconv_w[:, :cin].T, cin, c2p),   # real half of cat(re, im)
        "fconv_wi": wprep(fconv_w[:, cin:].T, cin, c2p),   # imag half
        "fconv_b": bprep(p["fconv_b"], c2p),
        "fout_w": wprep(fout_w.T, cp, cp),
        "fout_b": bprep(p["fout_b"], cp),
        "agg_wl": wprep(agg_w[:, :cout].T, cp, cp),        # l half of cat(l, g)
        "agg_wg": wprep(agg_w[:, cout:].T, cp, cp),        # g half
        "agg_b": bprep(p["agg_b"], cp),
    }


if __name__ == "__main__":
    key = jax.random.PRNGKey(0)
    kx, kp_ = jax.random.split(key)

    N, Cin, H, W = 2, 4, 16, 16
    Cout = 4
    x = jax.random.normal(kx, (N, Cin, H, W), jnp.float32)
    params = prepare_params(init_params(kp_, Cin, Cout))

    # Warm the hardware probes outside the jit trace.
    _tpu_topology()
    _single_buffer_supported()

    forward = jax.jit(lambda xx: ffc_forward(xx, params))
    out = jax.block_until_ready(forward(x))
    assert out.shape == (N, Cout, H, W), out.shape
    assert out.dtype == jnp.float32
    assert bool(jnp.all(jnp.isfinite(out)))
    print("KERNEL_OK")
</pallas_src>

<mosaic_0001>
module attributes {stable_mosaic.version = 11 : i64} {
  func.func @k(%arg0: i32, %arg1: memref<32x128xf32, #tpu.memory_space<vmem>>, %arg2: memref<32x128xf32, #tpu.memory_space<vmem>>, %arg3: memref<32x128xf32, #tpu.memory_space<vmem>>) attributes {dimension_semantics = [#tpu.dimension_semantics<arbitrary>], iteration_bounds = array<i64: 2>, scalar_prefetch = 0 : i64, scratch_operands = 0 : i64, tpu.core_type = #tpu.core_type<tc>, window_params = [{pipeline_mode = #tpu.pipeline_mode<synchronous>, transform_indices = @transform_0, window_bounds = array<i64: 32, 128>}, {transform_indices = @transform_1, window_bounds = array<i64: 32, 128>}, {transform_indices = @transform_2, window_bounds = array<i64: 32, 128>}]} {
    %c0 = arith.constant 0 : index
    %c0_0 = arith.constant 0 : index
    %0 = vector.load %arg2[%c0, %c0_0] : memref<32x128xf32, #tpu.memory_space<vmem>>, vector<32x128xf32>
    %c0_1 = arith.constant 0 : index
    %c0_2 = arith.constant 0 : index
    %1 = vector.load %arg1[%c0_1, %c0_2] : memref<32x128xf32, #tpu.memory_space<vmem>>, vector<32x128xf32>
    %2 = arith.addf %0, %1 : vector<32x128xf32>
    %c0_3 = arith.constant 0 : index
    %c0_4 = arith.constant 0 : index
    %3 = vector.load %arg3[%c0_3, %c0_4] : memref<32x128xf32, #tpu.memory_space<vmem>>, vector<32x128xf32>
    tpu.vector_store %arg3[%c0_3, %c0_4], %2 {strides = array<i32>} : memref<32x128xf32, #tpu.memory_space<vmem>>, vector<32x128xf32>,
    return
  }
  func.func @transform_0(%arg0: i32) -> (i32, i32) {
    %c0_i32 = arith.constant 0 : i32
    %c0_i32_0 = arith.constant 0 : i32
    %c0_i32_1 = arith.constant 0 : i32
    return %c0_i32, %c0_i32_0 : i32, i32
  }
  func.func @transform_1(%arg0: i32) -> (i32, i32) {
    %c0_i32 = arith.constant 0 : i32
    %c0_i32_0 = arith.constant 0 : i32
    return %arg0, %c0_i32 : i32, i32
  }
  func.func @transform_2(%arg0: i32) -> (i32, i32) {
    %c0_i32 = arith.constant 0 : i32
    %c0_i32_0 = arith.constant 0 : i32
    return %arg0, %c0_i32 : i32, i32
  }
}

module attributes {stable_mosaic.version = 11 : i64} {
  func.func @_mm_bias_kernel(%arg0: i32, %arg1: memref<512x36xbf16, #tpu.memory_space<vmem>>, %arg2: memref<36x128xbf16, #tpu.memory_space<vmem>>, %arg3: memref<1x128xf32, #tpu.memory_space<vmem>>, %arg4: memref<512x128xbf16, #tpu.memory_space<vmem>>) attributes {dimension_semantics = [#tpu.dimension_semantics<parallel>], iteration_bounds = array<i64: 1>, scalar_prefetch = 0 : i64, scratch_operands = 0 : i64, tpu.core_type = #tpu.core_type<tc>, window_params = [{transform_indices = @transform_0, window_bounds = array<i64: 512, 36>}, {pipeline_mode = #tpu.pipeline_mode<synchronous>, transform_indices = @transform_1, window_bounds = array<i64: 36, 128>}, {pipeline_mode = #tpu.pipeline_mode<synchronous>, transform_indices = @transform_2, window_bounds = array<i64: 1, 128>}, {transform_indices = @transform_3, window_bounds = array<i64: 512, 128>}]} {
    %c0 = arith.constant 0 : index
    %c0_0 = arith.constant 0 : index
    %0 = vector.load %arg1[%c0, %c0_0] : memref<512x36xbf16, #tpu.memory_space<vmem>>, vector<512x36xbf16>
    %c0_1 = arith.constant 0 : index
    %c0_2 = arith.constant 0 : index
    %1 = vector.load %arg2[%c0_1, %c0_2] : memref<36x128xbf16, #tpu.memory_space<vmem>>, vector<36x128xbf16>
    %cst = arith.constant dense<0.000000e+00> : vector<512x128xf32>
    %2 = tpu.matmul %0, %1, %cst {dimension_numbers = #tpu.dot_dimension_numbers<[1], [0], [0], [1], [0, 0, 1, 1], [], []>} : vector<512x36xbf16>, vector<36x128xbf16>, vector<512x128xf32> -> vector<512x128xf32>
    %c0_3 = arith.constant 0 : index
    %c0_4 = arith.constant 0 : index
    %3 = vector.load %arg3[%c0_3, %c0_4] : memref<1x128xf32, #tpu.memory_space<vmem>>, vector<1x128xf32>
    %4 = vector.broadcast %3 : vector<1x128xf32> to vector<512x128xf32>
    %5 = arith.addf %2, %4 : vector<512x128xf32>
    %6 = arith.truncf %5 : vector<512x128xf32> to vector<512x128xbf16>
    %c0_5 = arith.constant 0 : index
    %c0_6 = arith.constant 0 : index
    %7 = vector.load %arg4[%c0_5, %c0_6] : memref<512x128xbf16, #tpu.memory_space<vmem>>, vector<512x128xbf16>
    tpu.vector_store %arg4[%c0_5, %c0_6], %6 {strides = array<i32>} : memref<512x128xbf16, #tpu.memory_space<vmem>>, vector<512x128xbf16>,
    return
  }
  func.func @transform_0(%arg0: i32) -> (i32, i32) {
    %c0_i32 = arith.constant 0 : i32
    %c0_i32_0 = arith.constant 0 : i32
    return %arg0, %c0_i32 : i32, i32
  }
  func.func @transform_1(%arg0: i32) -> (i32, i32) {
    %c0_i32 = arith.constant 0 : i32
    %c0_i32_0 = arith.constant 0 : i32
    %c0_i32_1 = arith.constant 0 : i32
    return %c0_i32, %c0_i32_0 : i32, i32
  }
  func.func @transform_2(%arg0: i32) -> (i32, i32) {
    %c0_i32 = arith.constant 0 : i32
    %c0_i32_0 = arith.constant 0 : i32
    %c0_i32_1 = arith.constant 0 : i32
    return %c0_i32, %c0_i32_0 : i32, i32
  }
  func.func @transform_3(%arg0: i32) -> (i32, i32) {
    %c0_i32 = arith.constant 0 : i32
    %c0_i32_0 = arith.constant 0 : i32
    return %arg0, %c0_i32 : i32, i32
  }
}

module attributes {stable_mosaic.version = 11 : i64} {
  func.func @_mm_bias_kernel(%arg0: i32, %arg1: memref<288x4xbf16, #tpu.memory_space<vmem>>, %arg2: memref<4x128xbf16, #tpu.memory_space<vmem>>, %arg3: memref<288x4xbf16, #tpu.memory_space<vmem>>, %arg4: memref<4x128xbf16, #tpu.memory_space<vmem>>, %arg5: memref<1x128xf32, #tpu.memory_space<vmem>>, %arg6: memref<288x128xbf16, #tpu.memory_space<vmem>>) attributes {dimension_semantics = [#tpu.dimension_semantics<parallel>], iteration_bounds = array<i64: 1>, scalar_prefetch = 0 : i64, scratch_operands = 0 : i64, tpu.core_type = #tpu.core_type<tc>, window_params = [{transform_indices = @transform_0, window_bounds = array<i64: 288, 4>}, {pipeline_mode = #tpu.pipeline_mode<synchronous>, transform_indices = @transform_1, window_bounds = array<i64: 4, 128>}, {transform_indices = @transform_2, window_bounds = array<i64: 288, 4>}, {pipeline_mode = #tpu.pipeline_mode<synchronous>, transform_indices = @transform_3, window_bounds = array<i64: 4, 128>}, {pipeline_mode = #tpu.pipeline_mode<synchronous>, transform_indices = @transform_4, window_bounds = array<i64: 1, 128>}, {transform_indices = @transform_5, window_bounds = array<i64: 288, 128>}]} {
    %c0 = arith.constant 0 : index
    %c0_0 = arith.constant 0 : index
    %0 = vector.load %arg1[%c0, %c0_0] : memref<288x4xbf16, #tpu.memory_space<vmem>>, vector<288x4xbf16>
    %c0_1 = arith.constant 0 : index
    %c0_2 = arith.constant 0 : index
    %1 = vector.load %arg2[%c0_1, %c0_2] : memref<4x128xbf16, #tpu.memory_space<vmem>>, vector<4x128xbf16>
    %cst = arith.constant dense<0.000000e+00> : vector<288x128xf32>
    %2 = tpu.matmul %0, %1, %cst {dimension_numbers = #tpu.dot_dimension_numbers<[1], [0], [0], [1], [0, 0, 1, 1], [], []>} : vector<288x4xbf16>, vector<4x128xbf16>, vector<288x128xf32> -> vector<288x128xf32>
    %c0_3 = arith.constant 0 : index
    %c0_4 = arith.constant 0 : index
    %3 = vector.load %arg3[%c0_3, %c0_4] : memref<288x4xbf16, #tpu.memory_space<vmem>>, vector<288x4xbf16>
    %c0_5 = arith.constant 0 : index
    %c0_6 = arith.constant 0 : index
    %4 = vector.load %arg4[%c0_5, %c0_6] : memref<4x128xbf16, #tpu.memory_space<vmem>>, vector<4x128xbf16>
    %cst_7 = arith.constant dense<0.000000e+00> : vector<288x128xf32>
    %5 = tpu.matmul %3, %4, %cst_7 {dimension_numbers = #tpu.dot_dimension_numbers<[1], [0], [0], [1], [0, 0, 1, 1], [], []>} : vector<288x4xbf16>, vector<4x128xbf16>, vector<288x128xf32> -> vector<288x128xf32>
    %6 = arith.addf %2, %5 : vector<288x128xf32>
    %c0_8 = arith.constant 0 : index
    %c0_9 = arith.constant 0 : index
    %7 = vector.load %arg5[%c0_8, %c0_9] : memref<1x128xf32, #tpu.memory_space<vmem>>, vector<1x128xf32>
    %8 = vector.broadcast %7 : vector<1x128xf32> to vector<288x128xf32>
    %9 = arith.addf %6, %8 : vector<288x128xf32>
    %cst_10 = arith.constant 0.000000e+00 : f32
    %10 = vector.broadcast %cst_10 : f32 to vector<288x128xf32>
    %11 = arith.maximumf %9, %10 : vector<288x128xf32>
    %12 = arith.truncf %11 : vector<288x128xf32> to vector<288x128xbf16>
    %c0_11 = arith.constant 0 : index
    %c0_12 = arith.constant 0 : index
    %13 = vector.load %arg6[%c0_11, %c0_12] : memref<288x128xbf16, #tpu.memory_space<vmem>>, vector<288x128xbf16>
    tpu.vector_store %arg6[%c0_11, %c0_12], %12 {strides = array<i32>} : memref<288x128xbf16, #tpu.memory_space<vmem>>, vector<288x128xbf16>,
    return
  }
  func.func @transform_0(%arg0: i32) -> (i32, i32) {
    %c0_i32 = arith.constant 0 : i32
    %c0_i32_0 = arith.constant 0 : i32
    return %arg0, %c0_i32 : i32, i32
  }
  func.func @transform_1(%arg0: i32) -> (i32, i32) {
    %c0_i32 = arith.constant 0 : i32
    %c0_i32_0 = arith.constant 0 : i32
    %c0_i32_1 = arith.constant 0 : i32
    return %c0_i32, %c0_i32_0 : i32, i32
  }
  func.func @transform_2(%arg0: i32) -> (i32, i32) {
    %c0_i32 = arith.constant 0 : i32
    %c0_i32_0 = arith.constant 0 : i32
    return %arg0, %c0_i32 : i32, i32
  }
  func.func @transform_3(%arg0: i32) -> (i32, i32) {
    %c0_i32 = arith.constant 0 : i32
    %c0_i32_0 = arith.constant 0 : i32
    %c0_i32_1 = arith.constant 0 : i32
    return %c0_i32, %c0_i32_0 : i32, i32
  }
  func.func @transform_4(%arg0: i32) -> (i32, i32) {
    %c0_i32 = arith.constant 0 : i32
    %c0_i32_0 = arith.constant 0 : i32
    %c0_i32_1 = arith.constant 0 : i32
    return %c0_i32, %c0_i32_0 : i32, i32
  }
  func.func @transform_5(%arg0: i32) -> (i32, i32) {
    %c0_i32 = arith.constant 0 : i32
    %c0_i32_0 = arith.constant 0 : i32
    return %arg0, %c0_i32 : i32, i32
  }
}

module attributes {stable_mosaic.version = 11 : i64} {
  func.func @_mm_bias_kernel(%arg0: i32, %arg1: memref<512x128xbf16, #tpu.memory_space<vmem>>, %arg2: memref<128x128xbf16, #tpu.memory_space<vmem>>, %arg3: memref<512x128xbf16, #tpu.memory_space<vmem>>, %arg4: memref<128x128xbf16, #tpu.memory_space<vmem>>, %arg5: memref<1x128xf32, #tpu.memory_space<vmem>>, %arg6: memref<512x128xf32, #tpu.memory_space<vmem>>) attributes {dimension_semantics = [#tpu.dimension_semantics<parallel>], iteration_bounds = array<i64: 1>, scalar_prefetch = 0 : i64, scratch_operands = 0 : i64, tpu.core_type = #tpu.core_type<tc>, window_params = [{transform_indices = @transform_0, window_bounds = array<i64: 512, 128>}, {pipeline_mode = #tpu.pipeline_mode<synchronous>, transform_indices = @transform_1, window_bounds = array<i64: 128, 128>}, {transform_indices = @transform_2, window_bounds = array<i64: 512, 128>}, {pipeline_mode = #tpu.pipeline_mode<synchronous>, transform_indices = @transform_3, window_bounds = array<i64: 128, 128>}, {pipeline_mode = #tpu.pipeline_mode<synchronous>, transform_indices = @transform_4, window_bounds = array<i64: 1, 128>}, {transform_indices = @transform_5, window_bounds = array<i64: 512, 128>}]} {
    %c0 = arith.constant 0 : index
    %c0_0 = arith.constant 0 : index
    %0 = vector.load %arg1[%c0, %c0_0] : memref<512x128xbf16, #tpu.memory_space<vmem>>, vector<512x128xbf16>
    %c0_1 = arith.constant 0 : index
    %c0_2 = arith.constant 0 : index
    %1 = vector.load %arg2[%c0_1, %c0_2] : memref<128x128xbf16, #tpu.memory_space<vmem>>, vector<128x128xbf16>
    %cst = arith.constant dense<0.000000e+00> : vector<512x128xf32>
    %2 = tpu.matmul %0, %1, %cst {dimension_numbers = #tpu.dot_dimension_numbers<[1], [0], [0], [1], [0, 0, 1, 1], [], []>} : vector<512x128xbf16>, vector<128x128xbf16>, vector<512x128xf32> -> vector<512x128xf32>
    %c0_3 = arith.constant 0 : index
    %c0_4 = arith.constant 0 : index
    %3 = vector.load %arg3[%c0_3, %c0_4] : memref<512x128xbf16, #tpu.memory_space<vmem>>, vector<512x128xbf16>
    %c0_5 = arith.constant 0 : index
    %c0_6 = arith.constant 0 : index
    %4 = vector.load %arg4[%c0_5, %c0_6] : memref<128x128xbf16, #tpu.memory_space<vmem>>, vector<128x128xbf16>
    %cst_7 = arith.constant dense<0.000000e+00> : vector<512x128xf32>
    %5 = tpu.matmul %3, %4, %cst_7 {dimension_numbers = #tpu.dot_dimension_numbers<[1], [0], [0], [1], [0, 0, 1, 1], [], []>} : vector<512x128xbf16>, vector<128x128xbf16>, vector<512x128xf32> -> vector<512x128xf32>
    %6 = arith.addf %2, %5 : vector<512x128xf32>
    %c0_8 = arith.constant 0 : index
    %c0_9 = arith.constant 0 : index
    %7 = vector.load %arg5[%c0_8, %c0_9] : memref<1x128xf32, #tpu.memory_space<vmem>>, vector<1x128xf32>
    %8 = vector.broadcast %7 : vector<1x128xf32> to vector<512x128xf32>
    %9 = arith.addf %6, %8 : vector<512x128xf32>
    %cst_10 = arith.constant 0.000000e+00 : f32
    %10 = vector.broadcast %cst_10 : f32 to vector<512x128xf32>
    %11 = arith.maximumf %9, %10 : vector<512x128xf32>
    %c0_11 = arith.constant 0 : index
    %c0_12 = arith.constant 0 : index
    %12 = vector.load %arg6[%c0_11, %c0_12] : memref<512x128xf32, #tpu.memory_space<vmem>>, vector<512x128xf32>
    tpu.vector_store %arg6[%c0_11, %c0_12], %11 {strides = array<i32>} : memref<512x128xf32, #tpu.memory_space<vmem>>, vector<512x128xf32>,
    return
  }
  func.func @transform_0(%arg0: i32) -> (i32, i32) {
    %c0_i32 = arith.constant 0 : i32
    %c0_i32_0 = arith.constant 0 : i32
    return %arg0, %c0_i32 : i32, i32
  }
  func.func @transform_1(%arg0: i32) -> (i32, i32) {
    %c0_i32 = arith.constant 0 : i32
    %c0_i32_0 = arith.constant 0 : i32
    %c0_i32_1 = arith.constant 0 : i32
    return %c0_i32, %c0_i32_0 : i32, i32
  }
  func.func @transform_2(%arg0: i32) -> (i32, i32) {
    %c0_i32 = arith.constant 0 : i32
    %c0_i32_0 = arith.constant 0 : i32
    return %arg0, %c0_i32 : i32, i32
  }
  func.func @transform_3(%arg0: i32) -> (i32, i32) {
    %c0_i32 = arith.constant 0 : i32
    %c0_i32_0 = arith.constant 0 : i32
    %c0_i32_1 = arith.constant 0 : i32
    return %c0_i32, %c0_i32_0 : i32, i32
  }
  func.func @transform_4(%arg0: i32) -> (i32, i32) {
    %c0_i32 = arith.constant 0 : i32
    %c0_i32_0 = arith.constant 0 : i32
    %c0_i32_1 = arith.constant 0 : i32
    return %c0_i32, %c0_i32_0 : i32, i32
  }
  func.func @transform_5(%arg0: i32) -> (i32, i32) {
    %c0_i32 = arith.constant 0 : i32
    %c0_i32_0 = arith.constant 0 : i32
    return %arg0, %c0_i32 : i32, i32
  }
}

module attributes {stable_mosaic.version = 11 : i64} {
  func.func @_mm_bias_kernel(%arg0: i32, %arg1: memref<512x128xbf16, #tpu.memory_space<vmem>>, %arg2: memref<128x128xbf16, #tpu.memory_space<vmem>>, %arg3: memref<1x128xf32, #tpu.memory_space<vmem>>, %arg4: memref<512x128xbf16, #tpu.memory_space<vmem>>) attributes {dimension_semantics = [#tpu.dimension_semantics<parallel>], iteration_bounds = array<i64: 1>, scalar_prefetch = 0 : i64, scratch_operands = 0 : i64, tpu.core_type = #tpu.core_type<tc>, window_params = [{transform_indices = @transform_0, window_bounds = array<i64: 512, 128>}, {pipeline_mode = #tpu.pipeline_mode<synchronous>, transform_indices = @transform_1, window_bounds = array<i64: 128, 128>}, {pipeline_mode = #tpu.pipeline_mode<synchronous>, transform_indices = @transform_2, window_bounds = array<i64: 1, 128>}, {transform_indices = @transform_3, window_bounds = array<i64: 512, 128>}]} {
    %c0 = arith.constant 0 : index
    %c0_0 = arith.constant 0 : index
    %0 = vector.load %arg1[%c0, %c0_0] : memref<512x128xbf16, #tpu.memory_space<vmem>>, vector<512x128xbf16>
    %c0_1 = arith.constant 0 : index
    %c0_2 = arith.constant 0 : index
    %1 = vector.load %arg2[%c0_1, %c0_2] : memref<128x128xbf16, #tpu.memory_space<vmem>>, vector<128x128xbf16>
    %cst = arith.constant dense<0.000000e+00> : vector<512x128xf32>
    %2 = tpu.matmul %0, %1, %cst {dimension_numbers = #tpu.dot_dimension_numbers<[1], [0], [0], [1], [0, 0, 1, 1], [], []>} : vector<512x128xbf16>, vector<128x128xbf16>, vector<512x128xf32> -> vector<512x128xf32>
    %c0_3 = arith.constant 0 : index
    %c0_4 = arith.constant 0 : index
    %3 = vector.load %arg3[%c0_3, %c0_4] : memref<1x128xf32, #tpu.memory_space<vmem>>, vector<1x128xf32>
    %4 = vector.broadcast %3 : vector<1x128xf32> to vector<512x128xf32>
    %5 = arith.addf %2, %4 : vector<512x128xf32>
    %6 = arith.truncf %5 : vector<512x128xf32> to vector<512x128xbf16>
    %c0_5 = arith.constant 0 : index
    %c0_6 = arith.constant 0 : index
    %7 = vector.load %arg4[%c0_5, %c0_6] : memref<512x128xbf16, #tpu.memory_space<vmem>>, vector<512x128xbf16>
    tpu.vector_store %arg4[%c0_5, %c0_6], %6 {strides = array<i32>} : memref<512x128xbf16, #tpu.memory_space<vmem>>, vector<512x128xbf16>,
    return
  }
  func.func @transform_0(%arg0: i32) -> (i32, i32) {
    %c0_i32 = arith.constant 0 : i32
    %c0_i32_0 = arith.constant 0 : i32
    return %arg0, %c0_i32 : i32, i32
  }
  func.func @transform_1(%arg0: i32) -> (i32, i32) {
    %c0_i32 = arith.constant 0 : i32
    %c0_i32_0 = arith.constant 0 : i32
    %c0_i32_1 = arith.constant 0 : i32
    return %c0_i32, %c0_i32_0 : i32, i32
  }
  func.func @transform_2(%arg0: i32) -> (i32, i32) {
    %c0_i32 = arith.constant 0 : i32
    %c0_i32_0 = arith.constant 0 : i32
    %c0_i32_1 = arith.constant 0 : i32
    return %c0_i32, %c0_i32_0 : i32, i32
  }
  func.func @transform_3(%arg0: i32) -> (i32, i32) {
    %c0_i32 = arith.constant 0 : i32
    %c0_i32_0 = arith.constant 0 : i32
    return %arg0, %c0_i32 : i32, i32
  }
}

</mosaic_0001>

<bundles_post_ra>
// kernel: tpu_custom_call.1
= control target key start
LH: loop header
LB: loop body
LE: loop exit
PB: predicated region body
PF: predicated region fallthrough
CT: control target
= control target key end

     0   :  { %7 = vsyncpa [#allocation3], 0  ;;  %s732_s0 = inlined_call_operand.hbm [shape: f32[32,128], index: 0, kind: input, shape index: {}]   ;;  %s733_s1 = inlined_call_operand.hbm [shape: f32[64,128], index: 1, kind: input, shape index: {}]   ;;  %s734_s2 = inlined_call_operand.hbm [shape: f32[64,128], index: 2, kind: output, shape index: {}]  }
   0x1   :  { %8 = vsyncpa [#allocation6], 0 }
   0x2   :  { %10 = vsyncpa [#allocation6 + $0x1], 0 }
   0x3   :  { %11 = vsyncpa [#allocation4], 0 }
   0x4   :  { %13 = vsyncpa [#allocation4 + $0x1], 0  ;;  %s525_s9 = smov 0   ;;  %s527_s10 = smov 0  }
   0x5   :  { %s529_s11 = smov 0   ;;  %s531_s12 = smov 0  }
   0x6 LB: > { %s546_s13 = sadd.s32 4294967295, %s501_s12   ;;  %s294_s14 = sadd.s32 4294967294, %s501_s12   ;;  %s501_s12 = sphi %s531_s12, %s754_s12   ;;  %s497_s11 = sphi %s529_s11, %s753_s11   ;;  %s493_s10 = sphi %s527_s10, %s752_s10   ;;  %s489_s9 = sphi %s525_s9, %s751_s9  }
   0x7   : > { %p60_p0 = scmp.ne.s32.totalorder %s493_s10, %s489_s9  ;;  %p735_p1 = scmp.eq.s32.totalorder %s546_s13, 0 }
   0x8   : > { %p90_p3 = scmp.eq.s32.totalorder %s294_s14, 1  ;;  %p295_p5 = scmp.ge.s32.totalorder %s501_s12, 1 }
   0x9   : > { %p555_p4 = por %p735_p1, %p60_p0  ;;  %p97_p7 = scmp.lt.s32.totalorder %s501_s12, 3 }
   0xa   : > { %p560_p6 = por %p90_p3, %p60_p0  ;;  %s503_s18 = smov [#allocation2]  }
   0xb   : > { %s738_s15 = scalar_select %p555_p4, 1, 0 }
   0xc   : > { %s739_s16 = scalar_select %p560_p6, 1, 0 }
   0xd   : > { %p565_p8 = pnand %p295_p5, %p97_p7  ;;  %s109_s19 = sshll.u32 %s503_s18, 4  ;;  %s569_s19 = int_to_ptr.vmem [resolvable:$true] %s109_s19 }
   0xe   : > { %s581_s21 = sadd.s32 1, %s501_s12   ;;  %s47_s22 = sadd.s32 1, %s497_s11 }
   0xf   : > { %s740_s17 = scalar_select %p565_p8, 1, 0 }
  0x10   : > { %p320_p9 = pneg %p565_p8  ;;  %s44_s23 = ssub.s32 %s501_s12, %s581_s21 }
  0x11   : > { %s373_s26 = scalar_lea.hbm %s732_s0, 512 }
  0x12   : > { %p576_p11 = pnand %p320_p9, %p735_p1  ;;  %p374_p12 = scmp.ne.s32.totalorder %s732_s0, %s373_s26 }
  0x13   : > { %p380_p5 = scmp.lt.u32.totalorder %s373_s26, %s732_s0 }
  0x14   : > { %p375_p13 = pneg %p576_p11 }
  0x16   : > { %p376_p0 = pnand %p375_p13, %p374_p12 }
  0x18   : > { %p377_p3 = pneg %p376_p0 }
  0x1a   : > { %p382_p7 = pnand %p380_p5, %p377_p3 }
  0x1c   : > { %385 = shalt.err (!%p382_p7)
}
  0x1d   : > { %s386_s3 = scalar_lea.vmem %s569_s19, 512  ;;  %p394_p2 = scmp.lt.s32.totalorder %s569_s19, %s569_s19 }
  0x1e   : > { %p387_p9 = scmp.ne.s32.totalorder %s569_s19, %s386_s3  ;;  %p395_p6 = scmp.lt.s32.totalorder %s386_s3, %s386_s3 }
  0x20   : > { %p389_p10 = pnand %p387_p9, %p375_p13  ;;  %p396_p4 = por %p395_p6, %p394_p2 }
  0x22   : > { %p390_p1 = pneg %p389_p10 }
  0x24   : > { %p397_p8 = pnand %p396_p4, %p390_p1 }
  0x26   : > { %400 = shalt.err (!%p397_p8)
}
  0x27   : > { %s504_s4 = smov 128   ;;  %s505_s5 = smov 8  }
  0x28   : > { %323 = dma.hbm_to_vmem [thread:$0]  (!%p576_p11), %s732_s0, 512, %s569_s19, [#allocation3], %s504_s4, %s504_s4, %s505_s5  }
  0x29   : > { %p45_p1 = scmp.eq.s32.totalorder %s44_s23, 0  ;;  %p54_p2 = scmp.ne.s32.totalorder %s497_s11, %s493_s10 }
  0x2a   : > { %p55_p4 = scmp.eq.s32.totalorder %s501_s12, 0  ;;  %p333_p6 = scmp.lt.s32.totalorder %s501_s12, 2 }
  0x2b   : > { %s615_s8 = scalar_select %p45_p1, %s497_s11, %s47_s22  }
  0x2c   : > { %p56_p8 = por %p55_p4, %p54_p2  ;;  %p742_p10 = scmp.eq.s32.totalorder %s546_s13, 1 }
  0x2d   : > { %s123_s18 = sand.u32 1, %s497_s11   ;;  %s310_s20 = sshll.u32 %s501_s12, 9 }
  0x2e   : > { %p619_p12 = por %p742_p10, %p54_p2  ;;  %s298_s24 = sshll.u32 %s123_s18, 5 }
  0x2f   : > { %s628_s27 = scalar_lea.hbm %s733_s1, %s310_s20  ;;  %s127_s19 = scalar_lea.vmem [#allocation5], %s298_s24 }
  0x30   : > { %s134_s22 = sshll.u32 %s127_s19, 4  ;;  %p630_p11 = pnand %p333_p6, %p56_p8  ;;  %s634_s22 = int_to_ptr.vmem [resolvable:$true] %s134_s22 }
  0x31   : > { %s636_s28 = scalar_lea.sflag [#allocation6], %s123_s18  ;;  %s401_s29 = scalar_lea.hbm %s628_s27, 512 }
  0x32   : > { %p402_p13 = scmp.ne.s32.totalorder %s628_s27, %s401_s29  ;;  %p403_p0 = pneg %p630_p11 }
  0x33   : > { %s406_s6 = scalar_lea.hbm %s733_s1, 1024  ;;  %p407_p7 = scmp.lt.u32.totalorder %s628_s27, %s733_s1 }
  0x34   : > { %p404_p3 = pnand %p403_p0, %p402_p13  ;;  %p408_p9 = scmp.lt.u32.totalorder %s406_s6, %s401_s29 }
  0x35   : > { %p410_p2 = scmp.lt.u32.totalorder %s401_s29, %s628_s27 }
  0x36   : > { %p405_p5 = pneg %p404_p3  ;;  %p409_p1 = por %p408_p9, %p407_p7 }
  0x38   : > { %p411_p4 = por %p410_p2, %p409_p1 }
  0x3a   : > { %p412_p6 = pnand %p411_p4, %p405_p5 }
  0x3c   : > { %415 = shalt.err (!%p412_p6)
}
  0x3d   : > { %s416_s18 = scalar_lea.vmem %s634_s22, 512  ;;  %s506_s24 = smov [#allocation5]  }
  0x3e   : > { %p417_p8 = scmp.ne.s32.totalorder %s634_s22, %s416_s18  ;;  %s421_s25 = sshll.u32 %s506_s24, 4  ;;  %s422_s25 = int_to_ptr.vmem [resolvable:$false] %s421_s25 }
  0x3f   : > { %s423_s26 = scalar_lea.vmem %s422_s25, 1024  ;;  %p424_p3 = scmp.lt.s32.totalorder %s634_s22, %s422_s25 }
  0x40   : > { %p419_p10 = pnand %p417_p8, %p403_p0  ;;  %p425_p7 = scmp.lt.s32.totalorder %s423_s26, %s416_s18 }
  0x42   : > { %p420_p13 = pneg %p419_p10  ;;  %p426_p9 = por %p425_p7, %p424_p3 }
  0x44   : > { %p427_p1 = pnand %p426_p9, %p420_p13 }
  0x46   : > { %430 = shalt.err (!%p427_p1)
}
  0x47   : > { %327 = dma.hbm_to_vmem [thread:$0]  (!%p630_p11), %s628_s27, 512, %s634_s22, %s636_s28, %s504_s4, %s504_s4, %s505_s5  }
  0x48   : > { %p745_p0 = scmp.ne.s32.totalorder %s740_s17, 0 }
  0x49   : > { %p746_p5 = scmp.eq.s32.totalorder (!%p745_p0), %s546_s13, 0 }
  0x4a   : > { %146 = sbr.rel (%p745_p0) target bundleno = 112 (0x70), region = 28 }
  0x51   : > { %476 = dma.done.wait (%p746_p5), [#allocation3], 512   ;;  %p747_p2 = pmov %p746_p5 }
  0x52   : > { %s674_s19 = sand.u32 1, %s493_s10   ;;  %p748_p4 = scmp.ne.s32.totalorder %s738_s15, 0 }
  0x53   : > { %478 = vsyncadd (%p747_p2), [#allocation3], 4294966784  ;;  %s303_s23 = sshll.u32 %s674_s19, 5  ;;  %s153_s29 = scalar_lea.sflag [#allocation6], %s674_s19 }
  0x54   : > { %s156_s30 = scalar_lea.vmem [#allocation5], %s303_s23 }
  0x55   : > { %480 = dma.done.wait (%p748_p4), %s153_s29, 512  }
  0x56   : > { %482 = vsyncadd (%p748_p4), %s153_s29, 4294966784  ;;  %s176_s17 = scalar_lea.vmem [#allocation7], %s303_s23  ;;  %s311_s5 = sshll.u32 %s546_s13, 9  ;;  %v179_v0 = vld [vmem:[%s156_s30] sm:$0xff]  ;;  %v180_v2 = vld [vmem:[%s156_s30 + $0x8] sm:$0xff] }
  0x57   : > { %s209_s4 = sshll.u32 %s176_s17, 4  ;;  %v183_v1 = vld [vmem:[#allocation2] sm:$0xff]  ;;  %v184_v4 = vld [vmem:[#allocation2 + $0x8] sm:$0xff]  ;;  %v181_v5 = vld [vmem:[%s156_s30 + $0x10] sm:$0xff]  ;;  %s688_s13 = scalar_lea.hbm %s734_s2, %s311_s5  ;;  %s683_s4 = int_to_ptr.vmem [resolvable:$true] %s209_s4 }
  0x58   : > { %v187_v3 = vadd.f32 %v183_v1, %v179_v0  ;;  %v185_v6 = vld [vmem:[#allocation2 + $0x10] sm:$0xff]  ;;  %v188_v7 = vadd.f32 %v184_v4, %v180_v2  ;;  %v182_v9 = vld [vmem:[%s156_s30 + $0x18] sm:$0xff]  ;;  %s196_s22 = scalar_lea.sflag [#allocation4], %s674_s19  ;;  %s431_s28 = scalar_lea.vmem %s683_s4, 512 }
  0x59   : > { %v189_v8 = vadd.f32 %v185_v6, %v181_v5  ;;  %v186_v10 = vld [vmem:[#allocation2 + $0x18] sm:$0xff]  ;;  %p432_p11 = scmp.ne.s32.totalorder %s683_s4, %s431_s28  ;;  %s507_s3 = smov [#allocation7]  }
  0x5a   : > { %191 = vst [vmem:[%s176_s17] sm:$0xff] %v187_v3  ;;  %v190_v11 = vadd.f32 %v186_v10, %v182_v9  ;;  %192 = vst [vmem:[%s176_s17 + $0x8] sm:$0xff] %v188_v7  ;;  %s435_s6 = sshll.u32 %s507_s3, 4  ;;  %s436_s6 = int_to_ptr.vmem [resolvable:$false] %s435_s6 }
  0x5b   : > { %193 = vst [vmem:[%s176_s17 + $0x10] sm:$0xff] %v189_v8  ;;  %p433_p6 = pnand %p432_p11, %p619_p12  ;;  %s437_s7 = scalar_lea.vmem %s436_s6, 1024 }
  0x5c   : > { %194 = vst [vmem:[%s176_s17 + $0x18] sm:$0xff] %v190_v11  ;;  %p438_p10 = scmp.lt.s32.totalorder %s683_s4, %s436_s6  ;;  %p439_p13 = scmp.lt.s32.totalorder %s437_s7, %s431_s28 }
  0x5d   : > { %p434_p8 = pneg %p433_p6 }
  0x5e   : > { %p440_p3 = por %p439_p13, %p438_p10 }
  0x60   : > { %p441_p7 = pnand %p440_p3, %p434_p8 }
  0x62   : > { %444 = shalt.err (!%p441_p7)
}
  0x63   : > { %s445_s20 = scalar_lea.hbm %s688_s13, 512  ;;  %s449_s25 = scalar_lea.hbm %s734_s2, 1024 }
  0x64   : > { %p446_p9 = scmp.ne.s32.totalorder %s688_s13, %s445_s20  ;;  %p450_p5 = scmp.lt.u32.totalorder %s688_s13, %s734_s2 }
  0x65   : > { %p451_p2 = scmp.lt.u32.totalorder %s449_s25, %s445_s20  ;;  %p453_p11 = scmp.lt.u32.totalorder %s445_s20, %s688_s13 }
  0x66   : > { %p447_p1 = pnand %p446_p9, %p619_p12 }
  0x67   : > { %p452_p4 = por %p451_p2, %p450_p5 }
  0x68   : > { %p448_p0 = pneg %p447_p1 }
  0x69   : > { %p454_p6 = por %p453_p11, %p452_p4 }
  0x6b   : > { %p455_p8 = pnand %p454_p6, %p448_p0 }
  0x6d   : > { %458 = shalt.err (!%p455_p8)
}
  0x6e   : > { %s508_s29 = smov 128   ;;  %s509_s30 = smov 8  }
  0x6f   : > { %318 = dma.vmem_to_hbm [thread:$0]  (%p619_p12), %s683_s4, 512, %s688_s13, %s196_s22, %s508_s29, %s508_s29, %s509_s30  }
  0x70 PF: > { %s224_s17 = sand.u32 1, %s489_s9   ;;  %p749_p10 = scmp.ne.s32.totalorder %s739_s16, 0 }
  0x71   : > { %p750_p13 = scmp.ge.s32.totalorder %s501_s12, 2  ;;  %s225_s5 = scalar_lea.sflag [#allocation4], %s224_s17 }
  0x73   : > { %p329_p3 = pnand %p750_p13, %p749_p10 }
  0x75   : > { %484 = dma.done.wait (!%p329_p3), %s225_s5, 512  }
  0x76   : > { %486 = vsyncadd (!%p329_p3), %s225_s5, 4294966784  ;;  %p16_p7 = scmp.ge.s32.totalorder %s581_s21, 4   ;;  %s751_s9 = smov %s493_s10 }
  0x77   : > { %s752_s10 = smov %s497_s11  ;;  %s753_s11 = smov %s615_s8 }
  0x78   : > { %s754_s12 = smov %s581_s21  ;;  %18 = sbr.rel (!%p16_p7) target bundleno = 6 (0x6), region = 78 }
  0x7f   :  { %230 = vsyncpa [#allocation3], 1 }
  0x80   :  { %232 = vsyncpa [#allocation3 + $0x1], 1 }
  0x81   :  { %233 = vsyncpa [#allocation6], 1 }
  0x82   :  { %235 = vsyncpa [#allocation6 + $0x1], 1 }
  0x83   :  { %236 = vsyncpa [#allocation4], 1 }
  0x84   :  { %238 = vsyncpa [#allocation4 + $0x1], 1 }

// kernel: _lambda_.4
= control target key start
LH: loop header
LB: loop body
LE: loop exit
PB: predicated region body
PF: predicated region fallthrough
CT: control target
= control target key end

     0   :  { %vm266_vm0 = vcmask 293888   ;;  %vm363_vm1 = vcmask 1041408   ;;  %s1837_s1 = inlined_call_operand.vmem [shape: bf16[36,128], index: 1, kind: input, shape index: {}]   ;;  %s1838_s0 = inlined_call_operand.vmem [shape: bf16[512,36], index: 0, kind: input, shape index: {}]   ;;  %s1839_s2 = inlined_call_operand.vmem [shape: f32[1,128], index: 2, kind: input, shape index: {}]   ;;  %s1840_s3 = inlined_call_operand.vmem [shape: bf16[512,128], index: 3, kind: output, shape index: {}]  }
   0x1   :  { %v1480_v0 = vld [vmem:[%s1837_s1] sm:$0xff]   ;;  %v1481_v1 = vld [vmem:[%s1837_s1 + $0x8] sm:$0xff]   ;;  %v1482_v2 = vld [vmem:[%s1837_s1 + $0x10] ss:$0 sps:$4 sm:$0x33]  }
   0x2   :  { %1402 = vmatprep.subr.bf16.mxu0 %v1480_v0  ;;  %1472 = vmatprep.subr.bf16.mxu1 %v1480_v0  ;;  %v1483_v3 = vld [vmem:[%s1838_s0] sm:$0xff]   ;;  %v365_v5 = vsel %vm363_vm1, %v1482_v2, 0  ;;  %v1485_v6 = vld [vmem:[%s1838_s0 + $0x8] sm:$0xff]   ;;  %v1487_v8 = vld [vmem:[%s1838_s0 + $0x10] sm:$0xff]  }
   0x3   :  { %1403 = vmatpush3.bf16.msra.mxu0 %v1480_v0  ;;  %1475 = vmatpush3.bf16.msra.mxu1 %v1480_v0  ;;  %v1484_v4 = vld [vmem:[%s1838_s0 + $0x80] sm:$0xff]   ;;  %v1486_v7 = vld [vmem:[%s1838_s0 + $0x88] sm:$0xff]   ;;  %v1488_v9 = vld [vmem:[%s1838_s0 + $0x90] sm:$0xff]  }
   0x4   :  { %1404 = vmatprep.subr.bf16.mxu0 %v1481_v1  ;;  %1473 = vmatprep.subr.bf16.mxu1 %v1481_v1  ;;  %v1489_v10 = vld [vmem:[%s1838_s0 + $0x18] sm:$0xff]   ;;  %v1491_v12 = vld [vmem:[%s1838_s0 + $0x20] sm:$0xff]   ;;  %v1493_v14 = vld [vmem:[%s1838_s0 + $0x28] sm:$0xff]  }
   0x5   :  { %1408 = vmatprep.mubr.msk.bf16.mxu0 %vm266_vm0, %v1483_v3  ;;  %1440 = vmatprep.mubr.msk.bf16.mxu1 %vm266_vm0, %v1484_v4  ;;  %v1490_v11 = vld [vmem:[%s1838_s0 + $0x98] sm:$0xff]   ;;  %v1492_v13 = vld [vmem:[%s1838_s0 + $0xa0] sm:$0xff]   ;;  %v1494_v15 = vld [vmem:[%s1838_s0 + $0xa8] sm:$0xff]  }
   0x6   :  { %v1495_v16 = vld [vmem:[%s1838_s0 + $0x30] sm:$0xff]   ;;  %v1497_v18 = vld [vmem:[%s1838_s0 + $0x38] sm:$0xff]   ;;  %v1499_v20 = vld [vmem:[%s1838_s0 + $0x40] sm:$0xff]  }
   0x7   :  { %1405 = vmatpush3.bf16.msra.mxu0 %v1481_v1  ;;  %1476 = vmatpush3.bf16.msra.mxu1 %v1481_v1  ;;  %v1496_v17 = vld [vmem:[%s1838_s0 + $0xb0] sm:$0xff]   ;;  %v1498_v19 = vld [vmem:[%s1838_s0 + $0xb8] sm:$0xff]   ;;  %v1500_v21 = vld [vmem:[%s1838_s0 + $0xc0] sm:$0xff]  }
   0x8   :  { %1478 = vmatprep.subr.msk.bf16.mxu0 %vm363_vm1, %v1482_v2  ;;  %1479 = vmatprep.subr.msk.bf16.mxu1 %vm363_vm1, %v1482_v2  ;;  %v1501_v22 = vld [vmem:[%s1838_s0 + $0x48] sm:$0xff]   ;;  %v1503_v24 = vld [vmem:[%s1838_s0 + $0x50] sm:$0xff]   ;;  %v1505_v26 = vld [vmem:[%s1838_s0 + $0x58] sm:$0xff]  }
   0x9   :  { %v1502_v23 = vld [vmem:[%s1838_s0 + $0xc8] sm:$0xff]   ;;  %v1504_v25 = vld [vmem:[%s1838_s0 + $0xd0] sm:$0xff]   ;;  %v1506_v27 = vld [vmem:[%s1838_s0 + $0xd8] sm:$0xff]  }
   0xa   :  { %v1507_v28 = vld [vmem:[%s1838_s0 + $0x60] sm:$0xff]   ;;  %v1509_v30 = vld [vmem:[%s1838_s0 + $0x68] sm:$0xff]   ;;  %v1511_v32 = vld [vmem:[%s1838_s0 + $0x70] sm:$0xff]  }
   0xb   :  { %1407 = vmatpush3.bf16.msra.mxu0 %v365_v5  ;;  %1477 = vmatpush3.bf16.msra.mxu1 %v365_v5  ;;  %v1508_v29 = vld [vmem:[%s1838_s0 + $0xe0] sm:$0xff]   ;;  %v1510_v31 = vld [vmem:[%s1838_s0 + $0xe8] sm:$0xff]   ;;  %v1512_v33 = vld [vmem:[%s1838_s0 + $0xf0] sm:$0xff]  }
   0xc   :  { %v1513_v34 = vld [vmem:[%s1838_s0 + $0x78] sm:$0xff]   ;;  %v1675_v37 = vld [vmem:[%s1839_s2] ss:$0 sm:$0xff] }
   0xd   :  { %v1514_v35 = vld [vmem:[%s1838_s0 + $0xf8] sm:$0xff]  }
   0xe   :  { %1409 = vmatmul.mubr.msk.bf16.vlgmr.msra.gmra.mrb[0].mxu0 %vm266_vm0, %v1485_v6  ;;  %1441 = vmatmul.mubr.msk.bf16.vlgmr.msra.gmra.mrb[0].mxu1 %vm266_vm0, %v1486_v7 }
   0xf   :  { %1412 = vmatprep.mubr.msk.bf16.mxu0 %vm266_vm0, %v1487_v8  ;;  %1444 = vmatprep.mubr.msk.bf16.mxu1 %vm266_vm0, %v1488_v9 }
  0x16   :  { %1413 = vmatmul.mubr.msk.bf16.gmra.mrb[4].mxu0 %vm266_vm0, %v1489_v10  ;;  %1445 = vmatmul.mubr.msk.bf16.gmra.mrb[4].mxu1 %vm266_vm0, %v1490_v11 }
  0x17   :  { %1416 = vmatprep.mubr.msk.bf16.mxu0 %vm266_vm0, %v1491_v12  ;;  %1448 = vmatprep.mubr.msk.bf16.mxu1 %vm266_vm0, %v1492_v13 }
  0x1e   :  { %1417 = vmatmul.mubr.msk.bf16.gmra.mrb[8].mxu0 %vm266_vm0, %v1493_v14  ;;  %1449 = vmatmul.mubr.msk.bf16.gmra.mrb[8].mxu1 %vm266_vm0, %v1494_v15 }
  0x1f   :  { %1420 = vmatprep.mubr.msk.bf16.mxu0 %vm266_vm0, %v1495_v16  ;;  %1452 = vmatprep.mubr.msk.bf16.mxu1 %vm266_vm0, %v1496_v17 }
  0x26   :  { %1421 = vmatmul.mubr.msk.bf16.gmra.mrb[12].mxu0 %vm266_vm0, %v1497_v18  ;;  %1453 = vmatmul.mubr.msk.bf16.gmra.mrb[12].mxu1 %vm266_vm0, %v1498_v19 }
  0x27   :  { %1424 = vmatprep.mubr.msk.bf16.mxu0 %vm266_vm0, %v1499_v20  ;;  %1456 = vmatprep.mubr.msk.bf16.mxu1 %vm266_vm0, %v1500_v21 }
  0x2e   :  { %1425 = vmatmul.mubr.msk.bf16.gmra.mrb[16].mxu0 %vm266_vm0, %v1501_v22  ;;  %1457 = vmatmul.mubr.msk.bf16.gmra.mrb[16].mxu1 %vm266_vm0, %v1502_v23 }
  0x2f   :  { %1428 = vmatprep.mubr.msk.bf16.mxu0 %vm266_vm0, %v1503_v24  ;;  %1460 = vmatprep.mubr.msk.bf16.mxu1 %vm266_vm0, %v1504_v25 }
  0x36   :  { %1429 = vmatmul.mubr.msk.bf16.gmra.mrb[20].mxu0 %vm266_vm0, %v1505_v26  ;;  %1461 = vmatmul.mubr.msk.bf16.gmra.mrb[20].mxu1 %vm266_vm0, %v1506_v27 }
  0x37   :  { %1432 = vmatprep.mubr.msk.bf16.mxu0 %vm266_vm0, %v1507_v28  ;;  %1464 = vmatprep.mubr.msk.bf16.mxu1 %vm266_vm0, %v1508_v29 }
  0x3e   :  { %1433 = vmatmul.mubr.msk.bf16.gmra.mrb[24].mxu0 %vm266_vm0, %v1509_v30  ;;  %1465 = vmatmul.mubr.msk.bf16.gmra.mrb[24].mxu1 %vm266_vm0, %v1510_v31 }
  0x3f   :  { %1436 = vmatprep.mubr.msk.bf16.mxu0 %vm266_vm0, %v1511_v32  ;;  %1468 = vmatprep.mubr.msk.bf16.mxu1 %vm266_vm0, %v1512_v33 }
  0x46   :  { %1437 = vmatmul.mubr.msk.bf16.gmra.mrb[28].mxu0 %vm266_vm0, %v1513_v34  ;;  %1469 = vmatmul.mubr.msk.bf16.gmra.mrb[28].mxu1 %vm266_vm0, %v1514_v35 }
  0xe1   :  { %v1410_v36 = vpop.f32.mrb[0].mxu0  ;;  %v1442_v38 = vpop.f32.mrb[0].mxu1 }
  0xe2   :  { %v401_v39 = vpop.f32.mrb[1].mxu0  ;;  %v529_v40 = vpop.f32.mrb[1].mxu1  ;;  %v410_v43 = vadd.f32 %v1410_v36, %v1675_v37  ;;  %v538_v44 = vadd.f32 %v1442_v38, %v1675_v37 }
  0xe3   :  { %v1411_v41 = vpop.f32.mrb[2].mxu0  ;;  %v1443_v42 = vpop.f32.mrb[2].mxu1  ;;  %v402_v49 = vadd.f32 %v1675_v37, %v401_v39  ;;  %v530_v50 = vadd.f32 %v1675_v37, %v529_v40 }
  0xe4   :  { %v413_v45 = vadd.f32 %v1411_v41, %v1675_v37  ;;  %v541_v46 = vadd.f32 %v1443_v42, %v1675_v37  ;;  %v404_v47 = vpop.f32.mrb[3].mxu0  ;;  %v532_v48 = vpop.f32.mrb[3].mxu1 }
  0xe5   :  { %v405_v51 = vadd.f32 %v1675_v37, %v404_v47  ;;  %v533_v52 = vadd.f32 %v1675_v37, %v532_v48 }
  0xe6   :  { %v1184_v53 = vpack.c.bf16 %v413_v45, %v410_v43  ;;  %v1264_v54 = vpack.c.bf16 %v541_v46, %v538_v44 }
  0xe7   :  { %v1179_v55 = vpack.c.bf16 %v405_v51, %v402_v49  ;;  %v1259_v56 = vpack.c.bf16 %v533_v52, %v530_v50 }
  0xe8   :  { %1336 = vst [vmem:[%s1840_s3 + $0x8] sm:$0xff] %v1184_v53   ;;  %1352 = vst [vmem:[%s1840_s3 + $0x88] sm:$0xff] %v1264_v54  }
  0xe9   :  { %1180 = vst [vmem:[%s1840_s3] sm:$0xff] %v1179_v55   ;;  %1351 = vst [vmem:[%s1840_s3 + $0x80] sm:$0xff] %v1259_v56   ;;  %v1414_v57 = vpop.f32.mrb[4].mxu0  ;;  %v1446_v58 = vpop.f32.mrb[4].mxu1 }
  0xea   :  { %v417_v59 = vpop.f32.mrb[5].mxu0  ;;  %v545_v60 = vpop.f32.mrb[5].mxu1  ;;  %v426_v63 = vadd.f32 %v1414_v57, %v1675_v37  ;;  %v554_v0 = vadd.f32 %v1446_v58, %v1675_v37 }
  0xeb   :  { %v1415_v61 = vpop.f32.mrb[6].mxu0  ;;  %v1447_v62 = vpop.f32.mrb[6].mxu1  ;;  %v418_v5 = vadd.f32 %v1675_v37, %v417_v59  ;;  %v546_v6 = vadd.f32 %v1675_v37, %v545_v60 }
  0xec   :  { %v429_v1 = vadd.f32 %v1415_v61, %v1675_v37  ;;  %v557_v2 = vadd.f32 %v1447_v62, %v1675_v37  ;;  %v420_v3 = vpop.f32.mrb[7].mxu0  ;;  %v548_v4 = vpop.f32.mrb[7].mxu1 }
  0xed   :  { %v421_v7 = vadd.f32 %v1675_v37, %v420_v3  ;;  %v549_v8 = vadd.f32 %v1675_v37, %v548_v4 }
  0xee   :  { %v1194_v9 = vpack.c.bf16 %v429_v1, %v426_v63  ;;  %v1274_v10 = vpack.c.bf16 %v557_v2, %v554_v0 }
  0xef   :  { %v1189_v11 = vpack.c.bf16 %v421_v7, %v418_v5  ;;  %v1269_v12 = vpack.c.bf16 %v549_v8, %v546_v6 }
  0xf0   :  { %1338 = vst [vmem:[%s1840_s3 + $0x18] sm:$0xff] %v1194_v9   ;;  %1354 = vst [vmem:[%s1840_s3 + $0x98] sm:$0xff] %v1274_v10  }
  0xf1   :  { %1337 = vst [vmem:[%s1840_s3 + $0x10] sm:$0xff] %v1189_v11   ;;  %1353 = vst [vmem:[%s1840_s3 + $0x90] sm:$0xff] %v1269_v12   ;;  %v1418_v13 = vpop.f32.mrb[8].mxu0  ;;  %v1450_v14 = vpop.f32.mrb[8].mxu1 }
  0xf2   :  { %v433_v15 = vpop.f32.mrb[9].mxu0  ;;  %v561_v16 = vpop.f32.mrb[9].mxu1  ;;  %v442_v19 = vadd.f32 %v1418_v13, %v1675_v37  ;;  %v570_v20 = vadd.f32 %v1450_v14, %v1675_v37 }
  0xf3   :  { %v1419_v17 = vpop.f32.mrb[10].mxu0  ;;  %v1451_v18 = vpop.f32.mrb[10].mxu1  ;;  %v434_v25 = vadd.f32 %v1675_v37, %v433_v15  ;;  %v562_v26 = vadd.f32 %v1675_v37, %v561_v16 }
  0xf4   :  { %v445_v21 = vadd.f32 %v1419_v17, %v1675_v37  ;;  %v573_v22 = vadd.f32 %v1451_v18, %v1675_v37  ;;  %v436_v23 = vpop.f32.mrb[11].mxu0  ;;  %v564_v24 = vpop.f32.mrb[11].mxu1 }
  0xf5   :  { %v437_v27 = vadd.f32 %v1675_v37, %v436_v23  ;;  %v565_v28 = vadd.f32 %v1675_v37, %v564_v24 }
  0xf6   :  { %v1204_v29 = vpack.c.bf16 %v445_v21, %v442_v19  ;;  %v1284_v30 = vpack.c.bf16 %v573_v22, %v570_v20 }
  0xf7   :  { %v1199_v31 = vpack.c.bf16 %v437_v27, %v434_v25  ;;  %v1279_v32 = vpack.c.bf16 %v565_v28, %v562_v26 }
  0xf8   :  { %1340 = vst [vmem:[%s1840_s3 + $0x28] sm:$0xff] %v1204_v29   ;;  %1356 = vst [vmem:[%s1840_s3 + $0xa8] sm:$0xff] %v1284_v30  }
  0xf9   :  { %1339 = vst [vmem:[%s1840_s3 + $0x20] sm:$0xff] %v1199_v31   ;;  %1355 = vst [vmem:[%s1840_s3 + $0xa0] sm:$0xff] %v1279_v32   ;;  %v1422_v33 = vpop.f32.mrb[12].mxu0  ;;  %v1454_v34 = vpop.f32.mrb[12].mxu1 }
  0xfa   :  { %v449_v35 = vpop.f32.mrb[13].mxu0  ;;  %v577_v36 = vpop.f32.mrb[13].mxu1  ;;  %v458_v40 = vadd.f32 %v1422_v33, %v1675_v37  ;;  %v586_v41 = vadd.f32 %v1454_v34, %v1675_v37 }
  0xfb   :  { %v1423_v38 = vpop.f32.mrb[14].mxu0  ;;  %v1455_v39 = vpop.f32.mrb[14].mxu1  ;;  %v450_v46 = vadd.f32 %v1675_v37, %v449_v35  ;;  %v578_v47 = vadd.f32 %v1675_v37, %v577_v36 }
  0xfc   :  { %v461_v42 = vadd.f32 %v1423_v38, %v1675_v37  ;;  %v589_v43 = vadd.f32 %v1455_v39, %v1675_v37  ;;  %v452_v44 = vpop.f32.mrb[15].mxu0  ;;  %v580_v45 = vpop.f32.mrb[15].mxu1 }
  0xfd   :  { %v453_v48 = vadd.f32 %v1675_v37, %v452_v44  ;;  %v581_v49 = vadd.f32 %v1675_v37, %v580_v45 }
  0xfe   :  { %v1214_v50 = vpack.c.bf16 %v461_v42, %v458_v40  ;;  %v1294_v51 = vpack.c.bf16 %v589_v43, %v586_v41 }
  0xff   :  { %v1209_v52 = vpack.c.bf16 %v453_v48, %v450_v46  ;;  %v1289_v53 = vpack.c.bf16 %v581_v49, %v578_v47 }
 0x100   :  { %1342 = vst [vmem:[%s1840_s3 + $0x38] sm:$0xff] %v1214_v50   ;;  %1358 = vst [vmem:[%s1840_s3 + $0xb8] sm:$0xff] %v1294_v51  }
 0x101   :  { %1341 = vst [vmem:[%s1840_s3 + $0x30] sm:$0xff] %v1209_v52   ;;  %1357 = vst [vmem:[%s1840_s3 + $0xb0] sm:$0xff] %v1289_v53   ;;  %v1426_v54 = vpop.f32.mrb[16].mxu0  ;;  %v1458_v55 = vpop.f32.mrb[16].mxu1 }
 0x102   :  { %v465_v56 = vpop.f32.mrb[17].mxu0  ;;  %v593_v57 = vpop.f32.mrb[17].mxu1  ;;  %v474_v60 = vadd.f32 %v1426_v54, %v1675_v37  ;;  %v602_v61 = vadd.f32 %v1458_v55, %v1675_v37 }
 0x103   :  { %v1427_v58 = vpop.f32.mrb[18].mxu0  ;;  %v1459_v59 = vpop.f32.mrb[18].mxu1  ;;  %v466_v2 = vadd.f32 %v1675_v37, %v465_v56  ;;  %v594_v3 = vadd.f32 %v1675_v37, %v593_v57 }
 0x104   :  { %v477_v62 = vadd.f32 %v1427_v58, %v1675_v37  ;;  %v605_v63 = vadd.f32 %v1459_v59, %v1675_v37  ;;  %v468_v0 = vpop.f32.mrb[19].mxu0  ;;  %v596_v1 = vpop.f32.mrb[19].mxu1 }
 0x105   :  { %v469_v4 = vadd.f32 %v1675_v37, %v468_v0  ;;  %v597_v5 = vadd.f32 %v1675_v37, %v596_v1 }
 0x106   :  { %v1224_v6 = vpack.c.bf16 %v477_v62, %v474_v60  ;;  %v1304_v7 = vpack.c.bf16 %v605_v63, %v602_v61 }
 0x107   :  { %v1219_v8 = vpack.c.bf16 %v469_v4, %v466_v2  ;;  %v1299_v9 = vpack.c.bf16 %v597_v5, %v594_v3 }
 0x108   :  { %1344 = vst [vmem:[%s1840_s3 + $0x48] sm:$0xff] %v1224_v6   ;;  %1360 = vst [vmem:[%s1840_s3 + $0xc8] sm:$0xff] %v1304_v7  }
 0x109   :  { %1343 = vst [vmem:[%s1840_s3 + $0x40] sm:$0xff] %v1219_v8   ;;  %1359 = vst [vmem:[%s1840_s3 + $0xc0] sm:$0xff] %v1299_v9   ;;  %v1430_v10 = vpop.f32.mrb[20].mxu0  ;;  %v1462_v11 = vpop.f32.mrb[20].mxu1 }
 0x10a   :  { %v481_v12 = vpop.f32.mrb[21].mxu0  ;;  %v609_v13 = vpop.f32.mrb[21].mxu1  ;;  %v490_v16 = vadd.f32 %v1430_v10, %v1675_v37  ;;  %v618_v17 = vadd.f32 %v1462_v11, %v1675_v37 }
 0x10b   :  { %v1431_v14 = vpop.f32.mrb[22].mxu0  ;;  %v1463_v15 = vpop.f32.mrb[22].mxu1  ;;  %v482_v22 = vadd.f32 %v1675_v37, %v481_v12  ;;  %v610_v23 = vadd.f32 %v1675_v37, %v609_v13 }
 0x10c   :  { %v493_v18 = vadd.f32 %v1431_v14, %v1675_v37  ;;  %v621_v19 = vadd.f32 %v1463_v15, %v1675_v37  ;;  %v484_v20 = vpop.f32.mrb[23].mxu0  ;;  %v612_v21 = vpop.f32.mrb[23].mxu1 }
 0x10d   :  { %v485_v24 = vadd.f32 %v1675_v37, %v484_v20  ;;  %v613_v25 = vadd.f32 %v1675_v37, %v612_v21 }
 0x10e   :  { %v1234_v26 = vpack.c.bf16 %v493_v18, %v490_v16  ;;  %v1314_v27 = vpack.c.bf16 %v621_v19, %v618_v17 }
 0x10f   :  { %v1229_v28 = vpack.c.bf16 %v485_v24, %v482_v22  ;;  %v1309_v29 = vpack.c.bf16 %v613_v25, %v610_v23 }
 0x110   :  { %1346 = vst [vmem:[%s1840_s3 + $0x58] sm:$0xff] %v1234_v26   ;;  %1362 = vst [vmem:[%s1840_s3 + $0xd8] sm:$0xff] %v1314_v27  }
 0x111   :  { %1345 = vst [vmem:[%s1840_s3 + $0x50] sm:$0xff] %v1229_v28   ;;  %1361 = vst [vmem:[%s1840_s3 + $0xd0] sm:$0xff] %v1309_v29   ;;  %v1434_v30 = vpop.f32.mrb[24].mxu0  ;;  %v1466_v31 = vpop.f32.mrb[24].mxu1 }
 0x112   :  { %v497_v32 = vpop.f32.mrb[25].mxu0  ;;  %v625_v33 = vpop.f32.mrb[25].mxu1  ;;  %v506_v36 = vadd.f32 %v1434_v30, %v1675_v37  ;;  %v634_v38 = vadd.f32 %v1466_v31, %v1675_v37 }
 0x113   :  { %v1435_v34 = vpop.f32.mrb[26].mxu0  ;;  %v1467_v35 = vpop.f32.mrb[26].mxu1  ;;  %v498_v43 = vadd.f32 %v1675_v37, %v497_v32  ;;  %v626_v44 = vadd.f32 %v1675_v37, %v625_v33 }
 0x114   :  { %v509_v39 = vadd.f32 %v1435_v34, %v1675_v37  ;;  %v637_v40 = vadd.f32 %v1467_v35, %v1675_v37  ;;  %v500_v41 = vpop.f32.mrb[27].mxu0  ;;  %v628_v42 = vpop.f32.mrb[27].mxu1 }
 0x115   :  { %v501_v45 = vadd.f32 %v1675_v37, %v500_v41  ;;  %v629_v46 = vadd.f32 %v1675_v37, %v628_v42 }
 0x116   :  { %v1244_v47 = vpack.c.bf16 %v509_v39, %v506_v36  ;;  %v1324_v48 = vpack.c.bf16 %v637_v40, %v634_v38 }
 0x117   :  { %v1239_v49 = vpack.c.bf16 %v501_v45, %v498_v43  ;;  %v1319_v50 = vpack.c.bf16 %v629_v46, %v626_v44 }
 0x118   :  { %1348 = vst [vmem:[%s1840_s3 + $0x68] sm:$0xff] %v1244_v47   ;;  %1364 = vst [vmem:[%s1840_s3 + $0xe8] sm:$0xff] %v1324_v48  }
 0x119   :  { %1347 = vst [vmem:[%s1840_s3 + $0x60] sm:$0xff] %v1239_v49   ;;  %1363 = vst [vmem:[%s1840_s3 + $0xe0] sm:$0xff] %v1319_v50   ;;  %v1438_v51 = vpop.f32.mrb[28].mxu0  ;;  %v1470_v52 = vpop.f32.mrb[28].mxu1 }
 0x11a   :  { %v513_v53 = vpop.f32.mrb[29].mxu0  ;;  %v641_v54 = vpop.f32.mrb[29].mxu1  ;;  %v522_v57 = vadd.f32 %v1438_v51, %v1675_v37  ;;  %v650_v58 = vadd.f32 %v1470_v52, %v1675_v37 }
 0x11b   :  { %v1439_v55 = vpop.f32.mrb[30].mxu0  ;;  %v1471_v56 = vpop.f32.mrb[30].mxu1  ;;  %v514_v63 = vadd.f32 %v1675_v37, %v513_v53  ;;  %v642_v0 = vadd.f32 %v1675_v37, %v641_v54 }
 0x11c   :  { %v525_v59 = vadd.f32 %v1439_v55, %v1675_v37  ;;  %v653_v60 = vadd.f32 %v1471_v56, %v1675_v37  ;;  %v516_v61 = vpop.f32.mrb[31].mxu0  ;;  %v644_v62 = vpop.f32.mrb[31].mxu1 }
 0x11d   :  { %v517_v1 = vadd.f32 %v1675_v37, %v516_v61  ;;  %v645_v2 = vadd.f32 %v1675_v37, %v644_v62 }
 0x11e   :  { %v1254_v3 = vpack.c.bf16 %v525_v59, %v522_v57  ;;  %v1334_v4 = vpack.c.bf16 %v653_v60, %v650_v58 }
 0x11f   :  { %v1249_v5 = vpack.c.bf16 %v517_v1, %v514_v63  ;;  %v1329_v6 = vpack.c.bf16 %v645_v2, %v642_v0 }
 0x120   :  { %1350 = vst [vmem:[%s1840_s3 + $0x78] sm:$0xff] %v1254_v3   ;;  %1366 = vst [vmem:[%s1840_s3 + $0xf8] sm:$0xff] %v1334_v4  }
 0x121   :  { %1349 = vst [vmem:[%s1840_s3 + $0x70] sm:$0xff] %v1249_v5   ;;  %1365 = vst [vmem:[%s1840_s3 + $0xf0] sm:$0xff] %v1329_v6  }

// kernel: reverse.0
= control target key start
LH: loop header
LB: loop body
LE: loop exit
PB: predicated region body
PF: predicated region fallthrough
CT: control target
= control target key end

     0   :  { %v71_v3 = vlaneseq  ;;  %v64_v9 = vld [vmem:[#allocation0 + $0x7] ss:$-1 sm:$0xff]  ;;  %v78_v12 = vld [vmem:[#allocation0 + $0x17] ss:$-1 sm:$0xff]  ;;  %s329_s0 = inlined_call_operand.vmem [shape: f32[2,4,16,7], index: 0, kind: input, shape index: {}]   ;;  %s330_s1 = inlined_call_operand.vmem [shape: f32[2,4,16,7], index: 1, kind: output, shape index: {}]  }
   0x1   :  { %v44_v0 = vld [vmem:[%s329_s0] sm:$0xff]  ;;  %v46_v1 = vld [vmem:[%s329_s0 + $0x8] sm:$0xff]  ;;  %v48_v2 = vld [vmem:[%s329_s0 + $0x10] sm:$0xff]  ;;  %v65_v10 = vrot.slane %v64_v9, 1  ;;  %v79_v14 = vrot.slane %v78_v12, 1 }
   0x2   :  { %45 = vst [vmem:[#allocation0 + $0x8] sm:$0xff] %v44_v0  ;;  %47 = vst [vmem:[#allocation0 + $0x18] sm:$0xff] %v46_v1  ;;  %v50_v4 = vld [vmem:[%s329_s0 + $0x18] sm:$0xff]  ;;  %v52_v5 = vld [vmem:[%s329_s0 + $0x20] sm:$0xff]  ;;  %v72_v11 = vshrl.u32 %v71_v3, 7 }
   0x3   :  { %49 = vst [vmem:[#allocation0 + $0x28] sm:$0xff] %v48_v2  ;;  %v54_v6 = vld [vmem:[%s329_s0 + $0x28] sm:$0xff]  ;;  %51 = vst [vmem:[#allocation0 + $0x38] sm:$0xff] %v50_v4  ;;  %v56_v7 = vld [vmem:[%s329_s0 + $0x30] sm:$0xff] }
   0x4   :  { %53 = vst [vmem:[#allocation0 + $0x48] sm:$0xff] %v52_v5  ;;  %55 = vst [vmem:[#allocation0 + $0x58] sm:$0xff] %v54_v6  ;;  %v58_v8 = vld [vmem:[%s329_s0 + $0x38] sm:$0xff]  ;;  %v92_v13 = vld [vmem:[#allocation0 + $0x27] ss:$-1 sm:$0xff]  ;;  %vm73_vm0 = vcmp.lt.s32.totalorder %v72_v11, 7 }
   0x5   :  { %57 = vst [vmem:[#allocation0 + $0x68] sm:$0xff] %v56_v7  ;;  %59 = vst [vmem:[#allocation0 + $0x78] sm:$0xff] %v58_v8  ;;  %v93_v15 = vrot.slane %v92_v13, 1  ;;  %v106_v16 = vld [vmem:[#allocation0 + $0x37] ss:$-1 sm:$0xff] }
   0x6   :  { %66 = vst [vmem:[#allocation1] sm:$0xff] %v65_v10  ;;  %v107_v17 = vrot.slane %v106_v16, 1  ;;  %v120_v18 = vld [vmem:[#allocation0 + $0x47] ss:$-1 sm:$0xff]  ;;  %v134_v19 = vld [vmem:[#allocation0 + $0x57] ss:$-1 sm:$0xff] }
   0x7   :  { %80 = vst [vmem:[#allocation1 + $0x8] sm:$0xff] %v79_v14  ;;  %94 = vst [vmem:[#allocation1 + $0x10] sm:$0xff] %v93_v15  ;;  %v121_v20 = vrot.slane %v120_v18, 1  ;;  %v135_v21 = vrot.slane %v134_v19, 1  ;;  %v148_v22 = vld [vmem:[#allocation0 + $0x67] ss:$-1 sm:$0xff] }
   0x8   :  { %v162_v23 = vld [vmem:[#allocation0 + $0x77] ss:$-1 sm:$0xff]  ;;  %108 = vst [vmem:[#allocation1 + $0x18] sm:$0xff] %v107_v17  ;;  %v149_v24 = vrot.slane %v148_v22, 1 }
   0x9   :  { %v163_v25 = vrot.slane %v162_v23, 1  ;;  %v69_v26 = vld [vmem:[#allocation0 + $0xf] ss:$-1 sm:$0xff]  ;;  %v83_v27 = vld [vmem:[#allocation0 + $0x1f] ss:$-1 sm:$0xff]  ;;  %122 = vst [vmem:[#allocation1 + $0x20] sm:$0xff] %v121_v20 }
   0xa   :  { %v97_v28 = vld [vmem:[#allocation0 + $0x2f] ss:$-1 sm:$0xff]  ;;  %136 = vst [vmem:[#allocation1 + $0x28] sm:$0xff] %v135_v21  ;;  %v70_v29 = vrot.slane %v69_v26, 1  ;;  %v84_v30 = vrot.slane %v83_v27, 1  ;;  %150 = vst [vmem:[#allocation1 + $0x30] sm:$0xff] %v149_v24 }
   0xb   :  { %v98_v31 = vrot.slane %v97_v28, 1  ;;  %v111_v32 = vld [vmem:[#allocation0 + $0x3f] ss:$-1 sm:$0xff]  ;;  %164 = vst [vmem:[#allocation1 + $0x38] sm:$0xff] %v163_v25  ;;  %v125_v34 = vld [vmem:[#allocation0 + $0x4f] ss:$-1 sm:$0xff] }
   0xc   :  { %v112_v33 = vrot.slane %v111_v32, 1  ;;  %v139_v35 = vld [vmem:[#allocation0 + $0x5f] ss:$-1 sm:$0xff]  ;;  %74 = vst.msk [vmem:[#allocation1] sm:$0xff] %vm73_vm0, %v70_v29  ;;  %88 = vst.msk [vmem:[#allocation1 + $0x8] sm:$0xff] %vm73_vm0, %v84_v30  ;;  %v126_v36 = vrot.slane %v125_v34, 1 }
   0xd   :  { %102 = vst.msk [vmem:[#allocation1 + $0x10] sm:$0xff] %vm73_vm0, %v98_v31  ;;  %v140_v37 = vrot.slane %v139_v35, 1  ;;  %v153_v38 = vld [vmem:[#allocation0 + $0x6f] ss:$-1 sm:$0xff]  ;;  %v167_v39 = vld [vmem:[#allocation0 + $0x7f] ss:$-1 sm:$0xff] }
   0xe   :  { %116 = vst.msk [vmem:[#allocation1 + $0x18] sm:$0xff] %vm73_vm0, %v112_v33  ;;  %v154_v40 = vrot.slane %v153_v38, 1  ;;  %v168_v41 = vrot.slane %v167_v39, 1  ;;  %130 = vst.msk [vmem:[#allocation1 + $0x20] sm:$0xff] %vm73_vm0, %v126_v36 }
   0xf   :  { %144 = vst.msk [vmem:[#allocation1 + $0x28] sm:$0xff] %vm73_vm0, %v140_v37 }
  0x10   :  { %158 = vst.msk [vmem:[#allocation1 + $0x30] sm:$0xff] %vm73_vm0, %v154_v40  ;;  %172 = vst.msk [vmem:[#allocation1 + $0x38] sm:$0xff] %vm73_vm0, %v168_v41 }
  0x13   :  { %v214_v42 = vld [vmem:[#allocation1] sm:$0xff]  ;;  %v216_v43 = vld [vmem:[#allocation1 + $0x8] sm:$0xff] }
  0x14   :  { %v218_v44 = vld [vmem:[#allocation1 + $0x10] sm:$0xff]  ;;  %215 = vst [vmem:[%s330_s1] sm:$0xff] %v214_v42  ;;  %217 = vst [vmem:[%s330_s1 + $0x8] sm:$0xff] %v216_v43 }
  0x15   :  { %219 = vst [vmem:[%s330_s1 + $0x10] sm:$0xff] %v218_v44  ;;  %v220_v45 = vld [vmem:[#allocation1 + $0x18] sm:$0xff]  ;;  %v222_v46 = vld [vmem:[#allocation1 + $0x20] sm:$0xff] }
  0x16   :  { %221 = vst [vmem:[%s330_s1 + $0x18] sm:$0xff] %v220_v45  ;;  %v224_v47 = vld [vmem:[#allocation1 + $0x28] sm:$0xff]  ;;  %223 = vst [vmem:[%s330_s1 + $0x20] sm:$0xff] %v222_v46 }
  0x17   :  { %225 = vst [vmem:[%s330_s1 + $0x28] sm:$0xff] %v224_v47  ;;  %v226_v48 = vld [vmem:[#allocation1 + $0x30] sm:$0xff]  ;;  %v228_v49 = vld [vmem:[#allocation1 + $0x38] sm:$0xff] }
  0x18   :  { %227 = vst [vmem:[%s330_s1 + $0x30] sm:$0xff] %v226_v48  ;;  %229 = vst [vmem:[%s330_s1 + $0x38] sm:$0xff] %v228_v49 }

// kernel: _lambda_.5
= control target key start
LH: loop header
LB: loop body
LE: loop exit
PB: predicated region body
PF: predicated region fallthrough
CT: control target
= control target key end

     0   :  { %vm240_vm0 = vcmask 1041408   ;;  %vm185_vm1 = vcmask 31744   ;;  %s1723_s3 = inlined_call_operand.vmem [shape: bf16[4,128], index: 3, kind: input, shape index: {}]   ;;  %s1724_s1 = inlined_call_operand.vmem [shape: bf16[4,128], index: 1, kind: input, shape index: {}]   ;;  %s1725_s2 = inlined_call_operand.vmem [shape: bf16[288,4], index: 2, kind: input, shape index: {}]   ;;  %s1726_s0 = inlined_call_operand.vmem [shape: bf16[288,4], index: 0, kind: input, shape index: {}]   ;;  %s1727_s4 = inlined_call_operand.vmem [shape: f32[1,128], index: 4, kind: input, shape index: {}]   ;;  %s1728_s5 = inlined_call_operand.vmem [shape: bf16[288,128], index: 5, kind: output, shape index: {}]  }
   0x1   :  { %v94_v0 = vld [vmem:[%s1723_s3] sm:$0x3]  ;;  %v1414_v6 = vld [vmem:[%s1725_s2 + $0x8] sm:$0xff]   ;;  %v1416_v8 = vld [vmem:[%s1725_s2 + $0x10] sm:$0xff]  }
   0x2   :  { %v57_v1 = vld [vmem:[%s1724_s1] sm:$0x3]  ;;  %1410 = vmatprep.subr.msk.bf16.mxu1 %vm240_vm0, %v94_v0  ;;  %v242_v2 = vsel %vm240_vm0, %v94_v0, 0  ;;  %v1415_v7 = vld [vmem:[%s1726_s0 + $0x8] sm:$0xff]   ;;  %v1417_v9 = vld [vmem:[%s1726_s0 + $0x10] sm:$0xff]  }
   0x3   :  { %1411 = vmatprep.subr.msk.bf16.mxu0 %vm240_vm0, %v57_v1  ;;  %v566_v3 = vsel %vm240_vm0, %v57_v1, 0  ;;  %v1412_v4 = vld [vmem:[%s1725_s2] sm:$0xff]   ;;  %1299 = vmatpush3.bf16.msra.mxu1 %v242_v2  ;;  %v1418_v10 = vld [vmem:[%s1725_s2 + $0x18] sm:$0xff]   ;;  %v1422_v14 = vld [vmem:[%s1725_s2 + $0x28] sm:$0xff]  }
   0x4   :  { %v1413_v5 = vld [vmem:[%s1726_s0] sm:$0xff]   ;;  %1337 = vmatpush3.bf16.msra.mxu0 %v566_v3  ;;  %1300 = vmatprep.mubr.msk.bf16.mxu1 %vm185_vm1, %v1412_v4  ;;  %v1419_v11 = vld [vmem:[%s1726_s0 + $0x18] sm:$0xff]   ;;  %v1423_v15 = vld [vmem:[%s1726_s0 + $0x28] sm:$0xff]  }
   0x5   :  { %1338 = vmatprep.mubr.msk.bf16.mxu0 %vm185_vm1, %v1413_v5  ;;  %v1420_v12 = vld [vmem:[%s1725_s2 + $0x20] sm:$0xff]   ;;  %v1424_v16 = vld [vmem:[%s1725_s2 + $0x30] sm:$0xff]   ;;  %v1426_v18 = vld [vmem:[%s1725_s2 + $0x38] sm:$0xff]  }
   0x6   :  { %1301 = vmatmul.mubr.msk.bf16.vlgmr.msra.gmra.mrb[0].mxu1 %vm185_vm1, %v1414_v6  ;;  %v1421_v13 = vld [vmem:[%s1726_s0 + $0x20] sm:$0xff]   ;;  %v1425_v17 = vld [vmem:[%s1726_s0 + $0x30] sm:$0xff]   ;;  %v1427_v19 = vld [vmem:[%s1726_s0 + $0x38] sm:$0xff]  }
   0x7   :  { %1339 = vmatmul.mubr.msk.bf16.vlgmr.msra.gmra.mrb[0].mxu0 %vm185_vm1, %v1415_v7  ;;  %1304 = vmatprep.mubr.msk.bf16.mxu1 %vm185_vm1, %v1416_v8  ;;  %v1428_v20 = vld [vmem:[%s1725_s2 + $0x40] sm:$0xff]   ;;  %v1430_v22 = vld [vmem:[%s1725_s2 + $0x48] sm:$0xff]   ;;  %v1432_v24 = vld [vmem:[%s1725_s2 + $0x50] sm:$0xff]  }
   0x8   :  { %1342 = vmatprep.mubr.msk.bf16.mxu0 %vm185_vm1, %v1417_v9  ;;  %v1429_v21 = vld [vmem:[%s1726_s0 + $0x40] sm:$0xff]   ;;  %v1431_v23 = vld [vmem:[%s1726_s0 + $0x48] sm:$0xff]   ;;  %v1433_v25 = vld [vmem:[%s1726_s0 + $0x50] sm:$0xff]  }
   0x9   :  { %v1434_v26 = vld [vmem:[%s1725_s2 + $0x58] sm:$0xff]   ;;  %v1436_v28 = vld [vmem:[%s1725_s2 + $0x60] sm:$0xff]   ;;  %v1438_v30 = vld [vmem:[%s1725_s2 + $0x68] sm:$0xff]  }
   0xa   :  { %v1435_v27 = vld [vmem:[%s1726_s0 + $0x58] sm:$0xff]   ;;  %v1437_v29 = vld [vmem:[%s1726_s0 + $0x60] sm:$0xff]   ;;  %v1439_v31 = vld [vmem:[%s1726_s0 + $0x68] sm:$0xff]  }
   0xb   :  { %v1440_v32 = vld [vmem:[%s1725_s2 + $0x70] sm:$0xff]   ;;  %v1442_v34 = vld [vmem:[%s1725_s2 + $0x78] sm:$0xff]   ;;  %v1444_v36 = vld [vmem:[%s1725_s2 + $0x80] sm:$0xff]  }
   0xc   :  { %v1441_v33 = vld [vmem:[%s1726_s0 + $0x70] sm:$0xff]   ;;  %v1443_v35 = vld [vmem:[%s1726_s0 + $0x78] sm:$0xff]   ;;  %v1445_v37 = vld [vmem:[%s1726_s0 + $0x80] sm:$0xff]  }
   0xd   :  { %v1446_v38 = vld [vmem:[%s1725_s2 + $0x88] sm:$0xff]   ;;  %v1631_v42 = vld [vmem:[%s1727_s4] ss:$0 sm:$0xff] }
   0xe   :  { %1305 = vmatmul.mubr.msk.bf16.gmra.mrb[4].mxu1 %vm185_vm1, %v1418_v10  ;;  %v1447_v39 = vld [vmem:[%s1726_s0 + $0x88] sm:$0xff]  }
   0xf   :  { %1343 = vmatmul.mubr.msk.bf16.gmra.mrb[4].mxu0 %vm185_vm1, %v1419_v11  ;;  %1308 = vmatprep.mubr.msk.bf16.mxu1 %vm185_vm1, %v1420_v12 }
  0x10   :  { %1346 = vmatprep.mubr.msk.bf16.mxu0 %vm185_vm1, %v1421_v13 }
  0x16   :  { %1309 = vmatmul.mubr.msk.bf16.gmra.mrb[8].mxu1 %vm185_vm1, %v1422_v14 }
  0x17   :  { %1347 = vmatmul.mubr.msk.bf16.gmra.mrb[8].mxu0 %vm185_vm1, %v1423_v15  ;;  %1312 = vmatprep.mubr.msk.bf16.mxu1 %vm185_vm1, %v1424_v16 }
  0x18   :  { %1350 = vmatprep.mubr.msk.bf16.mxu0 %vm185_vm1, %v1425_v17 }
  0x1e   :  { %1313 = vmatmul.mubr.msk.bf16.gmra.mrb[12].mxu1 %vm185_vm1, %v1426_v18 }
  0x1f   :  { %1351 = vmatmul.mubr.msk.bf16.gmra.mrb[12].mxu0 %vm185_vm1, %v1427_v19  ;;  %1316 = vmatprep.mubr.msk.bf16.mxu1 %vm185_vm1, %v1428_v20 }
  0x20   :  { %1354 = vmatprep.mubr.msk.bf16.mxu0 %vm185_vm1, %v1429_v21 }
  0x26   :  { %1317 = vmatmul.mubr.msk.bf16.gmra.mrb[16].mxu1 %vm185_vm1, %v1430_v22 }
  0x27   :  { %1355 = vmatmul.mubr.msk.bf16.gmra.mrb[16].mxu0 %vm185_vm1, %v1431_v23  ;;  %1320 = vmatprep.mubr.msk.bf16.mxu1 %vm185_vm1, %v1432_v24 }
  0x28   :  { %1358 = vmatprep.mubr.msk.bf16.mxu0 %vm185_vm1, %v1433_v25 }
  0x2e   :  { %1321 = vmatmul.mubr.msk.bf16.gmra.mrb[20].mxu1 %vm185_vm1, %v1434_v26 }
  0x2f   :  { %1359 = vmatmul.mubr.msk.bf16.gmra.mrb[20].mxu0 %vm185_vm1, %v1435_v27  ;;  %1324 = vmatprep.mubr.msk.bf16.mxu1 %vm185_vm1, %v1436_v28 }
  0x30   :  { %1362 = vmatprep.mubr.msk.bf16.mxu0 %vm185_vm1, %v1437_v29 }
  0x36   :  { %1325 = vmatmul.mubr.msk.bf16.gmra.mrb[24].mxu1 %vm185_vm1, %v1438_v30 }
  0x37   :  { %1363 = vmatmul.mubr.msk.bf16.gmra.mrb[24].mxu0 %vm185_vm1, %v1439_v31  ;;  %1328 = vmatprep.mubr.msk.bf16.mxu1 %vm185_vm1, %v1440_v32 }
  0x38   :  { %1366 = vmatprep.mubr.msk.bf16.mxu0 %vm185_vm1, %v1441_v33 }
  0x3e   :  { %1329 = vmatmul.mubr.msk.bf16.gmra.mrb[28].mxu1 %vm185_vm1, %v1442_v34 }
  0x3f   :  { %1367 = vmatmul.mubr.msk.bf16.gmra.mrb[28].mxu0 %vm185_vm1, %v1443_v35  ;;  %1332 = vmatprep.mubr.msk.bf16.mxu1 %vm185_vm1, %v1444_v36 }
  0x40   :  { %1370 = vmatprep.mubr.msk.bf16.mxu0 %vm185_vm1, %v1445_v37 }
  0x46   :  { %1333 = vmatmul.mubr.msk.bf16.gmra.mrb[32].mxu1 %vm185_vm1, %v1446_v38 }
  0x47   :  { %1371 = vmatmul.mubr.msk.bf16.gmra.mrb[32].mxu0 %vm185_vm1, %v1447_v39 }
  0xd9   :  { %v1302_v40 = vpop.f32.mrb[0].mxu1 }
  0xda   :  { %v1340_v41 = vpop.f32.mrb[0].mxu0  ;;  %v278_v43 = vpop.f32.mrb[1].mxu1 }
  0xdb   :  { %v611_v44 = vadd.f32 %v1340_v41, %v1302_v40  ;;  %v602_v45 = vpop.f32.mrb[1].mxu0  ;;  %v1303_v46 = vpop.f32.mrb[2].mxu1 }
  0xdc   :  { %v603_v47 = vadd.f32 %v602_v45, %v278_v43  ;;  %v1341_v48 = vpop.f32.mrb[2].mxu0  ;;  %v281_v49 = vpop.f32.mrb[3].mxu1 }
  0xdd   :  { %v754_v50 = vadd.f32 %v1631_v42, %v611_v44  ;;  %v614_v51 = vadd.f32 %v1341_v48, %v1303_v46  ;;  %v605_v52 = vpop.f32.mrb[3].mxu0 }
  0xde   :  { %v752_v53 = vadd.f32 %v1631_v42, %v603_v47  ;;  %v606_v54 = vadd.f32 %v605_v52, %v281_v49 }
  0xdf   :  { %v755_v55 = vadd.f32 %v1631_v42, %v614_v51  ;;  %v790_v57 = vmax.f32 %v754_v50, 0.0 }
  0xe0   :  { %v753_v56 = vadd.f32 %v1631_v42, %v606_v54  ;;  %v788_v60 = vmax.f32 %v752_v53, 0.0 }
  0xe1   :  { %v791_v58 = vmax.f32 %v755_v55, 0.0  ;;  %v1306_v59 = vpop.f32.mrb[4].mxu1 }
  0xe2   :  { %v789_v61 = vmax.f32 %v753_v56, 0.0  ;;  %v1344_v62 = vpop.f32.mrb[4].mxu0  ;;  %v294_v63 = vpop.f32.mrb[5].mxu1 }
  0xe3   :  { %v1161_v0 = vpack.c.bf16 %v791_v58, %v790_v57  ;;  %v627_v1 = vadd.f32 %v1344_v62, %v1306_v59  ;;  %v618_v2 = vpop.f32.mrb[5].mxu0  ;;  %v1307_v3 = vpop.f32.mrb[6].mxu1 }
  0xe4   :  { %v1156_v4 = vpack.c.bf16 %v789_v61, %v788_v60  ;;  %v619_v5 = vadd.f32 %v618_v2, %v294_v63  ;;  %v1345_v6 = vpop.f32.mrb[6].mxu0  ;;  %v297_v7 = vpop.f32.mrb[7].mxu1 }
  0xe5   :  { %1243 = vst [vmem:[%s1728_s5 + $0x8] sm:$0xff] %v1161_v0   ;;  %v758_v8 = vadd.f32 %v1631_v42, %v627_v1  ;;  %v630_v9 = vadd.f32 %v1345_v6, %v1307_v3  ;;  %v621_v10 = vpop.f32.mrb[7].mxu0 }
  0xe6   :  { %1157 = vst [vmem:[%s1728_s5] sm:$0xff] %v1156_v4   ;;  %v756_v11 = vadd.f32 %v1631_v42, %v619_v5  ;;  %v622_v12 = vadd.f32 %v621_v10, %v297_v7 }
  0xe7   :  { %v759_v13 = vadd.f32 %v1631_v42, %v630_v9  ;;  %v794_v15 = vmax.f32 %v758_v8, 0.0 }
  0xe8   :  { %v757_v14 = vadd.f32 %v1631_v42, %v622_v12  ;;  %v792_v18 = vmax.f32 %v756_v11, 0.0 }
  0xe9   :  { %v795_v16 = vmax.f32 %v759_v13, 0.0  ;;  %v1310_v17 = vpop.f32.mrb[8].mxu1 }
  0xea   :  { %v793_v19 = vmax.f32 %v757_v14, 0.0  ;;  %v1348_v20 = vpop.f32.mrb[8].mxu0  ;;  %v310_v21 = vpop.f32.mrb[9].mxu1 }
  0xeb   :  { %v1171_v22 = vpack.c.bf16 %v795_v16, %v794_v15  ;;  %v643_v23 = vadd.f32 %v1348_v20, %v1310_v17  ;;  %v634_v24 = vpop.f32.mrb[9].mxu0  ;;  %v1311_v25 = vpop.f32.mrb[10].mxu1 }
  0xec   :  { %v1166_v26 = vpack.c.bf16 %v793_v19, %v792_v18  ;;  %v635_v27 = vadd.f32 %v634_v24, %v310_v21  ;;  %v1349_v28 = vpop.f32.mrb[10].mxu0  ;;  %v313_v29 = vpop.f32.mrb[11].mxu1 }
  0xed   :  { %1245 = vst [vmem:[%s1728_s5 + $0x18] sm:$0xff] %v1171_v22   ;;  %v762_v30 = vadd.f32 %v1631_v42, %v643_v23  ;;  %v646_v31 = vadd.f32 %v1349_v28, %v1311_v25  ;;  %v637_v32 = vpop.f32.mrb[11].mxu0 }
  0xee   :  { %1244 = vst [vmem:[%s1728_s5 + $0x10] sm:$0xff] %v1166_v26   ;;  %v760_v33 = vadd.f32 %v1631_v42, %v635_v27  ;;  %v638_v34 = vadd.f32 %v637_v32, %v313_v29 }
  0xef   :  { %v763_v35 = vadd.f32 %v1631_v42, %v646_v31  ;;  %v798_v37 = vmax.f32 %v762_v30, 0.0 }
  0xf0   :  { %v761_v36 = vadd.f32 %v1631_v42, %v638_v34  ;;  %v796_v40 = vmax.f32 %v760_v33, 0.0 }
  0xf1   :  { %v799_v38 = vmax.f32 %v763_v35, 0.0  ;;  %v1314_v39 = vpop.f32.mrb[12].mxu1 }
  0xf2   :  { %v797_v41 = vmax.f32 %v761_v36, 0.0  ;;  %v1352_v43 = vpop.f32.mrb[12].mxu0  ;;  %v326_v44 = vpop.f32.mrb[13].mxu1 }
  0xf3   :  { %v1181_v45 = vpack.c.bf16 %v799_v38, %v798_v37  ;;  %v659_v46 = vadd.f32 %v1352_v43, %v1314_v39  ;;  %v650_v47 = vpop.f32.mrb[13].mxu0  ;;  %v1315_v48 = vpop.f32.mrb[14].mxu1 }
  0xf4   :  { %v1176_v49 = vpack.c.bf16 %v797_v41, %v796_v40  ;;  %v651_v50 = vadd.f32 %v650_v47, %v326_v44  ;;  %v1353_v51 = vpop.f32.mrb[14].mxu0  ;;  %v329_v52 = vpop.f32.mrb[15].mxu1 }
  0xf5   :  { %1247 = vst [vmem:[%s1728_s5 + $0x28] sm:$0xff] %v1181_v45   ;;  %v766_v53 = vadd.f32 %v1631_v42, %v659_v46  ;;  %v662_v54 = vadd.f32 %v1353_v51, %v1315_v48  ;;  %v653_v55 = vpop.f32.mrb[15].mxu0 }
  0xf6   :  { %1246 = vst [vmem:[%s1728_s5 + $0x20] sm:$0xff] %v1176_v49   ;;  %v764_v56 = vadd.f32 %v1631_v42, %v651_v50  ;;  %v654_v57 = vadd.f32 %v653_v55, %v329_v52 }
  0xf7   :  { %v767_v58 = vadd.f32 %v1631_v42, %v662_v54  ;;  %v802_v60 = vmax.f32 %v766_v53, 0.0 }
  0xf8   :  { %v765_v59 = vadd.f32 %v1631_v42, %v654_v57  ;;  %v800_v63 = vmax.f32 %v764_v56, 0.0 }
  0xf9   :  { %v803_v61 = vmax.f32 %v767_v58, 0.0  ;;  %v1318_v62 = vpop.f32.mrb[16].mxu1 }
  0xfa   :  { %v801_v0 = vmax.f32 %v765_v59, 0.0  ;;  %v1356_v1 = vpop.f32.mrb[16].mxu0  ;;  %v342_v2 = vpop.f32.mrb[17].mxu1 }
  0xfb   :  { %v1191_v3 = vpack.c.bf16 %v803_v61, %v802_v60  ;;  %v675_v4 = vadd.f32 %v1356_v1, %v1318_v62  ;;  %v666_v5 = vpop.f32.mrb[17].mxu0  ;;  %v1319_v6 = vpop.f32.mrb[18].mxu1 }
  0xfc   :  { %v1186_v7 = vpack.c.bf16 %v801_v0, %v800_v63  ;;  %v667_v8 = vadd.f32 %v666_v5, %v342_v2  ;;  %v1357_v9 = vpop.f32.mrb[18].mxu0  ;;  %v345_v10 = vpop.f32.mrb[19].mxu1 }
  0xfd   :  { %1249 = vst [vmem:[%s1728_s5 + $0x38] sm:$0xff] %v1191_v3   ;;  %v770_v11 = vadd.f32 %v1631_v42, %v675_v4  ;;  %v678_v12 = vadd.f32 %v1357_v9, %v1319_v6  ;;  %v669_v13 = vpop.f32.mrb[19].mxu0 }
  0xfe   :  { %1248 = vst [vmem:[%s1728_s5 + $0x30] sm:$0xff] %v1186_v7   ;;  %v768_v14 = vadd.f32 %v1631_v42, %v667_v8  ;;  %v670_v15 = vadd.f32 %v669_v13, %v345_v10 }
  0xff   :  { %v771_v16 = vadd.f32 %v1631_v42, %v678_v12  ;;  %v806_v18 = vmax.f32 %v770_v11, 0.0 }
 0x100   :  { %v769_v17 = vadd.f32 %v1631_v42, %v670_v15  ;;  %v804_v21 = vmax.f32 %v768_v14, 0.0 }
 0x101   :  { %v807_v19 = vmax.f32 %v771_v16, 0.0  ;;  %v1322_v20 = vpop.f32.mrb[20].mxu1 }
 0x102   :  { %v805_v22 = vmax.f32 %v769_v17, 0.0  ;;  %v1360_v23 = vpop.f32.mrb[20].mxu0  ;;  %v358_v24 = vpop.f32.mrb[21].mxu1 }
 0x103   :  { %v1201_v25 = vpack.c.bf16 %v807_v19, %v806_v18  ;;  %v691_v26 = vadd.f32 %v1360_v23, %v1322_v20  ;;  %v682_v27 = vpop.f32.mrb[21].mxu0  ;;  %v1323_v28 = vpop.f32.mrb[22].mxu1 }
 0x104   :  { %v1196_v29 = vpack.c.bf16 %v805_v22, %v804_v21  ;;  %v683_v30 = vadd.f32 %v682_v27, %v358_v24  ;;  %v1361_v31 = vpop.f32.mrb[22].mxu0  ;;  %v361_v32 = vpop.f32.mrb[23].mxu1 }
 0x105   :  { %1251 = vst [vmem:[%s1728_s5 + $0x48] sm:$0xff] %v1201_v25   ;;  %v774_v33 = vadd.f32 %v1631_v42, %v691_v26  ;;  %v694_v34 = vadd.f32 %v1361_v31, %v1323_v28  ;;  %v685_v35 = vpop.f32.mrb[23].mxu0 }
 0x106   :  { %1250 = vst [vmem:[%s1728_s5 + $0x40] sm:$0xff] %v1196_v29   ;;  %v772_v36 = vadd.f32 %v1631_v42, %v683_v30  ;;  %v686_v37 = vadd.f32 %v685_v35, %v361_v32 }
 0x107   :  { %v775_v38 = vadd.f32 %v1631_v42, %v694_v34  ;;  %v810_v40 = vmax.f32 %v774_v33, 0.0 }
 0x108   :  { %v773_v39 = vadd.f32 %v1631_v42, %v686_v37  ;;  %v808_v44 = vmax.f32 %v772_v36, 0.0 }
 0x109   :  { %v811_v41 = vmax.f32 %v775_v38, 0.0  ;;  %v1326_v43 = vpop.f32.mrb[24].mxu1 }
 0x10a   :  { %v809_v45 = vmax.f32 %v773_v39, 0.0  ;;  %v1364_v46 = vpop.f32.mrb[24].mxu0  ;;  %v374_v47 = vpop.f32.mrb[25].mxu1 }
 0x10b   :  { %v1211_v48 = vpack.c.bf16 %v811_v41, %v810_v40  ;;  %v707_v49 = vadd.f32 %v1364_v46, %v1326_v43  ;;  %v698_v50 = vpop.f32.mrb[25].mxu0  ;;  %v1327_v51 = vpop.f32.mrb[26].mxu1 }
 0x10c   :  { %v1206_v52 = vpack.c.bf16 %v809_v45, %v808_v44  ;;  %v699_v53 = vadd.f32 %v698_v50, %v374_v47  ;;  %v1365_v54 = vpop.f32.mrb[26].mxu0  ;;  %v377_v55 = vpop.f32.mrb[27].mxu1 }
 0x10d   :  { %1253 = vst [vmem:[%s1728_s5 + $0x58] sm:$0xff] %v1211_v48   ;;  %v778_v56 = vadd.f32 %v1631_v42, %v707_v49  ;;  %v710_v57 = vadd.f32 %v1365_v54, %v1327_v51  ;;  %v701_v58 = vpop.f32.mrb[27].mxu0 }
 0x10e   :  { %1252 = vst [vmem:[%s1728_s5 + $0x50] sm:$0xff] %v1206_v52   ;;  %v776_v59 = vadd.f32 %v1631_v42, %v699_v53  ;;  %v702_v60 = vadd.f32 %v701_v58, %v377_v55 }
 0x10f   :  { %v779_v61 = vadd.f32 %v1631_v42, %v710_v57  ;;  %v814_v63 = vmax.f32 %v778_v56, 0.0 }
 0x110   :  { %v777_v62 = vadd.f32 %v1631_v42, %v702_v60  ;;  %v812_v2 = vmax.f32 %v776_v59, 0.0 }
 0x111   :  { %v815_v0 = vmax.f32 %v779_v61, 0.0  ;;  %v1330_v1 = vpop.f32.mrb[28].mxu1 }
 0x112   :  { %v813_v3 = vmax.f32 %v777_v62, 0.0  ;;  %v1368_v4 = vpop.f32.mrb[28].mxu0  ;;  %v390_v5 = vpop.f32.mrb[29].mxu1 }
 0x113   :  { %v1221_v6 = vpack.c.bf16 %v815_v0, %v814_v63  ;;  %v723_v7 = vadd.f32 %v1368_v4, %v1330_v1  ;;  %v714_v8 = vpop.f32.mrb[29].mxu0  ;;  %v1331_v9 = vpop.f32.mrb[30].mxu1 }
 0x114   :  { %v1216_v10 = vpack.c.bf16 %v813_v3, %v812_v2  ;;  %v715_v11 = vadd.f32 %v714_v8, %v390_v5  ;;  %v1369_v12 = vpop.f32.mrb[30].mxu0  ;;  %v393_v13 = vpop.f32.mrb[31].mxu1 }
 0x115   :  { %1255 = vst [vmem:[%s1728_s5 + $0x68] sm:$0xff] %v1221_v6   ;;  %v782_v14 = vadd.f32 %v1631_v42, %v723_v7  ;;  %v726_v15 = vadd.f32 %v1369_v12, %v1331_v9  ;;  %v717_v16 = vpop.f32.mrb[31].mxu0 }
 0x116   :  { %1254 = vst [vmem:[%s1728_s5 + $0x60] sm:$0xff] %v1216_v10   ;;  %v780_v17 = vadd.f32 %v1631_v42, %v715_v11  ;;  %v718_v18 = vadd.f32 %v717_v16, %v393_v13 }
 0x117   :  { %v783_v19 = vadd.f32 %v1631_v42, %v726_v15  ;;  %v818_v21 = vmax.f32 %v782_v14, 0.0 }
 0x118   :  { %v781_v20 = vadd.f32 %v1631_v42, %v718_v18  ;;  %v816_v24 = vmax.f32 %v780_v17, 0.0 }
 0x119   :  { %v819_v22 = vmax.f32 %v783_v19, 0.0  ;;  %v1334_v23 = vpop.f32.mrb[32].mxu1 }
 0x11a   :  { %v817_v25 = vmax.f32 %v781_v20, 0.0  ;;  %v1372_v26 = vpop.f32.mrb[32].mxu0  ;;  %v406_v27 = vpop.f32.mrb[33].mxu1 }
 0x11b   :  { %v1231_v28 = vpack.c.bf16 %v819_v22, %v818_v21  ;;  %v739_v29 = vadd.f32 %v1372_v26, %v1334_v23  ;;  %v730_v30 = vpop.f32.mrb[33].mxu0  ;;  %v1335_v31 = vpop.f32.mrb[34].mxu1 }
 0x11c   :  { %v1226_v32 = vpack.c.bf16 %v817_v25, %v816_v24  ;;  %v731_v33 = vadd.f32 %v730_v30, %v406_v27  ;;  %v1373_v34 = vpop.f32.mrb[34].mxu0  ;;  %v409_v35 = vpop.f32.mrb[35].mxu1 }
 0x11d   :  { %1257 = vst [vmem:[%s1728_s5 + $0x78] sm:$0xff] %v1231_v28   ;;  %v786_v36 = vadd.f32 %v1631_v42, %v739_v29  ;;  %v742_v37 = vadd.f32 %v1373_v34, %v1335_v31  ;;  %v733_v38 = vpop.f32.mrb[35].mxu0 }
 0x11e   :  { %1256 = vst [vmem:[%s1728_s5 + $0x70] sm:$0xff] %v1226_v32   ;;  %v784_v39 = vadd.f32 %v1631_v42, %v731_v33  ;;  %v734_v40 = vadd.f32 %v733_v38, %v409_v35 }
 0x11f   :  { %v787_v41 = vadd.f32 %v1631_v42, %v742_v37  ;;  %v822_v44 = vmax.f32 %v786_v36, 0.0 }
 0x120   :  { %v785_v43 = vadd.f32 %v1631_v42, %v734_v40  ;;  %v820_v46 = vmax.f32 %v784_v39, 0.0 }
 0x121   :  { %v823_v45 = vmax.f32 %v787_v41, 0.0 }
 0x122   :  { %v821_v47 = vmax.f32 %v785_v43, 0.0 }
 0x123   :  { %v1241_v48 = vpack.c.bf16 %v823_v45, %v822_v44 }
 0x124   :  { %v1236_v49 = vpack.c.bf16 %v821_v47, %v820_v46 }
 0x125   :  { %1259 = vst [vmem:[%s1728_s5 + $0x88] sm:$0xff] %v1241_v48  }
 0x126   :  { %1258 = vst [vmem:[%s1728_s5 + $0x80] sm:$0xff] %v1236_v49  }

// kernel: _lambda_.6
= control target key start
LH: loop header
LB: loop body
LE: loop exit
PB: predicated region body
PF: predicated region fallthrough
CT: control target
= control target key end

     0   :  { %s1796_s1 = inlined_call_operand.vmem [shape: bf16[128,128], index: 1, kind: input, shape index: {}]   ;;  %s1797_s0 = inlined_call_operand.vmem [shape: bf16[512,128], index: 0, kind: input, shape index: {}]   ;;  %s1798_s2 = inlined_call_operand.vmem [shape: f32[1,128], index: 2, kind: input, shape index: {}]   ;;  %s1799_s3 = inlined_call_operand.vmem [shape: bf16[512,128], index: 3, kind: output, shape index: {}]  }
   0x1   :  { %v1451_v0 = vld [vmem:[%s1796_s1] sm:$0xff]   ;;  %v1452_v1 = vld [vmem:[%s1796_s1 + $0x8] sm:$0xff]   ;;  %v1453_v2 = vld [vmem:[%s1796_s1 + $0x10] sm:$0xff]  }
   0x2   :  { %1355 = vmatprep.subr.bf16.mxu0 %v1451_v0  ;;  %1435 = vmatprep.subr.bf16.mxu1 %v1451_v0  ;;  %v1454_v3 = vld [vmem:[%s1796_s1 + $0x18] sm:$0xff]   ;;  %v1459_v4 = vld [vmem:[%s1797_s0] sm:$0xff]   ;;  %v1456_v7 = vld [vmem:[%s1796_s1 + $0x28] sm:$0xff]  }
   0x3   :  { %1356 = vmatpush3.bf16.msra.mxu0 %v1451_v0  ;;  %1443 = vmatpush3.bf16.msra.mxu1 %v1451_v0  ;;  %v1460_v5 = vld [vmem:[%s1797_s0 + $0x80] sm:$0xff]   ;;  %v1457_v8 = vld [vmem:[%s1796_s1 + $0x30] sm:$0xff]   ;;  %v1458_v9 = vld [vmem:[%s1796_s1 + $0x38] sm:$0xff]  }
   0x4   :  { %1357 = vmatprep.subr.bf16.mxu0 %v1452_v1  ;;  %1436 = vmatprep.subr.bf16.mxu1 %v1452_v1  ;;  %v1455_v6 = vld [vmem:[%s1796_s1 + $0x20] sm:$0xff]   ;;  %v1461_v10 = vld [vmem:[%s1797_s0 + $0x8] sm:$0xff]   ;;  %v1463_v12 = vld [vmem:[%s1797_s0 + $0x10] sm:$0xff]  }
   0x5   :  { %1371 = vmatprep.mubr.bf16.mxu0 %v1459_v4  ;;  %1403 = vmatprep.mubr.bf16.mxu1 %v1460_v5  ;;  %v1462_v11 = vld [vmem:[%s1797_s0 + $0x88] sm:$0xff]   ;;  %v1464_v13 = vld [vmem:[%s1797_s0 + $0x90] sm:$0xff]   ;;  %v1465_v14 = vld [vmem:[%s1797_s0 + $0x18] sm:$0xff]  }
   0x6   :  { %v1466_v15 = vld [vmem:[%s1797_s0 + $0x98] sm:$0xff]   ;;  %v1467_v16 = vld [vmem:[%s1797_s0 + $0x20] sm:$0xff]   ;;  %v1469_v18 = vld [vmem:[%s1797_s0 + $0x28] sm:$0xff]  }
   0x7   :  { %1358 = vmatpush3.bf16.msra.mxu0 %v1452_v1  ;;  %1444 = vmatpush3.bf16.msra.mxu1 %v1452_v1  ;;  %v1468_v17 = vld [vmem:[%s1797_s0 + $0xa0] sm:$0xff]   ;;  %v1470_v19 = vld [vmem:[%s1797_s0 + $0xa8] sm:$0xff]   ;;  %v1471_v20 = vld [vmem:[%s1797_s0 + $0x30] sm:$0xff]  }
   0x8   :  { %1359 = vmatprep.subr.bf16.mxu0 %v1453_v2  ;;  %1437 = vmatprep.subr.bf16.mxu1 %v1453_v2  ;;  %v1472_v21 = vld [vmem:[%s1797_s0 + $0xb0] sm:$0xff]   ;;  %v1473_v22 = vld [vmem:[%s1797_s0 + $0x38] sm:$0xff]   ;;  %v1475_v24 = vld [vmem:[%s1797_s0 + $0x40] sm:$0xff]  }
   0x9   :  { %v1474_v23 = vld [vmem:[%s1797_s0 + $0xb8] sm:$0xff]   ;;  %v1476_v25 = vld [vmem:[%s1797_s0 + $0xc0] sm:$0xff]   ;;  %v1477_v26 = vld [vmem:[%s1797_s0 + $0x48] sm:$0xff]  }
   0xa   :  { %v1478_v27 = vld [vmem:[%s1797_s0 + $0xc8] sm:$0xff]   ;;  %v1479_v28 = vld [vmem:[%s1797_s0 + $0x50] sm:$0xff]   ;;  %v1481_v30 = vld [vmem:[%s1797_s0 + $0x58] sm:$0xff]  }
   0xb   :  { %1360 = vmatpush3.bf16.msra.mxu0 %v1453_v2  ;;  %1445 = vmatpush3.bf16.msra.mxu1 %v1453_v2  ;;  %v1480_v29 = vld [vmem:[%s1797_s0 + $0xd0] sm:$0xff]   ;;  %v1482_v31 = vld [vmem:[%s1797_s0 + $0xd8] sm:$0xff]   ;;  %v1483_v32 = vld [vmem:[%s1797_s0 + $0x60] sm:$0xff]  }
   0xc   :  { %1361 = vmatprep.subr.bf16.mxu0 %v1454_v3  ;;  %1438 = vmatprep.subr.bf16.mxu1 %v1454_v3  ;;  %v1484_v33 = vld [vmem:[%s1797_s0 + $0xe0] sm:$0xff]   ;;  %v1485_v34 = vld [vmem:[%s1797_s0 + $0x68] sm:$0xff]   ;;  %v1487_v36 = vld [vmem:[%s1797_s0 + $0x70] sm:$0xff]  }
   0xd   :  { %v1486_v35 = vld [vmem:[%s1797_s0 + $0xe8] sm:$0xff]   ;;  %v1488_v37 = vld [vmem:[%s1797_s0 + $0xf0] sm:$0xff]   ;;  %v1489_v38 = vld [vmem:[%s1797_s0 + $0x78] sm:$0xff]  }
   0xe   :  { %v1490_v39 = vld [vmem:[%s1797_s0 + $0xf8] sm:$0xff]   ;;  %v1634_v41 = vld [vmem:[%s1798_s2] ss:$0 sm:$0xff] }
   0xf   :  { %1362 = vmatpush3.bf16.msra.mxu0 %v1454_v3  ;;  %1446 = vmatpush3.bf16.msra.mxu1 %v1454_v3 }
  0x10   :  { %1363 = vmatprep.subr.bf16.mxu0 %v1455_v6  ;;  %1439 = vmatprep.subr.bf16.mxu1 %v1455_v6 }
  0x13   :  { %1364 = vmatpush3.bf16.msra.mxu0 %v1455_v6  ;;  %1447 = vmatpush3.bf16.msra.mxu1 %v1455_v6 }
  0x14   :  { %1365 = vmatprep.subr.bf16.mxu0 %v1456_v7  ;;  %1440 = vmatprep.subr.bf16.mxu1 %v1456_v7 }
  0x17   :  { %1366 = vmatpush3.bf16.msra.mxu0 %v1456_v7  ;;  %1448 = vmatpush3.bf16.msra.mxu1 %v1456_v7 }
  0x18   :  { %1367 = vmatprep.subr.bf16.mxu0 %v1457_v8  ;;  %1441 = vmatprep.subr.bf16.mxu1 %v1457_v8 }
  0x1b   :  { %1368 = vmatpush3.bf16.msra.mxu0 %v1457_v8  ;;  %1449 = vmatpush3.bf16.msra.mxu1 %v1457_v8 }
  0x1c   :  { %1369 = vmatprep.subr.bf16.mxu0 %v1458_v9  ;;  %1442 = vmatprep.subr.bf16.mxu1 %v1458_v9 }
  0x1f   :  { %1370 = vmatpush3.bf16.msra.mxu0 %v1458_v9  ;;  %1450 = vmatpush3.bf16.msra.mxu1 %v1458_v9 }
  0x22   :  { %1372 = vmatmul.mubr.bf16.vlgmr.msra.gmra.mrb[0].mxu0 %v1461_v10  ;;  %1404 = vmatmul.mubr.bf16.vlgmr.msra.gmra.mrb[0].mxu1 %v1462_v11 }
  0x23   :  { %1375 = vmatprep.mubr.bf16.mxu0 %v1463_v12  ;;  %1407 = vmatprep.mubr.bf16.mxu1 %v1464_v13 }
  0x2a   :  { %1376 = vmatmul.mubr.bf16.gmra.mrb[4].mxu0 %v1465_v14  ;;  %1408 = vmatmul.mubr.bf16.gmra.mrb[4].mxu1 %v1466_v15 }
  0x2b   :  { %1379 = vmatprep.mubr.bf16.mxu0 %v1467_v16  ;;  %1411 = vmatprep.mubr.bf16.mxu1 %v1468_v17 }
  0x32   :  { %1380 = vmatmul.mubr.bf16.gmra.mrb[8].mxu0 %v1469_v18  ;;  %1412 = vmatmul.mubr.bf16.gmra.mrb[8].mxu1 %v1470_v19 }
  0x33   :  { %1383 = vmatprep.mubr.bf16.mxu0 %v1471_v20  ;;  %1415 = vmatprep.mubr.bf16.mxu1 %v1472_v21 }
  0x3a   :  { %1384 = vmatmul.mubr.bf16.gmra.mrb[12].mxu0 %v1473_v22  ;;  %1416 = vmatmul.mubr.bf16.gmra.mrb[12].mxu1 %v1474_v23 }
  0x3b   :  { %1387 = vmatprep.mubr.bf16.mxu0 %v1475_v24  ;;  %1419 = vmatprep.mubr.bf16.mxu1 %v1476_v25 }
  0x42   :  { %1388 = vmatmul.mubr.bf16.gmra.mrb[16].mxu0 %v1477_v26  ;;  %1420 = vmatmul.mubr.bf16.gmra.mrb[16].mxu1 %v1478_v27 }
  0x43   :  { %1391 = vmatprep.mubr.bf16.mxu0 %v1479_v28  ;;  %1423 = vmatprep.mubr.bf16.mxu1 %v1480_v29 }
  0x4a   :  { %1392 = vmatmul.mubr.bf16.gmra.mrb[20].mxu0 %v1481_v30  ;;  %1424 = vmatmul.mubr.bf16.gmra.mrb[20].mxu1 %v1482_v31 }
  0x4b   :  { %1395 = vmatprep.mubr.bf16.mxu0 %v1483_v32  ;;  %1427 = vmatprep.mubr.bf16.mxu1 %v1484_v33 }
  0x52   :  { %1396 = vmatmul.mubr.bf16.gmra.mrb[24].mxu0 %v1485_v34  ;;  %1428 = vmatmul.mubr.bf16.gmra.mrb[24].mxu1 %v1486_v35 }
  0x53   :  { %1399 = vmatprep.mubr.bf16.mxu0 %v1487_v36  ;;  %1431 = vmatprep.mubr.bf16.mxu1 %v1488_v37 }
  0x5a   :  { %1400 = vmatmul.mubr.bf16.gmra.mrb[28].mxu0 %v1489_v38  ;;  %1432 = vmatmul.mubr.bf16.gmra.mrb[28].mxu1 %v1490_v39 }
  0xf5   :  { %v1373_v40 = vpop.f32.mrb[0].mxu0  ;;  %v1405_v42 = vpop.f32.mrb[0].mxu1 }
  0xf6   :  { %v376_v43 = vpop.f32.mrb[1].mxu0  ;;  %v504_v44 = vpop.f32.mrb[1].mxu1  ;;  %v385_v47 = vadd.f32 %v1373_v40, %v1634_v41  ;;  %v513_v48 = vadd.f32 %v1405_v42, %v1634_v41 }
  0xf7   :  { %v1374_v45 = vpop.f32.mrb[2].mxu0  ;;  %v1406_v46 = vpop.f32.mrb[2].mxu1  ;;  %v377_v53 = vadd.f32 %v1634_v41, %v376_v43  ;;  %v505_v54 = vadd.f32 %v1634_v41, %v504_v44 }
  0xf8   :  { %v388_v49 = vadd.f32 %v1374_v45, %v1634_v41  ;;  %v516_v50 = vadd.f32 %v1406_v46, %v1634_v41  ;;  %v379_v51 = vpop.f32.mrb[3].mxu0  ;;  %v507_v52 = vpop.f32.mrb[3].mxu1 }
  0xf9   :  { %v380_v55 = vadd.f32 %v1634_v41, %v379_v51  ;;  %v508_v56 = vadd.f32 %v1634_v41, %v507_v52 }
  0xfa   :  { %v1132_v57 = vpack.c.bf16 %v388_v49, %v385_v47  ;;  %v1212_v58 = vpack.c.bf16 %v516_v50, %v513_v48 }
  0xfb   :  { %v1127_v59 = vpack.c.bf16 %v380_v55, %v377_v53  ;;  %v1207_v60 = vpack.c.bf16 %v508_v56, %v505_v54 }
  0xfc   :  { %1284 = vst [vmem:[%s1799_s3 + $0x8] sm:$0xff] %v1132_v57   ;;  %1300 = vst [vmem:[%s1799_s3 + $0x88] sm:$0xff] %v1212_v58  }
  0xfd   :  { %1128 = vst [vmem:[%s1799_s3] sm:$0xff] %v1127_v59   ;;  %1299 = vst [vmem:[%s1799_s3 + $0x80] sm:$0xff] %v1207_v60   ;;  %v1377_v61 = vpop.f32.mrb[4].mxu0  ;;  %v1409_v62 = vpop.f32.mrb[4].mxu1 }
  0xfe   :  { %v392_v63 = vpop.f32.mrb[5].mxu0  ;;  %v520_v0 = vpop.f32.mrb[5].mxu1  ;;  %v401_v3 = vadd.f32 %v1377_v61, %v1634_v41  ;;  %v529_v4 = vadd.f32 %v1409_v62, %v1634_v41 }
  0xff   :  { %v1378_v1 = vpop.f32.mrb[6].mxu0  ;;  %v1410_v2 = vpop.f32.mrb[6].mxu1  ;;  %v393_v9 = vadd.f32 %v1634_v41, %v392_v63  ;;  %v521_v10 = vadd.f32 %v1634_v41, %v520_v0 }
 0x100   :  { %v404_v5 = vadd.f32 %v1378_v1, %v1634_v41  ;;  %v532_v6 = vadd.f32 %v1410_v2, %v1634_v41  ;;  %v395_v7 = vpop.f32.mrb[7].mxu0  ;;  %v523_v8 = vpop.f32.mrb[7].mxu1 }
 0x101   :  { %v396_v11 = vadd.f32 %v1634_v41, %v395_v7  ;;  %v524_v12 = vadd.f32 %v1634_v41, %v523_v8 }
 0x102   :  { %v1142_v13 = vpack.c.bf16 %v404_v5, %v401_v3  ;;  %v1222_v14 = vpack.c.bf16 %v532_v6, %v529_v4 }
 0x103   :  { %v1137_v15 = vpack.c.bf16 %v396_v11, %v393_v9  ;;  %v1217_v16 = vpack.c.bf16 %v524_v12, %v521_v10 }
 0x104   :  { %1286 = vst [vmem:[%s1799_s3 + $0x18] sm:$0xff] %v1142_v13   ;;  %1302 = vst [vmem:[%s1799_s3 + $0x98] sm:$0xff] %v1222_v14  }
 0x105   :  { %1285 = vst [vmem:[%s1799_s3 + $0x10] sm:$0xff] %v1137_v15   ;;  %1301 = vst [vmem:[%s1799_s3 + $0x90] sm:$0xff] %v1217_v16   ;;  %v1381_v17 = vpop.f32.mrb[8].mxu0  ;;  %v1413_v18 = vpop.f32.mrb[8].mxu1 }
 0x106   :  { %v408_v19 = vpop.f32.mrb[9].mxu0  ;;  %v536_v20 = vpop.f32.mrb[9].mxu1  ;;  %v417_v23 = vadd.f32 %v1381_v17, %v1634_v41  ;;  %v545_v24 = vadd.f32 %v1413_v18, %v1634_v41 }
 0x107   :  { %v1382_v21 = vpop.f32.mrb[10].mxu0  ;;  %v1414_v22 = vpop.f32.mrb[10].mxu1  ;;  %v409_v29 = vadd.f32 %v1634_v41, %v408_v19  ;;  %v537_v30 = vadd.f32 %v1634_v41, %v536_v20 }
 0x108   :  { %v420_v25 = vadd.f32 %v1382_v21, %v1634_v41  ;;  %v548_v26 = vadd.f32 %v1414_v22, %v1634_v41  ;;  %v411_v27 = vpop.f32.mrb[11].mxu0  ;;  %v539_v28 = vpop.f32.mrb[11].mxu1 }
 0x109   :  { %v412_v31 = vadd.f32 %v1634_v41, %v411_v27  ;;  %v540_v32 = vadd.f32 %v1634_v41, %v539_v28 }
 0x10a   :  { %v1152_v33 = vpack.c.bf16 %v420_v25, %v417_v23  ;;  %v1232_v34 = vpack.c.bf16 %v548_v26, %v545_v24 }
 0x10b   :  { %v1147_v35 = vpack.c.bf16 %v412_v31, %v409_v29  ;;  %v1227_v36 = vpack.c.bf16 %v540_v32, %v537_v30 }
 0x10c   :  { %1288 = vst [vmem:[%s1799_s3 + $0x28] sm:$0xff] %v1152_v33   ;;  %1304 = vst [vmem:[%s1799_s3 + $0xa8] sm:$0xff] %v1232_v34  }
 0x10d   :  { %1287 = vst [vmem:[%s1799_s3 + $0x20] sm:$0xff] %v1147_v35   ;;  %1303 = vst [vmem:[%s1799_s3 + $0xa0] sm:$0xff] %v1227_v36   ;;  %v1385_v37 = vpop.f32.mrb[12].mxu0  ;;  %v1417_v38 = vpop.f32.mrb[12].mxu1 }
 0x10e   :  { %v424_v39 = vpop.f32.mrb[13].mxu0  ;;  %v552_v40 = vpop.f32.mrb[13].mxu1  ;;  %v433_v44 = vadd.f32 %v1385_v37, %v1634_v41  ;;  %v561_v45 = vadd.f32 %v1417_v38, %v1634_v41 }
 0x10f   :  { %v1386_v42 = vpop.f32.mrb[14].mxu0  ;;  %v1418_v43 = vpop.f32.mrb[14].mxu1  ;;  %v425_v50 = vadd.f32 %v1634_v41, %v424_v39  ;;  %v553_v51 = vadd.f32 %v1634_v41, %v552_v40 }
 0x110   :  { %v436_v46 = vadd.f32 %v1386_v42, %v1634_v41  ;;  %v564_v47 = vadd.f32 %v1418_v43, %v1634_v41  ;;  %v427_v48 = vpop.f32.mrb[15].mxu0  ;;  %v555_v49 = vpop.f32.mrb[15].mxu1 }
 0x111   :  { %v428_v52 = vadd.f32 %v1634_v41, %v427_v48  ;;  %v556_v53 = vadd.f32 %v1634_v41, %v555_v49 }
 0x112   :  { %v1162_v54 = vpack.c.bf16 %v436_v46, %v433_v44  ;;  %v1242_v55 = vpack.c.bf16 %v564_v47, %v561_v45 }
 0x113   :  { %v1157_v56 = vpack.c.bf16 %v428_v52, %v425_v50  ;;  %v1237_v57 = vpack.c.bf16 %v556_v53, %v553_v51 }
 0x114   :  { %1290 = vst [vmem:[%s1799_s3 + $0x38] sm:$0xff] %v1162_v54   ;;  %1306 = vst [vmem:[%s1799_s3 + $0xb8] sm:$0xff] %v1242_v55  }
 0x115   :  { %1289 = vst [vmem:[%s1799_s3 + $0x30] sm:$0xff] %v1157_v56   ;;  %1305 = vst [vmem:[%s1799_s3 + $0xb0] sm:$0xff] %v1237_v57   ;;  %v1389_v58 = vpop.f32.mrb[16].mxu0  ;;  %v1421_v59 = vpop.f32.mrb[16].mxu1 }
 0x116   :  { %v440_v60 = vpop.f32.mrb[17].mxu0  ;;  %v568_v61 = vpop.f32.mrb[17].mxu1  ;;  %v449_v0 = vadd.f32 %v1389_v58, %v1634_v41  ;;  %v577_v1 = vadd.f32 %v1421_v59, %v1634_v41 }
 0x117   :  { %v1390_v62 = vpop.f32.mrb[18].mxu0  ;;  %v1422_v63 = vpop.f32.mrb[18].mxu1  ;;  %v441_v6 = vadd.f32 %v1634_v41, %v440_v60  ;;  %v569_v7 = vadd.f32 %v1634_v41, %v568_v61 }
 0x118   :  { %v452_v2 = vadd.f32 %v1390_v62, %v1634_v41  ;;  %v580_v3 = vadd.f32 %v1422_v63, %v1634_v41  ;;  %v443_v4 = vpop.f32.mrb[19].mxu0  ;;  %v571_v5 = vpop.f32.mrb[19].mxu1 }
 0x119   :  { %v444_v8 = vadd.f32 %v1634_v41, %v443_v4  ;;  %v572_v9 = vadd.f32 %v1634_v41, %v571_v5 }
 0x11a   :  { %v1172_v10 = vpack.c.bf16 %v452_v2, %v449_v0  ;;  %v1252_v11 = vpack.c.bf16 %v580_v3, %v577_v1 }
 0x11b   :  { %v1167_v12 = vpack.c.bf16 %v444_v8, %v441_v6  ;;  %v1247_v13 = vpack.c.bf16 %v572_v9, %v569_v7 }
 0x11c   :  { %1292 = vst [vmem:[%s1799_s3 + $0x48] sm:$0xff] %v1172_v10   ;;  %1308 = vst [vmem:[%s1799_s3 + $0xc8] sm:$0xff] %v1252_v11  }
 0x11d   :  { %1291 = vst [vmem:[%s1799_s3 + $0x40] sm:$0xff] %v1167_v12   ;;  %1307 = vst [vmem:[%s1799_s3 + $0xc0] sm:$0xff] %v1247_v13   ;;  %v1393_v14 = vpop.f32.mrb[20].mxu0  ;;  %v1425_v15 = vpop.f32.mrb[20].mxu1 }
 0x11e   :  { %v456_v16 = vpop.f32.mrb[21].mxu0  ;;  %v584_v17 = vpop.f32.mrb[21].mxu1  ;;  %v465_v20 = vadd.f32 %v1393_v14, %v1634_v41  ;;  %v593_v21 = vadd.f32 %v1425_v15, %v1634_v41 }
 0x11f   :  { %v1394_v18 = vpop.f32.mrb[22].mxu0  ;;  %v1426_v19 = vpop.f32.mrb[22].mxu1  ;;  %v457_v26 = vadd.f32 %v1634_v41, %v456_v16  ;;  %v585_v27 = vadd.f32 %v1634_v41, %v584_v17 }
 0x120   :  { %v468_v22 = vadd.f32 %v1394_v18, %v1634_v41  ;;  %v596_v23 = vadd.f32 %v1426_v19, %v1634_v41  ;;  %v459_v24 = vpop.f32.mrb[23].mxu0  ;;  %v587_v25 = vpop.f32.mrb[23].mxu1 }
 0x121   :  { %v460_v28 = vadd.f32 %v1634_v41, %v459_v24  ;;  %v588_v29 = vadd.f32 %v1634_v41, %v587_v25 }
 0x122   :  { %v1182_v30 = vpack.c.bf16 %v468_v22, %v465_v20  ;;  %v1262_v31 = vpack.c.bf16 %v596_v23, %v593_v21 }
 0x123   :  { %v1177_v32 = vpack.c.bf16 %v460_v28, %v457_v26  ;;  %v1257_v33 = vpack.c.bf16 %v588_v29, %v585_v27 }
 0x124   :  { %1294 = vst [vmem:[%s1799_s3 + $0x58] sm:$0xff] %v1182_v30   ;;  %1310 = vst [vmem:[%s1799_s3 + $0xd8] sm:$0xff] %v1262_v31  }
 0x125   :  { %1293 = vst [vmem:[%s1799_s3 + $0x50] sm:$0xff] %v1177_v32   ;;  %1309 = vst [vmem:[%s1799_s3 + $0xd0] sm:$0xff] %v1257_v33   ;;  %v1397_v34 = vpop.f32.mrb[24].mxu0  ;;  %v1429_v35 = vpop.f32.mrb[24].mxu1 }
 0x126   :  { %v472_v36 = vpop.f32.mrb[25].mxu0  ;;  %v600_v37 = vpop.f32.mrb[25].mxu1  ;;  %v481_v40 = vadd.f32 %v1397_v34, %v1634_v41  ;;  %v609_v42 = vadd.f32 %v1429_v35, %v1634_v41 }
 0x127   :  { %v1398_v38 = vpop.f32.mrb[26].mxu0  ;;  %v1430_v39 = vpop.f32.mrb[26].mxu1  ;;  %v473_v47 = vadd.f32 %v1634_v41, %v472_v36  ;;  %v601_v48 = vadd.f32 %v1634_v41, %v600_v37 }
 0x128   :  { %v484_v43 = vadd.f32 %v1398_v38, %v1634_v41  ;;  %v612_v44 = vadd.f32 %v1430_v39, %v1634_v41  ;;  %v475_v45 = vpop.f32.mrb[27].mxu0  ;;  %v603_v46 = vpop.f32.mrb[27].mxu1 }
 0x129   :  { %v476_v49 = vadd.f32 %v1634_v41, %v475_v45  ;;  %v604_v50 = vadd.f32 %v1634_v41, %v603_v46 }
 0x12a   :  { %v1192_v51 = vpack.c.bf16 %v484_v43, %v481_v40  ;;  %v1272_v52 = vpack.c.bf16 %v612_v44, %v609_v42 }
 0x12b   :  { %v1187_v53 = vpack.c.bf16 %v476_v49, %v473_v47  ;;  %v1267_v54 = vpack.c.bf16 %v604_v50, %v601_v48 }
 0x12c   :  { %1296 = vst [vmem:[%s1799_s3 + $0x68] sm:$0xff] %v1192_v51   ;;  %1312 = vst [vmem:[%s1799_s3 + $0xe8] sm:$0xff] %v1272_v52  }
 0x12d   :  { %1295 = vst [vmem:[%s1799_s3 + $0x60] sm:$0xff] %v1187_v53   ;;  %1311 = vst [vmem:[%s1799_s3 + $0xe0] sm:$0xff] %v1267_v54   ;;  %v1401_v55 = vpop.f32.mrb[28].mxu0  ;;  %v1433_v56 = vpop.f32.mrb[28].mxu1 }
 0x12e   :  { %v488_v57 = vpop.f32.mrb[29].mxu0  ;;  %v616_v58 = vpop.f32.mrb[29].mxu1  ;;  %v497_v61 = vadd.f32 %v1401_v55, %v1634_v41  ;;  %v625_v62 = vadd.f32 %v1433_v56, %v1634_v41 }
 0x12f   :  { %v1402_v59 = vpop.f32.mrb[30].mxu0  ;;  %v1434_v60 = vpop.f32.mrb[30].mxu1  ;;  %v489_v3 = vadd.f32 %v1634_v41, %v488_v57  ;;  %v617_v4 = vadd.f32 %v1634_v41, %v616_v58 }
 0x130   :  { %v500_v63 = vadd.f32 %v1402_v59, %v1634_v41  ;;  %v628_v0 = vadd.f32 %v1434_v60, %v1634_v41  ;;  %v491_v1 = vpop.f32.mrb[31].mxu0  ;;  %v619_v2 = vpop.f32.mrb[31].mxu1 }
 0x131   :  { %v492_v5 = vadd.f32 %v1634_v41, %v491_v1  ;;  %v620_v6 = vadd.f32 %v1634_v41, %v619_v2 }
 0x132   :  { %v1202_v7 = vpack.c.bf16 %v500_v63, %v497_v61  ;;  %v1282_v8 = vpack.c.bf16 %v628_v0, %v625_v62 }
 0x133   :  { %v1197_v9 = vpack.c.bf16 %v492_v5, %v489_v3  ;;  %v1277_v10 = vpack.c.bf16 %v620_v6, %v617_v4 }
 0x134   :  { %1298 = vst [vmem:[%s1799_s3 + $0x78] sm:$0xff] %v1202_v7   ;;  %1314 = vst [vmem:[%s1799_s3 + $0xf8] sm:$0xff] %v1282_v8  }
 0x135   :  { %1297 = vst [vmem:[%s1799_s3 + $0x70] sm:$0xff] %v1197_v9   ;;  %1313 = vst [vmem:[%s1799_s3 + $0xf0] sm:$0xff] %v1277_v10  }

// kernel: _lambda_.7
= control target key start
LH: loop header
LB: loop body
LE: loop exit
PB: predicated region body
PF: predicated region fallthrough
CT: control target
= control target key end

     0   :  { %s2438_s3 = inlined_call_operand.vmem [shape: bf16[128,128], index: 3, kind: input, shape index: {}]   ;;  %s2439_s1 = inlined_call_operand.vmem [shape: bf16[128,128], index: 1, kind: input, shape index: {}]   ;;  %s2440_s2 = inlined_call_operand.vmem [shape: bf16[512,128], index: 2, kind: input, shape index: {}]   ;;  %s2441_s0 = inlined_call_operand.vmem [shape: bf16[512,128], index: 0, kind: input, shape index: {}]   ;;  %s2442_s4 = inlined_call_operand.vmem [shape: f32[1,128], index: 4, kind: input, shape index: {}]   ;;  %s2443_s5 = inlined_call_operand.vmem [shape: f32[512,128], index: 5, kind: output, shape index: {}]  }
   0x1   :  { %v1827_v0 = vld [vmem:[%s2438_s3] sm:$0xff]   ;;  %v1829_v2 = vld [vmem:[%s2438_s3 + $0x8] sm:$0xff]   ;;  %v1831_v4 = vld [vmem:[%s2438_s3 + $0x10] sm:$0xff]  }
   0x2   :  { %v1828_v1 = vld [vmem:[%s2439_s1] sm:$0xff]   ;;  %1603 = vmatprep.subr.bf16.mxu1 %v1827_v0  ;;  %v1830_v3 = vld [vmem:[%s2439_s1 + $0x8] sm:$0xff]   ;;  %v1832_v5 = vld [vmem:[%s2439_s1 + $0x10] sm:$0xff]  }
   0x3   :  { %1683 = vmatprep.subr.bf16.mxu0 %v1828_v1  ;;  %1604 = vmatpush3.bf16.msra.mxu1 %v1827_v0  ;;  %v1833_v6 = vld [vmem:[%s2438_s3 + $0x18] sm:$0xff]   ;;  %v1835_v8 = vld [vmem:[%s2438_s3 + $0x20] sm:$0xff]   ;;  %v1837_v10 = vld [vmem:[%s2438_s3 + $0x28] sm:$0xff]  }
   0x4   :  { %1684 = vmatpush3.bf16.msra.mxu0 %v1828_v1  ;;  %1605 = vmatprep.subr.bf16.mxu1 %v1829_v2  ;;  %v1834_v7 = vld [vmem:[%s2439_s1 + $0x18] sm:$0xff]   ;;  %v1836_v9 = vld [vmem:[%s2439_s1 + $0x20] sm:$0xff]   ;;  %v1838_v11 = vld [vmem:[%s2439_s1 + $0x28] sm:$0xff]  }
   0x5   :  { %1685 = vmatprep.subr.bf16.mxu0 %v1830_v3  ;;  %v1843_v12 = vld [vmem:[%s2440_s2] sm:$0xff]   ;;  %v1839_v14 = vld [vmem:[%s2438_s3 + $0x30] sm:$0xff]   ;;  %v1841_v16 = vld [vmem:[%s2438_s3 + $0x38] sm:$0xff]  }
   0x6   :  { %v1844_v13 = vld [vmem:[%s2441_s0] sm:$0xff]   ;;  %1619 = vmatprep.mubr.bf16.mxu1 %v1843_v12  ;;  %v1840_v15 = vld [vmem:[%s2439_s1 + $0x30] sm:$0xff]   ;;  %v1842_v17 = vld [vmem:[%s2439_s1 + $0x38] sm:$0xff]  }
   0x7   :  { %1606 = vmatpush3.bf16.msra.mxu1 %v1829_v2  ;;  %1699 = vmatprep.mubr.bf16.mxu0 %v1844_v13  ;;  %v1845_v18 = vld [vmem:[%s2440_s2 + $0x8] sm:$0xff]   ;;  %v1847_v20 = vld [vmem:[%s2440_s2 + $0x10] sm:$0xff]   ;;  %v1849_v22 = vld [vmem:[%s2440_s2 + $0x18] sm:$0xff]  }
   0x8   :  { %1686 = vmatpush3.bf16.msra.mxu0 %v1830_v3  ;;  %1607 = vmatprep.subr.bf16.mxu1 %v1831_v4  ;;  %v1846_v19 = vld [vmem:[%s2441_s0 + $0x8] sm:$0xff]   ;;  %v1848_v21 = vld [vmem:[%s2441_s0 + $0x10] sm:$0xff]   ;;  %v1850_v23 = vld [vmem:[%s2441_s0 + $0x18] sm:$0xff]  }
   0x9   :  { %1687 = vmatprep.subr.bf16.mxu0 %v1832_v5  ;;  %v1851_v24 = vld [vmem:[%s2440_s2 + $0x20] sm:$0xff]   ;;  %v1853_v26 = vld [vmem:[%s2440_s2 + $0x28] sm:$0xff]   ;;  %v1855_v28 = vld [vmem:[%s2440_s2 + $0x30] sm:$0xff]  }
   0xa   :  { %v1852_v25 = vld [vmem:[%s2441_s0 + $0x20] sm:$0xff]   ;;  %v1854_v27 = vld [vmem:[%s2441_s0 + $0x28] sm:$0xff]   ;;  %v1856_v29 = vld [vmem:[%s2441_s0 + $0x30] sm:$0xff]  }
   0xb   :  { %1608 = vmatpush3.bf16.msra.mxu1 %v1831_v4  ;;  %v1857_v30 = vld [vmem:[%s2440_s2 + $0x38] sm:$0xff]   ;;  %v1859_v32 = vld [vmem:[%s2440_s2 + $0x40] sm:$0xff]   ;;  %v1861_v34 = vld [vmem:[%s2440_s2 + $0x48] sm:$0xff]  }
   0xc   :  { %1688 = vmatpush3.bf16.msra.mxu0 %v1832_v5  ;;  %1609 = vmatprep.subr.bf16.mxu1 %v1833_v6  ;;  %v1858_v31 = vld [vmem:[%s2441_s0 + $0x38] sm:$0xff]   ;;  %v1860_v33 = vld [vmem:[%s2441_s0 + $0x40] sm:$0xff]   ;;  %v1862_v35 = vld [vmem:[%s2441_s0 + $0x48] sm:$0xff]  }
   0xd   :  { %1689 = vmatprep.subr.bf16.mxu0 %v1834_v7  ;;  %v1863_v36 = vld [vmem:[%s2440_s2 + $0x50] sm:$0xff]   ;;  %v1865_v38 = vld [vmem:[%s2440_s2 + $0x58] sm:$0xff]   ;;  %v1867_v40 = vld [vmem:[%s2440_s2 + $0x60] sm:$0xff]  }
   0xe   :  { %v1864_v37 = vld [vmem:[%s2441_s0 + $0x50] sm:$0xff]   ;;  %v1866_v39 = vld [vmem:[%s2441_s0 + $0x58] sm:$0xff]   ;;  %v1868_v41 = vld [vmem:[%s2441_s0 + $0x60] sm:$0xff]  }
   0xf   :  { %1610 = vmatpush3.bf16.msra.mxu1 %v1833_v6  ;;  %v1869_v42 = vld [vmem:[%s2440_s2 + $0x68] sm:$0xff]   ;;  %v1871_v44 = vld [vmem:[%s2440_s2 + $0x70] sm:$0xff]   ;;  %v1873_v46 = vld [vmem:[%s2440_s2 + $0x78] sm:$0xff]  }
  0x10   :  { %1690 = vmatpush3.bf16.msra.mxu0 %v1834_v7  ;;  %1611 = vmatprep.subr.bf16.mxu1 %v1835_v8  ;;  %v1870_v43 = vld [vmem:[%s2441_s0 + $0x68] sm:$0xff]   ;;  %v1872_v45 = vld [vmem:[%s2441_s0 + $0x70] sm:$0xff]   ;;  %v1874_v47 = vld [vmem:[%s2441_s0 + $0x78] sm:$0xff]  }
  0x11   :  { %1691 = vmatprep.subr.bf16.mxu0 %v1836_v9  ;;  %v1875_v48 = vld [vmem:[%s2440_s2 + $0x80] sm:$0xff]   ;;  %v1877_v50 = vld [vmem:[%s2440_s2 + $0x88] sm:$0xff]   ;;  %v1879_v52 = vld [vmem:[%s2440_s2 + $0x90] sm:$0xff]  }
  0x12   :  { %v1876_v49 = vld [vmem:[%s2441_s0 + $0x80] sm:$0xff]   ;;  %v1878_v51 = vld [vmem:[%s2441_s0 + $0x88] sm:$0xff]   ;;  %v1880_v53 = vld [vmem:[%s2441_s0 + $0x90] sm:$0xff]  }
  0x13   :  { %1612 = vmatpush3.bf16.msra.mxu1 %v1835_v8  ;;  %v1881_v54 = vld [vmem:[%s2440_s2 + $0x98] sm:$0xff]   ;;  %v1883_v56 = vld [vmem:[%s2440_s2 + $0xa0] sm:$0xff]   ;;  %v1885_v58 = vld [vmem:[%s2440_s2 + $0xa8] sm:$0xff]  }
  0x14   :  { %1692 = vmatpush3.bf16.msra.mxu0 %v1836_v9  ;;  %1613 = vmatprep.subr.bf16.mxu1 %v1837_v10  ;;  %v1882_v55 = vld [vmem:[%s2441_s0 + $0x98] sm:$0xff]   ;;  %v1884_v57 = vld [vmem:[%s2441_s0 + $0xa0] sm:$0xff]   ;;  %v1886_v59 = vld [vmem:[%s2441_s0 + $0xa8] sm:$0xff]  }
  0x15   :  { %1693 = vmatprep.subr.bf16.mxu0 %v1838_v11  ;;  %v1887_v60 = vld [vmem:[%s2440_s2 + $0xb0] sm:$0xff]   ;;  %v1889_v62 = vld [vmem:[%s2440_s2 + $0xb8] sm:$0xff]   ;;  %v1891_v0 = vld [vmem:[%s2440_s2 + $0xc0] sm:$0xff]  }
  0x16   :  { %v1888_v61 = vld [vmem:[%s2441_s0 + $0xb0] sm:$0xff]   ;;  %v1890_v63 = vld [vmem:[%s2441_s0 + $0xb8] sm:$0xff]   ;;  %v1892_v1 = vld [vmem:[%s2441_s0 + $0xc0] sm:$0xff]  }
  0x17   :  { %1614 = vmatpush3.bf16.msra.mxu1 %v1837_v10  ;;  %v1893_v2 = vld [vmem:[%s2440_s2 + $0xc8] sm:$0xff]   ;;  %v1895_v4 = vld [vmem:[%s2440_s2 + $0xd0] sm:$0xff]   ;;  %v1897_v6 = vld [vmem:[%s2440_s2 + $0xd8] sm:$0xff]  }
  0x18   :  { %1694 = vmatpush3.bf16.msra.mxu0 %v1838_v11  ;;  %1615 = vmatprep.subr.bf16.mxu1 %v1839_v14  ;;  %v1894_v3 = vld [vmem:[%s2441_s0 + $0xc8] sm:$0xff]   ;;  %v1896_v5 = vld [vmem:[%s2441_s0 + $0xd0] sm:$0xff]   ;;  %v1898_v7 = vld [vmem:[%s2441_s0 + $0xd8] sm:$0xff]  }
  0x19   :  { %1695 = vmatprep.subr.bf16.mxu0 %v1840_v15  ;;  %v1899_v8 = vld [vmem:[%s2440_s2 + $0xe0] sm:$0xff]   ;;  %v1901_v10 = vld [vmem:[%s2440_s2 + $0xe8] sm:$0xff]   ;;  %v1903_v12 = vld [vmem:[%s2440_s2 + $0xf0] sm:$0xff]  }
  0x1a   :  { %v1900_v9 = vld [vmem:[%s2441_s0 + $0xe0] sm:$0xff]   ;;  %v1902_v11 = vld [vmem:[%s2441_s0 + $0xe8] sm:$0xff]   ;;  %v1904_v13 = vld [vmem:[%s2441_s0 + $0xf0] sm:$0xff]  }
  0x1b   :  { %1616 = vmatpush3.bf16.msra.mxu1 %v1839_v14  ;;  %v1905_v14 = vld [vmem:[%s2440_s2 + $0xf8] sm:$0xff]  }
  0x1c   :  { %1696 = vmatpush3.bf16.msra.mxu0 %v1840_v15  ;;  %1617 = vmatprep.subr.bf16.mxu1 %v1841_v16  ;;  %v1906_v15 = vld [vmem:[%s2441_s0 + $0xf8] sm:$0xff]  }
  0x1d   :  { %1697 = vmatprep.subr.bf16.mxu0 %v1842_v17 }
  0x1f   :  { %1618 = vmatpush3.bf16.msra.mxu1 %v1841_v16 }
  0x20   :  { %1698 = vmatpush3.bf16.msra.mxu0 %v1842_v17 }
  0x22   :  { %1620 = vmatmul.mubr.bf16.vlgmr.msra.gmra.mrb[0].mxu1 %v1845_v18  ;;  %v2180_v18 = vld [vmem:[%s2442_s4] ss:$0 sm:$0xff] }
  0x23   :  { %1700 = vmatmul.mubr.bf16.vlgmr.msra.gmra.mrb[0].mxu0 %v1846_v19  ;;  %1623 = vmatprep.mubr.bf16.mxu1 %v1847_v20 }
  0x24   :  { %1703 = vmatprep.mubr.bf16.mxu0 %v1848_v21 }
  0x2a   :  { %1624 = vmatmul.mubr.bf16.gmra.mrb[4].mxu1 %v1849_v22 }
  0x2b   :  { %1704 = vmatmul.mubr.bf16.gmra.mrb[4].mxu0 %v1850_v23  ;;  %1627 = vmatprep.mubr.bf16.mxu1 %v1851_v24 }
  0x2c   :  { %1707 = vmatprep.mubr.bf16.mxu0 %v1852_v25 }
  0x32   :  { %1628 = vmatmul.mubr.bf16.gmra.mrb[8].mxu1 %v1853_v26 }
  0x33   :  { %1708 = vmatmul.mubr.bf16.gmra.mrb[8].mxu0 %v1854_v27  ;;  %1631 = vmatprep.mubr.bf16.mxu1 %v1855_v28 }
  0x34   :  { %1711 = vmatprep.mubr.bf16.mxu0 %v1856_v29 }
  0x3a   :  { %1632 = vmatmul.mubr.bf16.gmra.mrb[12].mxu1 %v1857_v30 }
  0x3b   :  { %1712 = vmatmul.mubr.bf16.gmra.mrb[12].mxu0 %v1858_v31  ;;  %1635 = vmatprep.mubr.bf16.mxu1 %v1859_v32 }
  0x3c   :  { %1715 = vmatprep.mubr.bf16.mxu0 %v1860_v33 }
  0x42   :  { %1636 = vmatmul.mubr.bf16.gmra.mrb[16].mxu1 %v1861_v34 }
  0x43   :  { %1716 = vmatmul.mubr.bf16.gmra.mrb[16].mxu0 %v1862_v35  ;;  %1639 = vmatprep.mubr.bf16.mxu1 %v1863_v36 }
  0x44   :  { %1719 = vmatprep.mubr.bf16.mxu0 %v1864_v37 }
  0x4a   :  { %1640 = vmatmul.mubr.bf16.gmra.mrb[20].mxu1 %v1865_v38 }
  0x4b   :  { %1720 = vmatmul.mubr.bf16.gmra.mrb[20].mxu0 %v1866_v39  ;;  %1643 = vmatprep.mubr.bf16.mxu1 %v1867_v40 }
  0x4c   :  { %1723 = vmatprep.mubr.bf16.mxu0 %v1868_v41 }
  0x52   :  { %1644 = vmatmul.mubr.bf16.gmra.mrb[24].mxu1 %v1869_v42 }
  0x53   :  { %1724 = vmatmul.mubr.bf16.gmra.mrb[24].mxu0 %v1870_v43  ;;  %1647 = vmatprep.mubr.bf16.mxu1 %v1871_v44 }
  0x54   :  { %1727 = vmatprep.mubr.bf16.mxu0 %v1872_v45 }
  0x5a   :  { %1648 = vmatmul.mubr.bf16.gmra.mrb[28].mxu1 %v1873_v46 }
  0x5b   :  { %1728 = vmatmul.mubr.bf16.gmra.mrb[28].mxu0 %v1874_v47  ;;  %1651 = vmatprep.mubr.bf16.mxu1 %v1875_v48 }
  0x5c   :  { %1731 = vmatprep.mubr.bf16.mxu0 %v1876_v49 }
  0x62   :  { %1652 = vmatmul.mubr.bf16.gmra.mrb[32].mxu1 %v1877_v50 }
  0x63   :  { %1732 = vmatmul.mubr.bf16.gmra.mrb[32].mxu0 %v1878_v51  ;;  %1655 = vmatprep.mubr.bf16.mxu1 %v1879_v52 }
  0x64   :  { %1735 = vmatprep.mubr.bf16.mxu0 %v1880_v53 }
  0x6a   :  { %1656 = vmatmul.mubr.bf16.gmra.mrb[36].mxu1 %v1881_v54 }
  0x6b   :  { %1736 = vmatmul.mubr.bf16.gmra.mrb[36].mxu0 %v1882_v55  ;;  %1659 = vmatprep.mubr.bf16.mxu1 %v1883_v56 }
  0x6c   :  { %1739 = vmatprep.mubr.bf16.mxu0 %v1884_v57 }
  0x72   :  { %1660 = vmatmul.mubr.bf16.gmra.mrb[40].mxu1 %v1885_v58 }
  0x73   :  { %1740 = vmatmul.mubr.bf16.gmra.mrb[40].mxu0 %v1886_v59  ;;  %1663 = vmatprep.mubr.bf16.mxu1 %v1887_v60 }
  0x74   :  { %1743 = vmatprep.mubr.bf16.mxu0 %v1888_v61 }
  0x7a   :  { %1664 = vmatmul.mubr.bf16.gmra.mrb[44].mxu1 %v1889_v62 }
  0x7b   :  { %1744 = vmatmul.mubr.bf16.gmra.mrb[44].mxu0 %v1890_v63  ;;  %1667 = vmatprep.mubr.bf16.mxu1 %v1891_v0 }
  0x7c   :  { %1747 = vmatprep.mubr.bf16.mxu0 %v1892_v1 }
  0x82   :  { %1668 = vmatmul.mubr.bf16.gmra.mrb[48].mxu1 %v1893_v2 }
  0x83   :  { %1748 = vmatmul.mubr.bf16.gmra.mrb[48].mxu0 %v1894_v3  ;;  %1671 = vmatprep.mubr.bf16.mxu1 %v1895_v4 }
  0x84   :  { %1751 = vmatprep.mubr.bf16.mxu0 %v1896_v5 }
  0x8a   :  { %1672 = vmatmul.mubr.bf16.gmra.mrb[52].mxu1 %v1897_v6 }
  0x8b   :  { %1752 = vmatmul.mubr.bf16.gmra.mrb[52].mxu0 %v1898_v7  ;;  %1675 = vmatprep.mubr.bf16.mxu1 %v1899_v8 }
  0x8c   :  { %1755 = vmatprep.mubr.bf16.mxu0 %v1900_v9 }
  0x92   :  { %1676 = vmatmul.mubr.bf16.gmra.mrb[56].mxu1 %v1901_v10 }
  0x93   :  { %1756 = vmatmul.mubr.bf16.gmra.mrb[56].mxu0 %v1902_v11  ;;  %1679 = vmatprep.mubr.bf16.mxu1 %v1903_v12 }
  0x94   :  { %1759 = vmatprep.mubr.bf16.mxu0 %v1904_v13 }
  0x9a   :  { %1680 = vmatmul.mubr.bf16.gmra.mrb[60].mxu1 %v1905_v14 }
  0x9b   :  { %1760 = vmatmul.mubr.bf16.gmra.mrb[60].mxu0 %v1906_v15 }
  0xf5   :  { %v1621_v16 = vpop.f32.mrb[0].mxu1 }
  0xf6   :  { %v1701_v17 = vpop.f32.mrb[0].mxu0  ;;  %v455_v19 = vpop.f32.mrb[1].mxu1 }
  0xf7   :  { %v993_v20 = vadd.f32 %v1701_v17, %v1621_v16  ;;  %v984_v21 = vpop.f32.mrb[1].mxu0  ;;  %v1622_v22 = vpop.f32.mrb[2].mxu1 }
  0xf8   :  { %v985_v23 = vadd.f32 %v984_v21, %v455_v19  ;;  %v1702_v24 = vpop.f32.mrb[2].mxu0  ;;  %v458_v25 = vpop.f32.mrb[3].mxu1 }
  0xf9   :  { %v1248_v26 = vadd.f32 %v2180_v18, %v993_v20  ;;  %v996_v27 = vadd.f32 %v1702_v24, %v1622_v22  ;;  %v987_v28 = vpop.f32.mrb[3].mxu0 }
  0xfa   :  { %v1246_v29 = vadd.f32 %v2180_v18, %v985_v23  ;;  %v988_v30 = vadd.f32 %v987_v28, %v458_v25 }
  0xfb   :  { %v1312_v31 = vmax.f32 %v1248_v26, 0.0  ;;  %v1249_v32 = vadd.f32 %v2180_v18, %v996_v27 }
  0xfc   :  { %v1310_v33 = vmax.f32 %v1246_v29, 0.0  ;;  %v1247_v34 = vadd.f32 %v2180_v18, %v988_v30 }
  0xfd   :  { %1376 = vst [vmem:[%s2443_s5 + $0x10] sm:$0xff] %v1312_v31  ;;  %v1313_v35 = vmax.f32 %v1249_v32, 0.0  ;;  %v1625_v36 = vpop.f32.mrb[4].mxu1 }
  0xfe   :  { %1374 = vst [vmem:[%s2443_s5] sm:$0xff] %v1310_v33  ;;  %v1311_v37 = vmax.f32 %v1247_v34, 0.0  ;;  %v1705_v38 = vpop.f32.mrb[4].mxu0  ;;  %v471_v39 = vpop.f32.mrb[5].mxu1 }
  0xff   :  { %1377 = vst [vmem:[%s2443_s5 + $0x18] sm:$0xff] %v1313_v35  ;;  %v1009_v40 = vadd.f32 %v1705_v38, %v1625_v36  ;;  %v1000_v41 = vpop.f32.mrb[5].mxu0  ;;  %v1626_v42 = vpop.f32.mrb[6].mxu1 }
 0x100   :  { %1375 = vst [vmem:[%s2443_s5 + $0x8] sm:$0xff] %v1311_v37  ;;  %v1001_v43 = vadd.f32 %v1000_v41, %v471_v39  ;;  %v1706_v44 = vpop.f32.mrb[6].mxu0  ;;  %v474_v45 = vpop.f32.mrb[7].mxu1 }
 0x101   :  { %v1252_v46 = vadd.f32 %v2180_v18, %v1009_v40  ;;  %v1012_v47 = vadd.f32 %v1706_v44, %v1626_v42  ;;  %v1003_v48 = vpop.f32.mrb[7].mxu0 }
 0x102   :  { %v1250_v49 = vadd.f32 %v2180_v18, %v1001_v43  ;;  %v1004_v50 = vadd.f32 %v1003_v48, %v474_v45 }
 0x103   :  { %v1316_v51 = vmax.f32 %v1252_v46, 0.0  ;;  %v1253_v52 = vadd.f32 %v2180_v18, %v1012_v47 }
 0x104   :  { %v1314_v53 = vmax.f32 %v1250_v49, 0.0  ;;  %v1251_v54 = vadd.f32 %v2180_v18, %v1004_v50 }
 0x105   :  { %1380 = vst [vmem:[%s2443_s5 + $0x30] sm:$0xff] %v1316_v51  ;;  %v1317_v55 = vmax.f32 %v1253_v52, 0.0  ;;  %v1629_v56 = vpop.f32.mrb[8].mxu1 }
 0x106   :  { %1378 = vst [vmem:[%s2443_s5 + $0x20] sm:$0xff] %v1314_v53  ;;  %v1315_v57 = vmax.f32 %v1251_v54, 0.0  ;;  %v1709_v58 = vpop.f32.mrb[8].mxu0  ;;  %v487_v59 = vpop.f32.mrb[9].mxu1 }
 0x107   :  { %1381 = vst [vmem:[%s2443_s5 + $0x38] sm:$0xff] %v1317_v55  ;;  %v1025_v60 = vadd.f32 %v1709_v58, %v1629_v56  ;;  %v1016_v61 = vpop.f32.mrb[9].mxu0  ;;  %v1630_v62 = vpop.f32.mrb[10].mxu1 }
 0x108   :  { %1379 = vst [vmem:[%s2443_s5 + $0x28] sm:$0xff] %v1315_v57  ;;  %v1017_v63 = vadd.f32 %v1016_v61, %v487_v59  ;;  %v1710_v0 = vpop.f32.mrb[10].mxu0  ;;  %v490_v1 = vpop.f32.mrb[11].mxu1 }
 0x109   :  { %v1256_v2 = vadd.f32 %v2180_v18, %v1025_v60  ;;  %v1028_v3 = vadd.f32 %v1710_v0, %v1630_v62  ;;  %v1019_v4 = vpop.f32.mrb[11].mxu0 }
 0x10a   :  { %v1254_v5 = vadd.f32 %v2180_v18, %v1017_v63  ;;  %v1020_v6 = vadd.f32 %v1019_v4, %v490_v1 }
 0x10b   :  { %v1320_v7 = vmax.f32 %v1256_v2, 0.0  ;;  %v1257_v8 = vadd.f32 %v2180_v18, %v1028_v3 }
 0x10c   :  { %v1318_v9 = vmax.f32 %v1254_v5, 0.0  ;;  %v1255_v10 = vadd.f32 %v2180_v18, %v1020_v6 }
 0x10d   :  { %1384 = vst [vmem:[%s2443_s5 + $0x50] sm:$0xff] %v1320_v7  ;;  %v1321_v11 = vmax.f32 %v1257_v8, 0.0  ;;  %v1633_v12 = vpop.f32.mrb[12].mxu1 }
 0x10e   :  { %1382 = vst [vmem:[%s2443_s5 + $0x40] sm:$0xff] %v1318_v9  ;;  %v1319_v13 = vmax.f32 %v1255_v10, 0.0  ;;  %v1713_v14 = vpop.f32.mrb[12].mxu0  ;;  %v503_v15 = vpop.f32.mrb[13].mxu1 }
 0x10f   :  { %1385 = vst [vmem:[%s2443_s5 + $0x58] sm:$0xff] %v1321_v11  ;;  %v1041_v16 = vadd.f32 %v1713_v14, %v1633_v12  ;;  %v1032_v17 = vpop.f32.mrb[13].mxu0  ;;  %v1634_v19 = vpop.f32.mrb[14].mxu1 }
 0x110   :  { %1383 = vst [vmem:[%s2443_s5 + $0x48] sm:$0xff] %v1319_v13  ;;  %v1033_v20 = vadd.f32 %v1032_v17, %v503_v15  ;;  %v1714_v21 = vpop.f32.mrb[14].mxu0  ;;  %v506_v22 = vpop.f32.mrb[15].mxu1 }
 0x111   :  { %v1260_v23 = vadd.f32 %v2180_v18, %v1041_v16  ;;  %v1044_v24 = vadd.f32 %v1714_v21, %v1634_v19  ;;  %v1035_v25 = vpop.f32.mrb[15].mxu0 }
 0x112   :  { %v1258_v26 = vadd.f32 %v2180_v18, %v1033_v20  ;;  %v1036_v27 = vadd.f32 %v1035_v25, %v506_v22 }
 0x113   :  { %v1324_v28 = vmax.f32 %v1260_v23, 0.0  ;;  %v1261_v29 = vadd.f32 %v2180_v18, %v1044_v24 }
 0x114   :  { %v1322_v30 = vmax.f32 %v1258_v26, 0.0  ;;  %v1259_v31 = vadd.f32 %v2180_v18, %v1036_v27 }
 0x115   :  { %1388 = vst [vmem:[%s2443_s5 + $0x70] sm:$0xff] %v1324_v28  ;;  %v1325_v32 = vmax.f32 %v1261_v29, 0.0  ;;  %v1637_v33 = vpop.f32.mrb[16].mxu1 }
 0x116   :  { %1386 = vst [vmem:[%s2443_s5 + $0x60] sm:$0xff] %v1322_v30  ;;  %v1323_v34 = vmax.f32 %v1259_v31, 0.0  ;;  %v1717_v35 = vpop.f32.mrb[16].mxu0  ;;  %v519_v36 = vpop.f32.mrb[17].mxu1 }
 0x117   :  { %1389 = vst [vmem:[%s2443_s5 + $0x78] sm:$0xff] %v1325_v32  ;;  %v1057_v37 = vadd.f32 %v1717_v35, %v1637_v33  ;;  %v1048_v38 = vpop.f32.mrb[17].mxu0  ;;  %v1638_v39 = vpop.f32.mrb[18].mxu1 }
 0x118   :  { %1387 = vst [vmem:[%s2443_s5 + $0x68] sm:$0xff] %v1323_v34  ;;  %v1049_v40 = vadd.f32 %v1048_v38, %v519_v36  ;;  %v1718_v41 = vpop.f32.mrb[18].mxu0  ;;  %v522_v42 = vpop.f32.mrb[19].mxu1 }
 0x119   :  { %v1264_v43 = vadd.f32 %v2180_v18, %v1057_v37  ;;  %v1060_v44 = vadd.f32 %v1718_v41, %v1638_v39  ;;  %v1051_v45 = vpop.f32.mrb[19].mxu0 }
 0x11a   :  { %v1262_v46 = vadd.f32 %v2180_v18, %v1049_v40  ;;  %v1052_v47 = vadd.f32 %v1051_v45, %v522_v42 }
 0x11b   :  { %v1328_v48 = vmax.f32 %v1264_v43, 0.0  ;;  %v1265_v49 = vadd.f32 %v2180_v18, %v1060_v44 }
 0x11c   :  { %v1326_v50 = vmax.f32 %v1262_v46, 0.0  ;;  %v1263_v51 = vadd.f32 %v2180_v18, %v1052_v47 }
 0x11d   :  { %1392 = vst [vmem:[%s2443_s5 + $0x90] sm:$0xff] %v1328_v48  ;;  %v1329_v52 = vmax.f32 %v1265_v49, 0.0  ;;  %v1641_v53 = vpop.f32.mrb[20].mxu1 }
 0x11e   :  { %1390 = vst [vmem:[%s2443_s5 + $0x80] sm:$0xff] %v1326_v50  ;;  %v1327_v54 = vmax.f32 %v1263_v51, 0.0  ;;  %v1721_v55 = vpop.f32.mrb[20].mxu0  ;;  %v535_v56 = vpop.f32.mrb[21].mxu1 }
 0x11f   :  { %1393 = vst [vmem:[%s2443_s5 + $0x98] sm:$0xff] %v1329_v52  ;;  %v1073_v57 = vadd.f32 %v1721_v55, %v1641_v53  ;;  %v1064_v58 = vpop.f32.mrb[21].mxu0  ;;  %v1642_v59 = vpop.f32.mrb[22].mxu1 }
 0x120   :  { %1391 = vst [vmem:[%s2443_s5 + $0x88] sm:$0xff] %v1327_v54  ;;  %v1065_v60 = vadd.f32 %v1064_v58, %v535_v56  ;;  %v1722_v61 = vpop.f32.mrb[22].mxu0  ;;  %v538_v62 = vpop.f32.mrb[23].mxu1 }
 0x121   :  { %v1268_v63 = vadd.f32 %v2180_v18, %v1073_v57  ;;  %v1076_v0 = vadd.f32 %v1722_v61, %v1642_v59  ;;  %v1067_v1 = vpop.f32.mrb[23].mxu0 }
 0x122   :  { %v1266_v2 = vadd.f32 %v2180_v18, %v1065_v60  ;;  %v1068_v3 = vadd.f32 %v1067_v1, %v538_v62 }
 0x123   :  { %v1332_v4 = vmax.f32 %v1268_v63, 0.0  ;;  %v1269_v5 = vadd.f32 %v2180_v18, %v1076_v0 }
 0x124   :  { %v1330_v6 = vmax.f32 %v1266_v2, 0.0  ;;  %v1267_v7 = vadd.f32 %v2180_v18, %v1068_v3 }
 0x125   :  { %1396 = vst [vmem:[%s2443_s5 + $0xb0] sm:$0xff] %v1332_v4  ;;  %v1333_v8 = vmax.f32 %v1269_v5, 0.0  ;;  %v1645_v9 = vpop.f32.mrb[24].mxu1 }
 0x126   :  { %1394 = vst [vmem:[%s2443_s5 + $0xa0] sm:$0xff] %v1330_v6  ;;  %v1331_v10 = vmax.f32 %v1267_v7, 0.0  ;;  %v1725_v11 = vpop.f32.mrb[24].mxu0  ;;  %v551_v12 = vpop.f32.mrb[25].mxu1 }
 0x127   :  { %1397 = vst [vmem:[%s2443_s5 + $0xb8] sm:$0xff] %v1333_v8  ;;  %v1089_v13 = vadd.f32 %v1725_v11, %v1645_v9  ;;  %v1080_v14 = vpop.f32.mrb[25].mxu0  ;;  %v1646_v15 = vpop.f32.mrb[26].mxu1 }
 0x128   :  { %1395 = vst [vmem:[%s2443_s5 + $0xa8] sm:$0xff] %v1331_v10  ;;  %v1081_v16 = vadd.f32 %v1080_v14, %v551_v12  ;;  %v1726_v17 = vpop.f32.mrb[26].mxu0  ;;  %v554_v19 = vpop.f32.mrb[27].mxu1 }
 0x129   :  { %v1272_v20 = vadd.f32 %v2180_v18, %v1089_v13  ;;  %v1092_v21 = vadd.f32 %v1726_v17, %v1646_v15  ;;  %v1083_v22 = vpop.f32.mrb[27].mxu0 }
 0x12a   :  { %v1270_v23 = vadd.f32 %v2180_v18, %v1081_v16  ;;  %v1084_v24 = vadd.f32 %v1083_v22, %v554_v19 }
 0x12b   :  { %v1336_v25 = vmax.f32 %v1272_v20, 0.0  ;;  %v1273_v26 = vadd.f32 %v2180_v18, %v1092_v21 }
 0x12c   :  { %v1334_v27 = vmax.f32 %v1270_v23, 0.0  ;;  %v1271_v28 = vadd.f32 %v2180_v18, %v1084_v24 }
 0x12d   :  { %1400 = vst [vmem:[%s2443_s5 + $0xd0] sm:$0xff] %v1336_v25  ;;  %v1337_v29 = vmax.f32 %v1273_v26, 0.0  ;;  %v1649_v30 = vpop.f32.mrb[28].mxu1 }
 0x12e   :  { %1398 = vst [vmem:[%s2443_s5 + $0xc0] sm:$0xff] %v1334_v27  ;;  %v1335_v31 = vmax.f32 %v1271_v28, 0.0  ;;  %v1729_v32 = vpop.f32.mrb[28].mxu0  ;;  %v567_v33 = vpop.f32.mrb[29].mxu1 }
 0x12f   :  { %1401 = vst [vmem:[%s2443_s5 + $0xd8] sm:$0xff] %v1337_v29  ;;  %v1105_v34 = vadd.f32 %v1729_v32, %v1649_v30  ;;  %v1096_v35 = vpop.f32.mrb[29].mxu0  ;;  %v1650_v36 = vpop.f32.mrb[30].mxu1 }
 0x130   :  { %1399 = vst [vmem:[%s2443_s5 + $0xc8] sm:$0xff] %v1335_v31  ;;  %v1097_v37 = vadd.f32 %v1096_v35, %v567_v33  ;;  %v1730_v38 = vpop.f32.mrb[30].mxu0  ;;  %v570_v39 = vpop.f32.mrb[31].mxu1 }
 0x131   :  { %v1276_v40 = vadd.f32 %v2180_v18, %v1105_v34  ;;  %v1108_v41 = vadd.f32 %v1730_v38, %v1650_v36  ;;  %v1099_v42 = vpop.f32.mrb[31].mxu0 }
 0x132   :  { %v1274_v43 = vadd.f32 %v2180_v18, %v1097_v37  ;;  %v1100_v44 = vadd.f32 %v1099_v42, %v570_v39 }
 0x133   :  { %v1340_v45 = vmax.f32 %v1276_v40, 0.0  ;;  %v1277_v46 = vadd.f32 %v2180_v18, %v1108_v41 }
 0x134   :  { %v1338_v47 = vmax.f32 %v1274_v43, 0.0  ;;  %v1275_v48 = vadd.f32 %v2180_v18, %v1100_v44 }
 0x135   :  { %1404 = vst [vmem:[%s2443_s5 + $0xf0] sm:$0xff] %v1340_v45  ;;  %v1341_v49 = vmax.f32 %v1277_v46, 0.0  ;;  %v1653_v50 = vpop.f32.mrb[32].mxu1 }
 0x136   :  { %1402 = vst [vmem:[%s2443_s5 + $0xe0] sm:$0xff] %v1338_v47  ;;  %v1339_v51 = vmax.f32 %v1275_v48, 0.0  ;;  %v1733_v52 = vpop.f32.mrb[32].mxu0  ;;  %v583_v53 = vpop.f32.mrb[33].mxu1 }
 0x137   :  { %1405 = vst [vmem:[%s2443_s5 + $0xf8] sm:$0xff] %v1341_v49  ;;  %v1121_v54 = vadd.f32 %v1733_v52, %v1653_v50  ;;  %v1112_v55 = vpop.f32.mrb[33].mxu0  ;;  %v1654_v56 = vpop.f32.mrb[34].mxu1 }
 0x138   :  { %1403 = vst [vmem:[%s2443_s5 + $0xe8] sm:$0xff] %v1339_v51  ;;  %v1113_v57 = vadd.f32 %v1112_v55, %v583_v53  ;;  %v1734_v58 = vpop.f32.mrb[34].mxu0  ;;  %v586_v59 = vpop.f32.mrb[35].mxu1 }
 0x139   :  { %v1280_v60 = vadd.f32 %v2180_v18, %v1121_v54  ;;  %v1124_v61 = vadd.f32 %v1734_v58, %v1654_v56  ;;  %v1115_v62 = vpop.f32.mrb[35].mxu0 }
 0x13a   :  { %v1278_v63 = vadd.f32 %v2180_v18, %v1113_v57  ;;  %v1116_v0 = vadd.f32 %v1115_v62, %v586_v59 }
 0x13b   :  { %v1344_v1 = vmax.f32 %v1280_v60, 0.0  ;;  %v1281_v2 = vadd.f32 %v2180_v18, %v1124_v61 }
 0x13c   :  { %v1342_v3 = vmax.f32 %v1278_v63, 0.0  ;;  %v1279_v4 = vadd.f32 %v2180_v18, %v1116_v0 }
 0x13d   :  { %1408 = vst [vmem:[%s2443_s5 + $0x110] sm:$0xff] %v1344_v1  ;;  %v1345_v5 = vmax.f32 %v1281_v2, 0.0  ;;  %v1657_v6 = vpop.f32.mrb[36].mxu1 }
 0x13e   :  { %1406 = vst [vmem:[%s2443_s5 + $0x100] sm:$0xff] %v1342_v3  ;;  %v1343_v7 = vmax.f32 %v1279_v4, 0.0  ;;  %v1737_v8 = vpop.f32.mrb[36].mxu0  ;;  %v599_v9 = vpop.f32.mrb[37].mxu1 }
 0x13f   :  { %1409 = vst [vmem:[%s2443_s5 + $0x118] sm:$0xff] %v1345_v5  ;;  %v1137_v10 = vadd.f32 %v1737_v8, %v1657_v6  ;;  %v1128_v11 = vpop.f32.mrb[37].mxu0  ;;  %v1658_v12 = vpop.f32.mrb[38].mxu1 }
 0x140   :  { %1407 = vst [vmem:[%s2443_s5 + $0x108] sm:$0xff] %v1343_v7  ;;  %v1129_v13 = vadd.f32 %v1128_v11, %v599_v9  ;;  %v1738_v14 = vpop.f32.mrb[38].mxu0  ;;  %v602_v15 = vpop.f32.mrb[39].mxu1 }
 0x141   :  { %v1284_v16 = vadd.f32 %v2180_v18, %v1137_v10  ;;  %v1140_v17 = vadd.f32 %v1738_v14, %v1658_v12  ;;  %v1131_v19 = vpop.f32.mrb[39].mxu0 }
 0x142   :  { %v1282_v20 = vadd.f32 %v2180_v18, %v1129_v13  ;;  %v1132_v21 = vadd.f32 %v1131_v19, %v602_v15 }
 0x143   :  { %v1348_v22 = vmax.f32 %v1284_v16, 0.0  ;;  %v1285_v23 = vadd.f32 %v2180_v18, %v1140_v17 }
 0x144   :  { %v1346_v24 = vmax.f32 %v1282_v20, 0.0  ;;  %v1283_v25 = vadd.f32 %v2180_v18, %v1132_v21 }
 0x145   :  { %1412 = vst [vmem:[%s2443_s5 + $0x130] sm:$0xff] %v1348_v22  ;;  %v1349_v26 = vmax.f32 %v1285_v23, 0.0  ;;  %v1661_v27 = vpop.f32.mrb[40].mxu1 }
 0x146   :  { %1410 = vst [vmem:[%s2443_s5 + $0x120] sm:$0xff] %v1346_v24  ;;  %v1347_v28 = vmax.f32 %v1283_v25, 0.0  ;;  %v1741_v29 = vpop.f32.mrb[40].mxu0  ;;  %v615_v30 = vpop.f32.mrb[41].mxu1 }
 0x147   :  { %1413 = vst [vmem:[%s2443_s5 + $0x138] sm:$0xff] %v1349_v26  ;;  %v1153_v31 = vadd.f32 %v1741_v29, %v1661_v27  ;;  %v1144_v32 = vpop.f32.mrb[41].mxu0  ;;  %v1662_v33 = vpop.f32.mrb[42].mxu1 }
 0x148   :  { %1411 = vst [vmem:[%s2443_s5 + $0x128] sm:$0xff] %v1347_v28  ;;  %v1145_v34 = vadd.f32 %v1144_v32, %v615_v30  ;;  %v1742_v35 = vpop.f32.mrb[42].mxu0  ;;  %v618_v36 = vpop.f32.mrb[43].mxu1 }
 0x149   :  { %v1288_v37 = vadd.f32 %v2180_v18, %v1153_v31  ;;  %v1156_v38 = vadd.f32 %v1742_v35, %v1662_v33  ;;  %v1147_v39 = vpop.f32.mrb[43].mxu0 }
 0x14a   :  { %v1286_v40 = vadd.f32 %v2180_v18, %v1145_v34  ;;  %v1148_v41 = vadd.f32 %v1147_v39, %v618_v36 }
 0x14b   :  { %v1352_v42 = vmax.f32 %v1288_v37, 0.0  ;;  %v1289_v43 = vadd.f32 %v2180_v18, %v1156_v38 }
 0x14c   :  { %v1350_v44 = vmax.f32 %v1286_v40, 0.0  ;;  %v1287_v45 = vadd.f32 %v2180_v18, %v1148_v41 }
 0x14d   :  { %1416 = vst [vmem:[%s2443_s5 + $0x150] sm:$0xff] %v1352_v42  ;;  %v1353_v46 = vmax.f32 %v1289_v43, 0.0  ;;  %v1665_v47 = vpop.f32.mrb[44].mxu1 }
 0x14e   :  { %1414 = vst [vmem:[%s2443_s5 + $0x140] sm:$0xff] %v1350_v44  ;;  %v1351_v48 = vmax.f32 %v1287_v45, 0.0  ;;  %v1745_v49 = vpop.f32.mrb[44].mxu0  ;;  %v631_v50 = vpop.f32.mrb[45].mxu1 }
 0x14f   :  { %1417 = vst [vmem:[%s2443_s5 + $0x158] sm:$0xff] %v1353_v46  ;;  %v1169_v51 = vadd.f32 %v1745_v49, %v1665_v47  ;;  %v1160_v52 = vpop.f32.mrb[45].mxu0  ;;  %v1666_v53 = vpop.f32.mrb[46].mxu1 }
 0x150   :  { %1415 = vst [vmem:[%s2443_s5 + $0x148] sm:$0xff] %v1351_v48  ;;  %v1161_v54 = vadd.f32 %v1160_v52, %v631_v50  ;;  %v1746_v55 = vpop.f32.mrb[46].mxu0  ;;  %v634_v56 = vpop.f32.mrb[47].mxu1 }
 0x151   :  { %v1292_v57 = vadd.f32 %v2180_v18, %v1169_v51  ;;  %v1172_v58 = vadd.f32 %v1746_v55, %v1666_v53  ;;  %v1163_v59 = vpop.f32.mrb[47].mxu0 }
 0x152   :  { %v1290_v60 = vadd.f32 %v2180_v18, %v1161_v54  ;;  %v1164_v61 = vadd.f32 %v1163_v59, %v634_v56 }
 0x153   :  { %v1356_v62 = vmax.f32 %v1292_v57, 0.0  ;;  %v1293_v63 = vadd.f32 %v2180_v18, %v1172_v58 }
 0x154   :  { %v1354_v0 = vmax.f32 %v1290_v60, 0.0  ;;  %v1291_v1 = vadd.f32 %v2180_v18, %v1164_v61 }
 0x155   :  { %1420 = vst [vmem:[%s2443_s5 + $0x170] sm:$0xff] %v1356_v62  ;;  %v1357_v2 = vmax.f32 %v1293_v63, 0.0  ;;  %v1669_v3 = vpop.f32.mrb[48].mxu1 }
 0x156   :  { %1418 = vst [vmem:[%s2443_s5 + $0x160] sm:$0xff] %v1354_v0  ;;  %v1355_v4 = vmax.f32 %v1291_v1, 0.0  ;;  %v1749_v5 = vpop.f32.mrb[48].mxu0  ;;  %v647_v6 = vpop.f32.mrb[49].mxu1 }
 0x157   :  { %1421 = vst [vmem:[%s2443_s5 + $0x178] sm:$0xff] %v1357_v2  ;;  %v1185_v7 = vadd.f32 %v1749_v5, %v1669_v3  ;;  %v1176_v8 = vpop.f32.mrb[49].mxu0  ;;  %v1670_v9 = vpop.f32.mrb[50].mxu1 }
 0x158   :  { %1419 = vst [vmem:[%s2443_s5 + $0x168] sm:$0xff] %v1355_v4  ;;  %v1177_v10 = vadd.f32 %v1176_v8, %v647_v6  ;;  %v1750_v11 = vpop.f32.mrb[50].mxu0  ;;  %v650_v12 = vpop.f32.mrb[51].mxu1 }
 0x159   :  { %v1296_v13 = vadd.f32 %v2180_v18, %v1185_v7  ;;  %v1188_v14 = vadd.f32 %v1750_v11, %v1670_v9  ;;  %v1179_v15 = vpop.f32.mrb[51].mxu0 }
 0x15a   :  { %v1294_v16 = vadd.f32 %v2180_v18, %v1177_v10  ;;  %v1180_v17 = vadd.f32 %v1179_v15, %v650_v12 }
 0x15b   :  { %v1360_v19 = vmax.f32 %v1296_v13, 0.0  ;;  %v1297_v20 = vadd.f32 %v2180_v18, %v1188_v14 }
 0x15c   :  { %v1358_v21 = vmax.f32 %v1294_v16, 0.0  ;;  %v1295_v22 = vadd.f32 %v2180_v18, %v1180_v17 }
 0x15d   :  { %1424 = vst [vmem:[%s2443_s5 + $0x190] sm:$0xff] %v1360_v19  ;;  %v1361_v23 = vmax.f32 %v1297_v20, 0.0  ;;  %v1673_v24 = vpop.f32.mrb[52].mxu1 }
 0x15e   :  { %1422 = vst [vmem:[%s2443_s5 + $0x180] sm:$0xff] %v1358_v21  ;;  %v1359_v25 = vmax.f32 %v1295_v22, 0.0  ;;  %v1753_v26 = vpop.f32.mrb[52].mxu0  ;;  %v663_v27 = vpop.f32.mrb[53].mxu1 }
 0x15f   :  { %1425 = vst [vmem:[%s2443_s5 + $0x198] sm:$0xff] %v1361_v23  ;;  %v1201_v28 = vadd.f32 %v1753_v26, %v1673_v24  ;;  %v1192_v29 = vpop.f32.mrb[53].mxu0  ;;  %v1674_v30 = vpop.f32.mrb[54].mxu1 }
 0x160   :  { %1423 = vst [vmem:[%s2443_s5 + $0x188] sm:$0xff] %v1359_v25  ;;  %v1193_v31 = vadd.f32 %v1192_v29, %v663_v27  ;;  %v1754_v32 = vpop.f32.mrb[54].mxu0  ;;  %v666_v33 = vpop.f32.mrb[55].mxu1 }
 0x161   :  { %v1300_v34 = vadd.f32 %v2180_v18, %v1201_v28  ;;  %v1204_v35 = vadd.f32 %v1754_v32, %v1674_v30  ;;  %v1195_v36 = vpop.f32.mrb[55].mxu0 }
 0x162   :  { %v1298_v37 = vadd.f32 %v2180_v18, %v1193_v31  ;;  %v1196_v38 = vadd.f32 %v1195_v36, %v666_v33 }
 0x163   :  { %v1364_v39 = vmax.f32 %v1300_v34, 0.0  ;;  %v1301_v40 = vadd.f32 %v2180_v18, %v1204_v35 }
 0x164   :  { %v1362_v41 = vmax.f32 %v1298_v37, 0.0  ;;  %v1299_v42 = vadd.f32 %v2180_v18, %v1196_v38 }
 0x165   :  { %1428 = vst [vmem:[%s2443_s5 + $0x1b0] sm:$0xff] %v1364_v39  ;;  %v1365_v43 = vmax.f32 %v1301_v40, 0.0  ;;  %v1677_v44 = vpop.f32.mrb[56].mxu1 }
 0x166   :  { %1426 = vst [vmem:[%s2443_s5 + $0x1a0] sm:$0xff] %v1362_v41  ;;  %v1363_v45 = vmax.f32 %v1299_v42, 0.0  ;;  %v1757_v46 = vpop.f32.mrb[56].mxu0  ;;  %v679_v47 = vpop.f32.mrb[57].mxu1 }
 0x167   :  { %1429 = vst [vmem:[%s2443_s5 + $0x1b8] sm:$0xff] %v1365_v43  ;;  %v1217_v48 = vadd.f32 %v1757_v46, %v1677_v44  ;;  %v1208_v49 = vpop.f32.mrb[57].mxu0  ;;  %v1678_v50 = vpop.f32.mrb[58].mxu1 }
 0x168   :  { %1427 = vst [vmem:[%s2443_s5 + $0x1a8] sm:$0xff] %v1363_v45  ;;  %v1209_v51 = vadd.f32 %v1208_v49, %v679_v47  ;;  %v1758_v52 = vpop.f32.mrb[58].mxu0  ;;  %v682_v53 = vpop.f32.mrb[59].mxu1 }
 0x169   :  { %v1304_v54 = vadd.f32 %v2180_v18, %v1217_v48  ;;  %v1220_v55 = vadd.f32 %v1758_v52, %v1678_v50  ;;  %v1211_v56 = vpop.f32.mrb[59].mxu0 }
 0x16a   :  { %v1302_v57 = vadd.f32 %v2180_v18, %v1209_v51  ;;  %v1212_v58 = vadd.f32 %v1211_v56, %v682_v53 }
 0x16b   :  { %v1368_v59 = vmax.f32 %v1304_v54, 0.0  ;;  %v1305_v60 = vadd.f32 %v2180_v18, %v1220_v55 }
 0x16c   :  { %v1366_v61 = vmax.f32 %v1302_v57, 0.0  ;;  %v1303_v62 = vadd.f32 %v2180_v18, %v1212_v58 }
 0x16d   :  { %1432 = vst [vmem:[%s2443_s5 + $0x1d0] sm:$0xff] %v1368_v59  ;;  %v1369_v63 = vmax.f32 %v1305_v60, 0.0  ;;  %v1681_v0 = vpop.f32.mrb[60].mxu1 }
 0x16e   :  { %1430 = vst [vmem:[%s2443_s5 + $0x1c0] sm:$0xff] %v1366_v61  ;;  %v1367_v1 = vmax.f32 %v1303_v62, 0.0  ;;  %v1761_v2 = vpop.f32.mrb[60].mxu0  ;;  %v695_v3 = vpop.f32.mrb[61].mxu1 }
 0x16f   :  { %1433 = vst [vmem:[%s2443_s5 + $0x1d8] sm:$0xff] %v1369_v63  ;;  %v1233_v4 = vadd.f32 %v1761_v2, %v1681_v0  ;;  %v1224_v5 = vpop.f32.mrb[61].mxu0  ;;  %v1682_v6 = vpop.f32.mrb[62].mxu1 }
 0x170   :  { %1431 = vst [vmem:[%s2443_s5 + $0x1c8] sm:$0xff] %v1367_v1  ;;  %v1225_v7 = vadd.f32 %v1224_v5, %v695_v3  ;;  %v1762_v8 = vpop.f32.mrb[62].mxu0  ;;  %v698_v9 = vpop.f32.mrb[63].mxu1 }
 0x171   :  { %v1308_v10 = vadd.f32 %v2180_v18, %v1233_v4  ;;  %v1236_v11 = vadd.f32 %v1762_v8, %v1682_v6  ;;  %v1227_v12 = vpop.f32.mrb[63].mxu0 }
 0x172   :  { %v1306_v13 = vadd.f32 %v2180_v18, %v1225_v7  ;;  %v1228_v14 = vadd.f32 %v1227_v12, %v698_v9 }
 0x173   :  { %v1372_v15 = vmax.f32 %v1308_v10, 0.0  ;;  %v1309_v16 = vadd.f32 %v2180_v18, %v1236_v11 }
 0x174   :  { %v1370_v17 = vmax.f32 %v1306_v13, 0.0  ;;  %v1307_v19 = vadd.f32 %v2180_v18, %v1228_v14 }
 0x175   :  { %1436 = vst [vmem:[%s2443_s5 + $0x1f0] sm:$0xff] %v1372_v15  ;;  %v1373_v20 = vmax.f32 %v1309_v16, 0.0 }
 0x176   :  { %1434 = vst [vmem:[%s2443_s5 + $0x1e0] sm:$0xff] %v1370_v17  ;;  %v1371_v21 = vmax.f32 %v1307_v19, 0.0 }
 0x177   :  { %1437 = vst [vmem:[%s2443_s5 + $0x1f8] sm:$0xff] %v1373_v20 }
 0x178   :  { %1435 = vst [vmem:[%s2443_s5 + $0x1e8] sm:$0xff] %v1371_v21 }

</bundles_post_ra>
